<compile_context>
chip_gen: v5e
topology: v5e:2x2
jax: 0.10.0
libtpu: 0.0.40
codegen_flags: <defaults>
</compile_context>

<pallas_src>
import jax
import jax.numpy as jnp
from jax import lax
from jax.experimental import pallas as pl
from jax.experimental.pallas import tpu as pltpu


# ----------------------------- fused kernel ---------------------------------

def _lenet_fused_kernel(x_ref, b1m_ref, b1v_ref, b2m_ref, b2v_ref,
                        wf1_ref, bf1_ref, wf2_ref, bf2_ref, wf3_ref, bf3_ref,
                        out_ref):
    f32, bf16 = jnp.float32, jnp.bfloat16
    nb = x_ref.shape[1]                      # samples per grid step

    # ---- conv1: 5 banded matmuls over kernel row kh (width taps folded into
    #      the [96,256] band matrices).  LHS rows = h*nb + n, lanes = c*32 + w.
    xv = x_ref[...].reshape(32 * nb, 96)
    y1 = jnp.dot(xv[: 28 * nb], b1m_ref[0], preferred_element_type=f32)
    for kh in range(1, 5):
        y1 = y1 + jnp.dot(xv[kh * nb:(kh + 28) * nb], b1m_ref[kh],
                          preferred_element_type=f32)
    # y1: [28*nb, 256]; lane = pw*128 + o*16 + jp  (conv output width = 2*jp + pw)

    # ---- pool1 (2x2 max) + bias + ReLU : pure VPU, all slices tile aligned.
    t1 = y1.reshape(14, 2 * nb, 256)
    ph1 = jnp.maximum(t1[:, :nb, :], t1[:, nb:, :])          # height pairs
    p1 = jnp.maximum(ph1[:, :, :128], ph1[:, :, 128:])       # width pairs (phases)
    p1 = jnp.maximum(p1 + b1v_ref[...], 0.0)                 # bias + ReLU
    p1 = p1.astype(bf16).reshape(14 * nb, 128)               # rows = hp*nb + n

    # ---- conv2: 5 banded matmuls over kh2; band matrices read pooled1's lanes
    #      (c*16 + j') and emit 16 channels x 2 width phases = 256 lanes.
    y2 = jnp.dot(p1[: 10 * nb], b2m_ref[0], preferred_element_type=f32)
    for kh in range(1, 5):
        y2 = y2 + jnp.dot(p1[kh * nb:(kh + 10) * nb], b2m_ref[kh],
                          preferred_element_type=f32)
    # y2: [10*nb, 256]; lane = pw*128 + o2*8 + jp2

    # ---- pool2 + bias + ReLU.
    t2 = y2.reshape(5, 2 * nb, 256)
    ph2 = jnp.maximum(t2[:, :nb, :], t2[:, nb:, :])
    p2 = jnp.maximum(ph2[:, :, :128], ph2[:, :, 128:])
    p2 = jnp.maximum(p2 + b2v_ref[...], 0.0).astype(bf16)    # [5, nb, 128]

    # ---- fc1: NCHW flatten folded into wf1 -> 5 accumulating [nb,128]x[128,128].
    z = jnp.dot(p2[0], wf1_ref[0], preferred_element_type=f32)
    for ih in range(1, 5):
        z = z + jnp.dot(p2[ih], wf1_ref[ih], preferred_element_type=f32)
    z = jnp.maximum(z + bf1_ref[...], 0.0).astype(bf16)      # [nb, 128]

    # ---- fc2 / fc3 (padded to 128 lanes; wrapper slices [:, :3]).
    z = jnp.maximum(jnp.dot(z, wf2_ref[...], preferred_element_type=f32)
                    + bf2_ref[...], 0.0).astype(bf16)
    z = jnp.dot(z, wf3_ref[...], preferred_element_type=f32) + bf3_ref[...]
    out_ref[...] = z                                         # [nb, 128] f32, dense


# ----------------------------- parameters -----------------------------------

def init_params(key):
    # PyTorch-style default init: U(-1/sqrt(fan_in), 1/sqrt(fan_in))
    def uni(k, shape, fan_in):
        bound = 1.0 / jnp.sqrt(float(fan_in))
        return jax.random.uniform(k, shape, jnp.float32, -bound, bound)

    ks = jax.random.split(key, 10)
    return {
        "conv1_w": uni(ks[0], (6, 3, 5, 5), 3 * 5 * 5),
        "conv1_b": uni(ks[1], (6,), 3 * 5 * 5),
        "conv2_w": uni(ks[2], (16, 6, 5, 5), 6 * 5 * 5),
        "conv2_b": uni(ks[3], (16,), 6 * 5 * 5),
        "fc1_w": uni(ks[4], (120, 400), 400),
        "fc1_b": uni(ks[5], (120,), 400),
        "fc2_w": uni(ks[6], (84, 120), 120),
        "fc2_b": uni(ks[7], (84,), 120),
        "fc3_w": uni(ks[8], (3, 84), 84),
        "fc3_b": uni(ks[9], (3,), 84),
    }


def prepare_consts(params):
    """One-time layout plumbing: conv width-taps, the 2x2-pool phase split and the
    NCHW flatten are folded into sparse 'band' matrices here, so the kernel has
    no im2col / gathers at all."""
    f32, bf16 = jnp.float32, jnp.bfloat16
    w1 = params["conv1_w"].astype(f32)          # (6, 3, 5, 5)   (o, c, kh, kw)
    w2 = params["conv2_w"].astype(f32)          # (16, 6, 5, 5)

    # conv1 band: B1[kh, c*32 + j_in, pw*128 + o*16 + jp] = w1[o,c,kh, j_in-(2*jp+pw)]
    row = jnp.arange(96)[:, None]
    col = jnp.arange(256)[None, :]
    c, j_in = row // 32, row % 32
    pw, rr = col // 128, col % 128
    o, jp = rr // 16, rr % 16
    kw = j_in - (2 * jp + pw)
    valid = (o < 6) & (jp < 14) & (kw >= 0) & (kw < 5)
    o_b, c_b, kw_b = jnp.broadcast_arrays(jnp.clip(o, 0, 5), c, jnp.clip(kw, 0, 4))
    b1m = jnp.stack([jnp.where(valid, w1[o_b, c_b, kh, kw_b], 0.0)
                     for kh in range(5)], axis=0).astype(bf16)       # (5, 96, 256)

    # conv2 band: B2[kh, c*16 + j_in, pw*128 + o*8 + jp] = w2[o,c,kh, j_in-(2*jp+pw)]
    row = jnp.arange(128)[:, None]
    col = jnp.arange(256)[None, :]
    c, j_in = row // 16, row % 16
    pw, rr = col // 128, col % 128
    o, jp = rr // 8, rr % 8
    kw = j_in - (2 * jp + pw)
    valid = (c < 6) & (j_in < 14) & (jp < 5) & (kw >= 0) & (kw < 5)
    o_b, c_b, kw_b = jnp.broadcast_arrays(o, jnp.clip(c, 0, 5), jnp.clip(kw, 0, 4))
    b2m = jnp.stack([jnp.where(valid, w2[o_b, c_b, kh, kw_b], 0.0)
                     for kh in range(5)], axis=0).astype(bf16)       # (5, 128, 256)

    # conv bias vectors broadcast across their per-channel lane slots.
    lane = jnp.arange(128)
    b1v = jnp.where(lane // 16 < 6,
                    params["conv1_b"][jnp.clip(lane // 16, 0, 5)], 0.0)[None, :]
    b2v = params["conv2_b"][lane // 8][None, :]

    # fc1 with the PyTorch NCHW flatten (feature = o*25 + h*5 + w) folded in:
    # WF1[h, o*8 + w, f] = fc1_w[f, o*25 + h*5 + w]
    row = jnp.arange(128)[:, None]
    col = jnp.arange(128)[None, :]
    o, jp = row // 8, row % 8
    valid = (jp < 5) & (col < 120)
    f_c = jnp.clip(col, 0, 119)
    wf1 = []
    for ih in range(5):
        feat = o * 25 + ih * 5 + jnp.clip(jp, 0, 4)
        feat_b, f_b = jnp.broadcast_arrays(feat, f_c)
        wf1.append(jnp.where(valid, params["fc1_w"][f_b, feat_b], 0.0))
    wf1 = jnp.stack(wf1, axis=0).astype(bf16)                        # (5, 128, 128)

    bf1 = jnp.zeros((1, 128), f32).at[0, :120].set(params["fc1_b"])
    wf2 = jnp.zeros((128, 128), f32).at[:120, :84].set(params["fc2_w"].T).astype(bf16)
    bf2 = jnp.zeros((1, 128), f32).at[0, :84].set(params["fc2_b"])
    wf3 = jnp.zeros((128, 128), f32).at[:84, :3].set(params["fc3_w"].T).astype(bf16)
    bf3 = jnp.zeros((1, 128), f32).at[0, :3].set(params["fc3_b"])

    return dict(b1m=b1m, b1v=b1v.astype(f32), b2m=b2m, b2v=b2v.astype(f32),
                wf1=wf1, bf1=bf1, wf2=wf2, bf2=bf2, wf3=wf3, bf3=bf3)


# ----------------------------- forward wrapper -------------------------------

def net_forward(x_nchw, consts, nb=16):
    """Net forward for NCHW float32 input [B, 3, 32, 32] -> [B, 3]."""
    assert nb % 8 == 0
    B = x_nchw.shape[0]
    b_pad = ((B + nb - 1) // nb) * nb
    x = jnp.pad(x_nchw, ((0, b_pad - B), (0, 0), (0, 0), (0, 0)))
    # [b_pad, 3, 32, 32] -> [32 (h), b_pad (n), 96 (c*32 + w)], bf16.
    xr = jnp.transpose(x, (2, 0, 1, 3)).reshape(32, b_pad, 96).astype(jnp.bfloat16)

    n_blocks = b_pad // nb
    resident2 = lambda b: (0, 0)
    resident3 = lambda b: (0, 0, 0)

    # Honest cost model: actual MXU flops (banded matmuls) + actual HBM bytes.
    flops = 2 * b_pad * (5 * 28 * 96 * 256 + 5 * 10 * 128 * 256
                         + 5 * 128 * 128 + 2 * 128 * 128)
    weight_bytes = 2 * (5 * 96 * 256 + 5 * 128 * 256 + 5 * 128 * 128
                        + 2 * 128 * 128) + 4 * 5 * 128
    bytes_accessed = b_pad * (32 * 96 * 2 + 128 * 4) + weight_bytes

    out = pl.pallas_call(
        _lenet_fused_kernel,
        out_shape=jax.ShapeDtypeStruct((b_pad, 128), jnp.float32),
        grid_spec=pltpu.PrefetchScalarGridSpec(
            num_scalar_prefetch=0,
            grid=(n_blocks,),
            in_specs=[
                pl.BlockSpec((32, nb, 96), lambda b: (0, b, 0)),   # image block
                pl.BlockSpec((5, 96, 256), resident3),             # conv1 bands
                pl.BlockSpec((1, 128), resident2),                 # conv1 bias
                pl.BlockSpec((5, 128, 256), resident3),            # conv2 bands
                pl.BlockSpec((1, 128), resident2),                 # conv2 bias
                pl.BlockSpec((5, 128, 128), resident3),            # fc1 (flatten folded)
                pl.BlockSpec((1, 128), resident2),                 # fc1 bias
                pl.BlockSpec((128, 128), resident2),               # fc2
                pl.BlockSpec((1, 128), resident2),                 # fc2 bias
                pl.BlockSpec((128, 128), resident2),               # fc3 (padded)
                pl.BlockSpec((1, 128), resident2),                 # fc3 bias (padded)
            ],
            out_specs=pl.BlockSpec((nb, 128), lambda b: (b, 0)),
        ),
        compiler_params=pltpu.CompilerParams(
            dimension_semantics=("parallel",),      # megacore split over batch blocks
            vmem_limit_bytes=32 * 1024 * 1024),
        cost_estimate=pl.CostEstimate(flops=flops, transcendentals=0,
                                      bytes_accessed=bytes_accessed),
    )(xr, consts["b1m"], consts["b1v"], consts["b2m"], consts["b2v"],
      consts["wf1"], consts["bf1"], consts["wf2"], consts["bf2"],
      consts["wf3"], consts["bf3"])

    return out[:B, :3]                                        # [B, 3]


# ----------------------------- f32 reference ---------------------------------

def net_reference(x, params):
    """Pure-JAX f32 reference identical to the PyTorch module."""
    y = lax.conv_general_dilated(x, params["conv1_w"], (1, 1), "VALID",
                                 dimension_numbers=("NCHW", "OIHW", "NCHW"))
    y = jnp.maximum(y + params["conv1_b"][None, :, None, None], 0.0)
    B = y.shape[0]
    y = y.reshape(B, 6, 14, 2, 14, 2).max(axis=(3, 5))
    y = lax.conv_general_dilated(y, params["conv2_w"], (1, 1), "VALID",
                                 dimension_numbers=("NCHW", "OIHW", "NCHW"))
    y = jnp.maximum(y + params["conv2_b"][None, :, None, None], 0.0)
    y = y.reshape(B, 16, 5, 2, 5, 2).max(axis=(3, 5))
    y = y.reshape(B, 400)
    y = jnp.maximum(y @ params["fc1_w"].T + params["fc1_b"], 0.0)
    y = jnp.maximum(y @ params["fc2_w"].T + params["fc2_b"], 0.0)
    return y @ params["fc3_w"].T + params["fc3_b"]


# --------------------------------- main ---------------------------------------

if __name__ == "__main__":
    key = jax.random.PRNGKey(0)
    k_params, k_x = jax.random.split(key)
    params = init_params(k_params)
    consts = prepare_consts(params)

    x = jax.random.normal(k_x, (2, 3, 32, 32), jnp.float32)    # NCHW, batch=2

    fwd = jax.jit(net_forward)
    out = jax.block_until_ready(fwd(x, consts))

    assert out.shape == (2, 3) and out.dtype == jnp.float32
    assert bool(jnp.all(jnp.isfinite(out)))

    # Semantics check vs. an f32 XLA reference. MXU inputs are bf16, so allow
    # ~1e-2 absolute quantization noise (outputs are O(0.1)).
    ref = net_reference(x, params)
    max_err = float(jnp.max(jnp.abs(out - ref)))
    assert max_err < 0.08, f"kernel deviates from reference: max |err| = {max_err}"

    print("KERNEL_OK")
</pallas_src>

<mosaic_0001>
module attributes {stable_mosaic.version = 11 : i64} {
  func.func @_lenet_fused_kernel(%arg0: i32, %arg1: memref<32x16x96xbf16, #tpu.memory_space<vmem>>, %arg2: memref<5x96x256xbf16, #tpu.memory_space<vmem>>, %arg3: memref<1x128xf32, #tpu.memory_space<vmem>>, %arg4: memref<5x128x256xbf16, #tpu.memory_space<vmem>>, %arg5: memref<1x128xf32, #tpu.memory_space<vmem>>, %arg6: memref<5x128x128xbf16, #tpu.memory_space<vmem>>, %arg7: memref<1x128xf32, #tpu.memory_space<vmem>>, %arg8: memref<128x128xbf16, #tpu.memory_space<vmem>>, %arg9: memref<1x128xf32, #tpu.memory_space<vmem>>, %arg10: memref<128x128xbf16, #tpu.memory_space<vmem>>, %arg11: memref<1x128xf32, #tpu.memory_space<vmem>>, %arg12: memref<16x128xf32, #tpu.memory_space<vmem>>) attributes {dimension_semantics = [#tpu.dimension_semantics<parallel>], iteration_bounds = array<i64: 1>, scalar_prefetch = 0 : i64, scratch_operands = 0 : i64, tpu.core_type = #tpu.core_type<tc>, window_params = [{transform_indices = @transform_0, window_bounds = array<i64: 32, 16, 96>}, {pipeline_mode = #tpu.pipeline_mode<synchronous>, transform_indices = @transform_1, window_bounds = array<i64: 5, 96, 256>}, {pipeline_mode = #tpu.pipeline_mode<synchronous>, transform_indices = @transform_2, window_bounds = array<i64: 1, 128>}, {pipeline_mode = #tpu.pipeline_mode<synchronous>, transform_indices = @transform_3, window_bounds = array<i64: 5, 128, 256>}, {pipeline_mode = #tpu.pipeline_mode<synchronous>, transform_indices = @transform_4, window_bounds = array<i64: 1, 128>}, {pipeline_mode = #tpu.pipeline_mode<synchronous>, transform_indices = @transform_5, window_bounds = array<i64: 5, 128, 128>}, {pipeline_mode = #tpu.pipeline_mode<synchronous>, transform_indices = @transform_6, window_bounds = array<i64: 1, 128>}, {pipeline_mode = #tpu.pipeline_mode<synchronous>, transform_indices = @transform_7, window_bounds = array<i64: 128, 128>}, {pipeline_mode = #tpu.pipeline_mode<synchronous>, transform_indices = @transform_8, window_bounds = array<i64: 1, 128>}, {pipeline_mode = #tpu.pipeline_mode<synchronous>, transform_indices = @transform_9, window_bounds = array<i64: 128, 128>}, {pipeline_mode = #tpu.pipeline_mode<synchronous>, transform_indices = @transform_10, window_bounds = array<i64: 1, 128>}, {transform_indices = @transform_11, window_bounds = array<i64: 16, 128>}]} {
    %c0 = arith.constant 0 : index
    %c0_0 = arith.constant 0 : index
    %c0_1 = arith.constant 0 : index
    %0 = vector.load %arg1[%c0, %c0_0, %c0_1] : memref<32x16x96xbf16, #tpu.memory_space<vmem>>, vector<32x16x96xbf16>
    %1 = vector.shape_cast %0 : vector<32x16x96xbf16> to vector<512x96xbf16>
    %2 = vector.extract_strided_slice %1 {offsets = [0, 0], sizes = [448, 96], strides = [1, 1]} : vector<512x96xbf16> to vector<448x96xbf16>
    %c0_2 = arith.constant 0 : index
    %c0_3 = arith.constant 0 : index
    %c0_4 = arith.constant 0 : index
    %3 = vector.load %arg2[%c0_2, %c0_3, %c0_4] : memref<5x96x256xbf16, #tpu.memory_space<vmem>>, vector<1x96x256xbf16>
    %4 = vector.shape_cast %3 : vector<1x96x256xbf16> to vector<96x256xbf16>
    %cst = arith.constant dense<0.000000e+00> : vector<448x256xf32>
    %5 = tpu.matmul %2, %4, %cst {dimension_numbers = #tpu.dot_dimension_numbers<[1], [0], [0], [1], [0, 0, 1, 1], [], []>} : vector<448x96xbf16>, vector<96x256xbf16>, vector<448x256xf32> -> vector<448x256xf32>
    %6 = vector.extract_strided_slice %1 {offsets = [16, 0], sizes = [448, 96], strides = [1, 1]} : vector<512x96xbf16> to vector<448x96xbf16>
    %c1 = arith.constant 1 : index
    %c0_5 = arith.constant 0 : index
    %c0_6 = arith.constant 0 : index
    %7 = vector.load %arg2[%c1, %c0_5, %c0_6] : memref<5x96x256xbf16, #tpu.memory_space<vmem>>, vector<1x96x256xbf16>
    %8 = vector.shape_cast %7 : vector<1x96x256xbf16> to vector<96x256xbf16>
    %cst_7 = arith.constant dense<0.000000e+00> : vector<448x256xf32>
    %9 = tpu.matmul %6, %8, %cst_7 {dimension_numbers = #tpu.dot_dimension_numbers<[1], [0], [0], [1], [0, 0, 1, 1], [], []>} : vector<448x96xbf16>, vector<96x256xbf16>, vector<448x256xf32> -> vector<448x256xf32>
    %10 = arith.addf %5, %9 : vector<448x256xf32>
    %11 = vector.extract_strided_slice %1 {offsets = [32, 0], sizes = [448, 96], strides = [1, 1]} : vector<512x96xbf16> to vector<448x96xbf16>
    %c2 = arith.constant 2 : index
    %c0_8 = arith.constant 0 : index
    %c0_9 = arith.constant 0 : index
    %12 = vector.load %arg2[%c2, %c0_8, %c0_9] : memref<5x96x256xbf16, #tpu.memory_space<vmem>>, vector<1x96x256xbf16>
    %13 = vector.shape_cast %12 : vector<1x96x256xbf16> to vector<96x256xbf16>
    %cst_10 = arith.constant dense<0.000000e+00> : vector<448x256xf32>
    %14 = tpu.matmul %11, %13, %cst_10 {dimension_numbers = #tpu.dot_dimension_numbers<[1], [0], [0], [1], [0, 0, 1, 1], [], []>} : vector<448x96xbf16>, vector<96x256xbf16>, vector<448x256xf32> -> vector<448x256xf32>
    %15 = arith.addf %10, %14 : vector<448x256xf32>
    %16 = vector.extract_strided_slice %1 {offsets = [48, 0], sizes = [448, 96], strides = [1, 1]} : vector<512x96xbf16> to vector<448x96xbf16>
    %c3 = arith.constant 3 : index
    %c0_11 = arith.constant 0 : index
    %c0_12 = arith.constant 0 : index
    %17 = vector.load %arg2[%c3, %c0_11, %c0_12] : memref<5x96x256xbf16, #tpu.memory_space<vmem>>, vector<1x96x256xbf16>
    %18 = vector.shape_cast %17 : vector<1x96x256xbf16> to vector<96x256xbf16>
    %cst_13 = arith.constant dense<0.000000e+00> : vector<448x256xf32>
    %19 = tpu.matmul %16, %18, %cst_13 {dimension_numbers = #tpu.dot_dimension_numbers<[1], [0], [0], [1], [0, 0, 1, 1], [], []>} : vector<448x96xbf16>, vector<96x256xbf16>, vector<448x256xf32> -> vector<448x256xf32>
    %20 = arith.addf %15, %19 : vector<448x256xf32>
    %21 = vector.extract_strided_slice %1 {offsets = [64, 0], sizes = [448, 96], strides = [1, 1]} : vector<512x96xbf16> to vector<448x96xbf16>
    %c4 = arith.constant 4 : index
    %c0_14 = arith.constant 0 : index
    %c0_15 = arith.constant 0 : index
    %22 = vector.load %arg2[%c4, %c0_14, %c0_15] : memref<5x96x256xbf16, #tpu.memory_space<vmem>>, vector<1x96x256xbf16>
    %23 = vector.shape_cast %22 : vector<1x96x256xbf16> to vector<96x256xbf16>
    %cst_16 = arith.constant dense<0.000000e+00> : vector<448x256xf32>
    %24 = tpu.matmul %21, %23, %cst_16 {dimension_numbers = #tpu.dot_dimension_numbers<[1], [0], [0], [1], [0, 0, 1, 1], [], []>} : vector<448x96xbf16>, vector<96x256xbf16>, vector<448x256xf32> -> vector<448x256xf32>
    %25 = arith.addf %20, %24 : vector<448x256xf32>
    %26 = vector.shape_cast %25 : vector<448x256xf32> to vector<14x32x256xf32>
    %27 = vector.extract_strided_slice %26 {offsets = [0, 0, 0], sizes = [14, 16, 256], strides = [1, 1, 1]} : vector<14x32x256xf32> to vector<14x16x256xf32>
    %28 = vector.extract_strided_slice %26 {offsets = [0, 16, 0], sizes = [14, 16, 256], strides = [1, 1, 1]} : vector<14x32x256xf32> to vector<14x16x256xf32>
    %29 = arith.maximumf %27, %28 : vector<14x16x256xf32>
    %30 = vector.extract_strided_slice %29 {offsets = [0, 0, 0], sizes = [14, 16, 128], strides = [1, 1, 1]} : vector<14x16x256xf32> to vector<14x16x128xf32>
    %31 = vector.extract_strided_slice %29 {offsets = [0, 0, 128], sizes = [14, 16, 128], strides = [1, 1, 1]} : vector<14x16x256xf32> to vector<14x16x128xf32>
    %32 = arith.maximumf %30, %31 : vector<14x16x128xf32>
    %c0_17 = arith.constant 0 : index
    %c0_18 = arith.constant 0 : index
    %33 = vector.load %arg3[%c0_17, %c0_18] : memref<1x128xf32, #tpu.memory_space<vmem>>, vector<1x128xf32>
    %34 = vector.shape_cast %33 : vector<1x128xf32> to vector<1x1x128xf32>
    %35 = vector.broadcast %34 : vector<1x1x128xf32> to vector<14x16x128xf32>
    %36 = arith.addf %32, %35 : vector<14x16x128xf32>
    %cst_19 = arith.constant 0.000000e+00 : f32
    %37 = vector.broadcast %cst_19 : f32 to vector<14x16x128xf32>
    %38 = arith.maximumf %36, %37 : vector<14x16x128xf32>
    %39 = arith.truncf %38 : vector<14x16x128xf32> to vector<14x16x128xbf16>
    %40 = vector.shape_cast %39 : vector<14x16x128xbf16> to vector<224x128xbf16>
    %41 = vector.extract_strided_slice %40 {offsets = [0, 0], sizes = [160, 128], strides = [1, 1]} : vector<224x128xbf16> to vector<160x128xbf16>
    %c0_20 = arith.constant 0 : index
    %c0_21 = arith.constant 0 : index
    %c0_22 = arith.constant 0 : index
    %42 = vector.load %arg4[%c0_20, %c0_21, %c0_22] : memref<5x128x256xbf16, #tpu.memory_space<vmem>>, vector<1x128x256xbf16>
    %43 = vector.shape_cast %42 : vector<1x128x256xbf16> to vector<128x256xbf16>
    %cst_23 = arith.constant dense<0.000000e+00> : vector<160x256xf32>
    %44 = tpu.matmul %41, %43, %cst_23 {dimension_numbers = #tpu.dot_dimension_numbers<[1], [0], [0], [1], [0, 0, 1, 1], [], []>} : vector<160x128xbf16>, vector<128x256xbf16>, vector<160x256xf32> -> vector<160x256xf32>
    %45 = vector.extract_strided_slice %40 {offsets = [16, 0], sizes = [160, 128], strides = [1, 1]} : vector<224x128xbf16> to vector<160x128xbf16>
    %c1_24 = arith.constant 1 : index
    %c0_25 = arith.constant 0 : index
    %c0_26 = arith.constant 0 : index
    %46 = vector.load %arg4[%c1_24, %c0_25, %c0_26] : memref<5x128x256xbf16, #tpu.memory_space<vmem>>, vector<1x128x256xbf16>
    %47 = vector.shape_cast %46 : vector<1x128x256xbf16> to vector<128x256xbf16>
    %cst_27 = arith.constant dense<0.000000e+00> : vector<160x256xf32>
    %48 = tpu.matmul %45, %47, %cst_27 {dimension_numbers = #tpu.dot_dimension_numbers<[1], [0], [0], [1], [0, 0, 1, 1], [], []>} : vector<160x128xbf16>, vector<128x256xbf16>, vector<160x256xf32> -> vector<160x256xf32>
    %49 = arith.addf %44, %48 : vector<160x256xf32>
    %50 = vector.extract_strided_slice %40 {offsets = [32, 0], sizes = [160, 128], strides = [1, 1]} : vector<224x128xbf16> to vector<160x128xbf16>
    %c2_28 = arith.constant 2 : index
    %c0_29 = arith.constant 0 : index
    %c0_30 = arith.constant 0 : index
    %51 = vector.load %arg4[%c2_28, %c0_29, %c0_30] : memref<5x128x256xbf16, #tpu.memory_space<vmem>>, vector<1x128x256xbf16>
    %52 = vector.shape_cast %51 : vector<1x128x256xbf16> to vector<128x256xbf16>
    %cst_31 = arith.constant dense<0.000000e+00> : vector<160x256xf32>
    %53 = tpu.matmul %50, %52, %cst_31 {dimension_numbers = #tpu.dot_dimension_numbers<[1], [0], [0], [1], [0, 0, 1, 1], [], []>} : vector<160x128xbf16>, vector<128x256xbf16>, vector<160x256xf32> -> vector<160x256xf32>
    %54 = arith.addf %49, %53 : vector<160x256xf32>
    %55 = vector.extract_strided_slice %40 {offsets = [48, 0], sizes = [160, 128], strides = [1, 1]} : vector<224x128xbf16> to vector<160x128xbf16>
    %c3_32 = arith.constant 3 : index
    %c0_33 = arith.constant 0 : index
    %c0_34 = arith.constant 0 : index
    %56 = vector.load %arg4[%c3_32, %c0_33, %c0_34] : memref<5x128x256xbf16, #tpu.memory_space<vmem>>, vector<1x128x256xbf16>
    %57 = vector.shape_cast %56 : vector<1x128x256xbf16> to vector<128x256xbf16>
    %cst_35 = arith.constant dense<0.000000e+00> : vector<160x256xf32>
    %58 = tpu.matmul %55, %57, %cst_35 {dimension_numbers = #tpu.dot_dimension_numbers<[1], [0], [0], [1], [0, 0, 1, 1], [], []>} : vector<160x128xbf16>, vector<128x256xbf16>, vector<160x256xf32> -> vector<160x256xf32>
    %59 = arith.addf %54, %58 : vector<160x256xf32>
    %60 = vector.extract_strided_slice %40 {offsets = [64, 0], sizes = [160, 128], strides = [1, 1]} : vector<224x128xbf16> to vector<160x128xbf16>
    %c4_36 = arith.constant 4 : index
    %c0_37 = arith.constant 0 : index
    %c0_38 = arith.constant 0 : index
    %61 = vector.load %arg4[%c4_36, %c0_37, %c0_38] : memref<5x128x256xbf16, #tpu.memory_space<vmem>>, vector<1x128x256xbf16>
    %62 = vector.shape_cast %61 : vector<1x128x256xbf16> to vector<128x256xbf16>
    %cst_39 = arith.constant dense<0.000000e+00> : vector<160x256xf32>
    %63 = tpu.matmul %60, %62, %cst_39 {dimension_numbers = #tpu.dot_dimension_numbers<[1], [0], [0], [1], [0, 0, 1, 1], [], []>} : vector<160x128xbf16>, vector<128x256xbf16>, vector<160x256xf32> -> vector<160x256xf32>
    %64 = arith.addf %59, %63 : vector<160x256xf32>
    %65 = vector.shape_cast %64 : vector<160x256xf32> to vector<5x32x256xf32>
    %66 = vector.extract_strided_slice %65 {offsets = [0, 0, 0], sizes = [5, 16, 256], strides = [1, 1, 1]} : vector<5x32x256xf32> to vector<5x16x256xf32>
    %67 = vector.extract_strided_slice %65 {offsets = [0, 16, 0], sizes = [5, 16, 256], strides = [1, 1, 1]} : vector<5x32x256xf32> to vector<5x16x256xf32>
    %68 = arith.maximumf %66, %67 : vector<5x16x256xf32>
    %69 = vector.extract_strided_slice %68 {offsets = [0, 0, 0], sizes = [5, 16, 128], strides = [1, 1, 1]} : vector<5x16x256xf32> to vector<5x16x128xf32>
    %70 = vector.extract_strided_slice %68 {offsets = [0, 0, 128], sizes = [5, 16, 128], strides = [1, 1, 1]} : vector<5x16x256xf32> to vector<5x16x128xf32>
    %71 = arith.maximumf %69, %70 : vector<5x16x128xf32>
    %c0_40 = arith.constant 0 : index
    %c0_41 = arith.constant 0 : index
    %72 = vector.load %arg5[%c0_40, %c0_41] : memref<1x128xf32, #tpu.memory_space<vmem>>, vector<1x128xf32>
    %73 = vector.shape_cast %72 : vector<1x128xf32> to vector<1x1x128xf32>
    %74 = vector.broadcast %73 : vector<1x1x128xf32> to vector<5x16x128xf32>
    %75 = arith.addf %71, %74 : vector<5x16x128xf32>
    %cst_42 = arith.constant 0.000000e+00 : f32
    %76 = vector.broadcast %cst_42 : f32 to vector<5x16x128xf32>
    %77 = arith.maximumf %75, %76 : vector<5x16x128xf32>
    %78 = arith.truncf %77 : vector<5x16x128xf32> to vector<5x16x128xbf16>
    %79 = vector.extract_strided_slice %78 {offsets = [0, 0, 0], sizes = [1, 16, 128], strides = [1, 1, 1]} : vector<5x16x128xbf16> to vector<1x16x128xbf16>
    %80 = vector.shape_cast %79 : vector<1x16x128xbf16> to vector<16x128xbf16>
    %c0_43 = arith.constant 0 : index
    %c0_44 = arith.constant 0 : index
    %c0_45 = arith.constant 0 : index
    %81 = vector.load %arg6[%c0_43, %c0_44, %c0_45] : memref<5x128x128xbf16, #tpu.memory_space<vmem>>, vector<1x128x128xbf16>
    %82 = vector.shape_cast %81 : vector<1x128x128xbf16> to vector<128x128xbf16>
    %cst_46 = arith.constant dense<0.000000e+00> : vector<16x128xf32>
    %83 = tpu.matmul %80, %82, %cst_46 {dimension_numbers = #tpu.dot_dimension_numbers<[1], [0], [0], [1], [0, 0, 1, 1], [], []>} : vector<16x128xbf16>, vector<128x128xbf16>, vector<16x128xf32> -> vector<16x128xf32>
    %84 = vector.extract_strided_slice %78 {offsets = [1, 0, 0], sizes = [1, 16, 128], strides = [1, 1, 1]} : vector<5x16x128xbf16> to vector<1x16x128xbf16>
    %85 = vector.shape_cast %84 : vector<1x16x128xbf16> to vector<16x128xbf16>
    %c1_47 = arith.constant 1 : index
    %c0_48 = arith.constant 0 : index
    %c0_49 = arith.constant 0 : index
    %86 = vector.load %arg6[%c1_47, %c0_48, %c0_49] : memref<5x128x128xbf16, #tpu.memory_space<vmem>>, vector<1x128x128xbf16>
    %87 = vector.shape_cast %86 : vector<1x128x128xbf16> to vector<128x128xbf16>
    %cst_50 = arith.constant dense<0.000000e+00> : vector<16x128xf32>
    %88 = tpu.matmul %85, %87, %cst_50 {dimension_numbers = #tpu.dot_dimension_numbers<[1], [0], [0], [1], [0, 0, 1, 1], [], []>} : vector<16x128xbf16>, vector<128x128xbf16>, vector<16x128xf32> -> vector<16x128xf32>
    %89 = arith.addf %83, %88 : vector<16x128xf32>
    %90 = vector.extract_strided_slice %78 {offsets = [2, 0, 0], sizes = [1, 16, 128], strides = [1, 1, 1]} : vector<5x16x128xbf16> to vector<1x16x128xbf16>
    %91 = vector.shape_cast %90 : vector<1x16x128xbf16> to vector<16x128xbf16>
    %c2_51 = arith.constant 2 : index
    %c0_52 = arith.constant 0 : index
    %c0_53 = arith.constant 0 : index
    %92 = vector.load %arg6[%c2_51, %c0_52, %c0_53] : memref<5x128x128xbf16, #tpu.memory_space<vmem>>, vector<1x128x128xbf16>
    %93 = vector.shape_cast %92 : vector<1x128x128xbf16> to vector<128x128xbf16>
    %cst_54 = arith.constant dense<0.000000e+00> : vector<16x128xf32>
    %94 = tpu.matmul %91, %93, %cst_54 {dimension_numbers = #tpu.dot_dimension_numbers<[1], [0], [0], [1], [0, 0, 1, 1], [], []>} : vector<16x128xbf16>, vector<128x128xbf16>, vector<16x128xf32> -> vector<16x128xf32>
    %95 = arith.addf %89, %94 : vector<16x128xf32>
    %96 = vector.extract_strided_slice %78 {offsets = [3, 0, 0], sizes = [1, 16, 128], strides = [1, 1, 1]} : vector<5x16x128xbf16> to vector<1x16x128xbf16>
    %97 = vector.shape_cast %96 : vector<1x16x128xbf16> to vector<16x128xbf16>
    %c3_55 = arith.constant 3 : index
    %c0_56 = arith.constant 0 : index
    %c0_57 = arith.constant 0 : index
    %98 = vector.load %arg6[%c3_55, %c0_56, %c0_57] : memref<5x128x128xbf16, #tpu.memory_space<vmem>>, vector<1x128x128xbf16>
    %99 = vector.shape_cast %98 : vector<1x128x128xbf16> to vector<128x128xbf16>
    %cst_58 = arith.constant dense<0.000000e+00> : vector<16x128xf32>
    %100 = tpu.matmul %97, %99, %cst_58 {dimension_numbers = #tpu.dot_dimension_numbers<[1], [0], [0], [1], [0, 0, 1, 1], [], []>} : vector<16x128xbf16>, vector<128x128xbf16>, vector<16x128xf32> -> vector<16x128xf32>
    %101 = arith.addf %95, %100 : vector<16x128xf32>
    %102 = vector.extract_strided_slice %78 {offsets = [4, 0, 0], sizes = [1, 16, 128], strides = [1, 1, 1]} : vector<5x16x128xbf16> to vector<1x16x128xbf16>
    %103 = vector.shape_cast %102 : vector<1x16x128xbf16> to vector<16x128xbf16>
    %c4_59 = arith.constant 4 : index
    %c0_60 = arith.constant 0 : index
    %c0_61 = arith.constant 0 : index
    %104 = vector.load %arg6[%c4_59, %c0_60, %c0_61] : memref<5x128x128xbf16, #tpu.memory_space<vmem>>, vector<1x128x128xbf16>
    %105 = vector.shape_cast %104 : vector<1x128x128xbf16> to vector<128x128xbf16>
    %cst_62 = arith.constant dense<0.000000e+00> : vector<16x128xf32>
    %106 = tpu.matmul %103, %105, %cst_62 {dimension_numbers = #tpu.dot_dimension_numbers<[1], [0], [0], [1], [0, 0, 1, 1], [], []>} : vector<16x128xbf16>, vector<128x128xbf16>, vector<16x128xf32> -> vector<16x128xf32>
    %107 = arith.addf %101, %106 : vector<16x128xf32>
    %c0_63 = arith.constant 0 : index
    %c0_64 = arith.constant 0 : index
    %108 = vector.load %arg7[%c0_63, %c0_64] : memref<1x128xf32, #tpu.memory_space<vmem>>, vector<1x128xf32>
    %109 = vector.broadcast %108 : vector<1x128xf32> to vector<16x128xf32>
    %110 = arith.addf %107, %109 : vector<16x128xf32>
    %cst_65 = arith.constant 0.000000e+00 : f32
    %111 = vector.broadcast %cst_65 : f32 to vector<16x128xf32>
    %112 = arith.maximumf %110, %111 : vector<16x128xf32>
    %113 = arith.truncf %112 : vector<16x128xf32> to vector<16x128xbf16>
    %c0_66 = arith.constant 0 : index
    %c0_67 = arith.constant 0 : index
    %114 = vector.load %arg8[%c0_66, %c0_67] : memref<128x128xbf16, #tpu.memory_space<vmem>>, vector<128x128xbf16>
    %cst_68 = arith.constant dense<0.000000e+00> : vector<16x128xf32>
    %115 = tpu.matmul %113, %114, %cst_68 {dimension_numbers = #tpu.dot_dimension_numbers<[1], [0], [0], [1], [0, 0, 1, 1], [], []>} : vector<16x128xbf16>, vector<128x128xbf16>, vector<16x128xf32> -> vector<16x128xf32>
    %c0_69 = arith.constant 0 : index
    %c0_70 = arith.constant 0 : index
    %116 = vector.load %arg9[%c0_69, %c0_70] : memref<1x128xf32, #tpu.memory_space<vmem>>, vector<1x128xf32>
    %117 = vector.broadcast %116 : vector<1x128xf32> to vector<16x128xf32>
    %118 = arith.addf %115, %117 : vector<16x128xf32>
    %cst_71 = arith.constant 0.000000e+00 : f32
    %119 = vector.broadcast %cst_71 : f32 to vector<16x128xf32>
    %120 = arith.maximumf %118, %119 : vector<16x128xf32>
    %121 = arith.truncf %120 : vector<16x128xf32> to vector<16x128xbf16>
    %c0_72 = arith.constant 0 : index
    %c0_73 = arith.constant 0 : index
    %122 = vector.load %arg10[%c0_72, %c0_73] : memref<128x128xbf16, #tpu.memory_space<vmem>>, vector<128x128xbf16>
    %cst_74 = arith.constant dense<0.000000e+00> : vector<16x128xf32>
    %123 = tpu.matmul %121, %122, %cst_74 {dimension_numbers = #tpu.dot_dimension_numbers<[1], [0], [0], [1], [0, 0, 1, 1], [], []>} : vector<16x128xbf16>, vector<128x128xbf16>, vector<16x128xf32> -> vector<16x128xf32>
    %c0_75 = arith.constant 0 : index
    %c0_76 = arith.constant 0 : index
    %124 = vector.load %arg11[%c0_75, %c0_76] : memref<1x128xf32, #tpu.memory_space<vmem>>, vector<1x128xf32>
    %125 = vector.broadcast %124 : vector<1x128xf32> to vector<16x128xf32>
    %126 = arith.addf %123, %125 : vector<16x128xf32>
    %c0_77 = arith.constant 0 : index
    %c0_78 = arith.constant 0 : index
    %127 = vector.load %arg12[%c0_77, %c0_78] : memref<16x128xf32, #tpu.memory_space<vmem>>, vector<16x128xf32>
    tpu.vector_store %arg12[%c0_77, %c0_78], %126 {strides = array<i32>} : memref<16x128xf32, #tpu.memory_space<vmem>>, vector<16x128xf32>,
    return
  }
  func.func @transform_0(%arg0: i32) -> (i32, i32, i32) {
    %c0_i32 = arith.constant 0 : i32
    %c0_i32_0 = arith.constant 0 : i32
    %c0_i32_1 = arith.constant 0 : i32
    return %c0_i32, %arg0, %c0_i32_0 : i32, i32, i32
  }
  func.func @transform_1(%arg0: i32) -> (i32, i32, i32) {
    %c0_i32 = arith.constant 0 : i32
    %c0_i32_0 = arith.constant 0 : i32
    %c0_i32_1 = arith.constant 0 : i32
    %c0_i32_2 = arith.constant 0 : i32
    return %c0_i32, %c0_i32_0, %c0_i32_1 : i32, i32, i32
  }
  func.func @transform_2(%arg0: i32) -> (i32, i32) {
    %c0_i32 = arith.constant 0 : i32
    %c0_i32_0 = arith.constant 0 : i32
    %c0_i32_1 = arith.constant 0 : i32
    return %c0_i32, %c0_i32_0 : i32, i32
  }
  func.func @transform_3(%arg0: i32) -> (i32, i32, i32) {
    %c0_i32 = arith.constant 0 : i32
    %c0_i32_0 = arith.constant 0 : i32
    %c0_i32_1 = arith.constant 0 : i32
    %c0_i32_2 = arith.constant 0 : i32
    return %c0_i32, %c0_i32_0, %c0_i32_1 : i32, i32, i32
  }
  func.func @transform_4(%arg0: i32) -> (i32, i32) {
    %c0_i32 = arith.constant 0 : i32
    %c0_i32_0 = arith.constant 0 : i32
    %c0_i32_1 = arith.constant 0 : i32
    return %c0_i32, %c0_i32_0 : i32, i32
  }
  func.func @transform_5(%arg0: i32) -> (i32, i32, i32) {
    %c0_i32 = arith.constant 0 : i32
    %c0_i32_0 = arith.constant 0 : i32
    %c0_i32_1 = arith.constant 0 : i32
    %c0_i32_2 = arith.constant 0 : i32
    return %c0_i32, %c0_i32_0, %c0_i32_1 : i32, i32, i32
  }
  func.func @transform_6(%arg0: i32) -> (i32, i32) {
    %c0_i32 = arith.constant 0 : i32
    %c0_i32_0 = arith.constant 0 : i32
    %c0_i32_1 = arith.constant 0 : i32
    return %c0_i32, %c0_i32_0 : i32, i32
  }
  func.func @transform_7(%arg0: i32) -> (i32, i32) {
    %c0_i32 = arith.constant 0 : i32
    %c0_i32_0 = arith.constant 0 : i32
    %c0_i32_1 = arith.constant 0 : i32
    return %c0_i32, %c0_i32_0 : i32, i32
  }
  func.func @transform_8(%arg0: i32) -> (i32, i32) {
    %c0_i32 = arith.constant 0 : i32
    %c0_i32_0 = arith.constant 0 : i32
    %c0_i32_1 = arith.constant 0 : i32
    return %c0_i32, %c0_i32_0 : i32, i32
  }
  func.func @transform_9(%arg0: i32) -> (i32, i32) {
    %c0_i32 = arith.constant 0 : i32
    %c0_i32_0 = arith.constant 0 : i32
    %c0_i32_1 = arith.constant 0 : i32
    return %c0_i32, %c0_i32_0 : i32, i32
  }
  func.func @transform_10(%arg0: i32) -> (i32, i32) {
    %c0_i32 = arith.constant 0 : i32
    %c0_i32_0 = arith.constant 0 : i32
    %c0_i32_1 = arith.constant 0 : i32
    return %c0_i32, %c0_i32_0 : i32, i32
  }
  func.func @transform_11(%arg0: i32) -> (i32, i32) {
    %c0_i32 = arith.constant 0 : i32
    %c0_i32_0 = arith.constant 0 : i32
    return %arg0, %c0_i32 : i32, i32
  }
}

</mosaic_0001>

<bundles_post_ra>
// kernel: net_forward.1
= control target key start
LH: loop header
LB: loop body
LE: loop exit
PB: predicated region body
PF: predicated region fallthrough
CT: control target
= control target key end

     0   :  { %vm328_vm0 = vcmask 785408   ;;  %s9547_s1 = inlined_call_operand.vmem [shape: bf16[5,96,256], index: 1, kind: input, shape index: {}]   ;;  %s9548_s0 = inlined_call_operand.vmem [shape: bf16[32,16,96], index: 0, kind: input, shape index: {}]   ;;  %s9549_s3 = inlined_call_operand.vmem [shape: bf16[5,128,256], index: 3, kind: input, shape index: {}]   ;;  %s9550_s2 = inlined_call_operand.vmem [shape: f32[1,128], index: 2, kind: input, shape index: {}]   ;;  %s9551_s4 = inlined_call_operand.vmem [shape: f32[1,128], index: 4, kind: input, shape index: {}]   ;;  %s9552_s5 = inlined_call_operand.vmem [shape: bf16[5,128,128], index: 5, kind: input, shape index: {}]   ;;  %s9553_s7 = inlined_call_operand.vmem [shape: bf16[128,128], index: 7, kind: input, shape index: {}]   ;;  %s9554_s6 = inlined_call_operand.vmem [shape: f32[1,128], index: 6, kind: input, shape index: {}]   ;;  %s9555_s8 = inlined_call_operand.vmem [shape: f32[1,128], index: 8, kind: input, shape index: {}]   ;;  %s9556_s9 = inlined_call_operand.vmem [shape: bf16[128,128], index: 9, kind: input, shape index: {}]   ;;  %s9557_s10 = inlined_call_operand.vmem [shape: f32[1,128], index: 10, kind: input, shape index: {}]   ;;  %s9558_s11 = inlined_call_operand.vmem [shape: f32[16,128], index: 11, kind: output, shape index: {}]  }
   0x1   :  { %v4842_v0 = vld [vmem:[%s9547_s1 + $0xb0] sm:$0xf]  ;;  %v6099_v1 = vld [vmem:[%s9547_s1 + $0xb4] sm:$0xf0]  ;;  %v4834_v5 = vld [vmem:[%s9547_s1 + $0xa0] sm:$0xf] }
   0x2   :  { %v4950_v2 = vld [vmem:[%s9547_s1 + $0x50] sm:$0xf]  ;;  %v4843_v3 = vor.u32 %v6099_v1, %v4842_v0  ;;  %v6087_v4 = vld [vmem:[%s9547_s1 + $0x54] sm:$0xf0]  ;;  %v6097_v6 = vld [vmem:[%s9547_s1 + $0xa4] sm:$0xf0] }
   0x3   :  { %v4951_v7 = vor.u32 %v6087_v4, %v4950_v2  ;;  %v4942_v8 = vld [vmem:[%s9547_s1 + $0x40] sm:$0xf]  ;;  %v6085_v9 = vld [vmem:[%s9547_s1 + $0x44] sm:$0xf0]  ;;  %v4835_v10 = vor.u32 %v6097_v6, %v4834_v5  ;;  %v4826_v12 = vld [vmem:[%s9547_s1 + $0x90] sm:$0xf] }
   0x4   :  { %415 = vmatpush.bf16.msra.mxu0 %v4843_v3  ;;  %6272 = vmatpush.bf16.msra.mxu1 %v4843_v3  ;;  %v4943_v11 = vor.u32 %v6085_v9, %v4942_v8  ;;  %v6095_v13 = vld [vmem:[%s9547_s1 + $0x94] sm:$0xf0]  ;;  %v4934_v14 = vld [vmem:[%s9547_s1 + $0x30] sm:$0xf]  ;;  %v6086_v16 = vld [vmem:[%s9547_s1 + $0x54] sm:$0xf] }
   0x5   :  { %781 = vmatpush.bf16.msra.mxu2 %v4951_v7  ;;  %v6083_v15 = vld [vmem:[%s9547_s1 + $0x34] sm:$0xf0]  ;;  %v4952_v17 = vld [vmem:[%s9547_s1 + $0x58] sm:$0xf0]  ;;  %v4827_v19 = vor.u32 %v6095_v13, %v4826_v12  ;;  %v6084_v20 = vld [vmem:[%s9547_s1 + $0x44] sm:$0xf] }
   0x6   :  { %v4955_v18 = vor.u32 %v6086_v16, %v4952_v17  ;;  %v4944_v21 = vld [vmem:[%s9547_s1 + $0x48] sm:$0xf0]  ;;  %v4935_v22 = vor.u32 %v6083_v15, %v4934_v14  ;;  %v4818_v23 = vld [vmem:[%s9547_s1 + $0x80] sm:$0xf]  ;;  %v6093_v24 = vld [vmem:[%s9547_s1 + $0x84] sm:$0xf0] }
   0x7   :  { %v4947_v25 = vor.u32 %v6084_v20, %v4944_v21  ;;  %v4926_v26 = vld [vmem:[%s9547_s1 + $0x20] sm:$0xf]  ;;  %v6081_v27 = vld [vmem:[%s9547_s1 + $0x24] sm:$0xf0]  ;;  %v4819_v28 = vor.u32 %v6093_v24, %v4818_v23  ;;  %v6082_v29 = vld [vmem:[%s9547_s1 + $0x34] sm:$0xf] }
   0x8   :  { %416 = vmatpush.bf16.msra.mxu0 %v4835_v10  ;;  %6273 = vmatpush.bf16.msra.mxu1 %v4835_v10  ;;  %v4936_v30 = vld [vmem:[%s9547_s1 + $0x38] sm:$0xf0]  ;;  %v4927_v31 = vor.u32 %v6081_v27, %v4926_v26  ;;  %v4810_v32 = vld [vmem:[%s9547_s1 + $0x70] sm:$0xf]  ;;  %v6091_v33 = vld [vmem:[%s9547_s1 + $0x74] sm:$0xf0] }
   0x9   :  { %782 = vmatpush.bf16.msra.mxu2 %v4943_v11  ;;  %930 = vmatpush.bf16.msra.mxu3 %v4955_v18  ;;  %v4918_v34 = vld [vmem:[%s9547_s1 + $0x10] sm:$0xf]  ;;  %v4939_v35 = vor.u32 %v6082_v29, %v4936_v30  ;;  %v6079_v36 = vld [vmem:[%s9547_s1 + $0x14] sm:$0xf0]  ;;  %v6080_v37 = vld [vmem:[%s9547_s1 + $0x24] sm:$0xf]  ;;  %v4811_v39 = vor.u32 %v6091_v33, %v4810_v32 }
   0xa   :  { %v4928_v38 = vld [vmem:[%s9547_s1 + $0x28] sm:$0xf0]  ;;  %v4919_v40 = vor.u32 %v6079_v36, %v4918_v34  ;;  %v4802_v41 = vld [vmem:[%s9547_s1 + $0x60] sm:$0xf]  ;;  %v6089_v42 = vld [vmem:[%s9547_s1 + $0x64] sm:$0xf0] }
   0xb   :  { %v4910_v43 = vld [vmem:[%s9547_s1] sm:$0xf]  ;;  %v4931_v44 = vor.u32 %v6080_v37, %v4928_v38  ;;  %v6077_v45 = vld [vmem:[%s9547_s1 + $0x4] sm:$0xf0]  ;;  %v6098_v46 = vld [vmem:[%s9547_s1 + $0xb4] sm:$0xf]  ;;  %v4803_v50 = vor.u32 %v6089_v42, %v4802_v41 }
   0xc   :  { %417 = vmatpush.bf16.msra.mxu0 %v4827_v19  ;;  %6274 = vmatpush.bf16.msra.mxu1 %v4827_v19  ;;  %v4844_v47 = vld [vmem:[%s9547_s1 + $0xb8] sm:$0xf0]  ;;  %v6078_v48 = vld [vmem:[%s9547_s1 + $0x14] sm:$0xf]  ;;  %v4911_v51 = vor.u32 %v6077_v45, %v4910_v43  ;;  %v6045_v53 = vld [vmem:[%s9548_s0 + $0x8] sm:$0xff] }
   0xd   :  { %783 = vmatpush.bf16.msra.mxu2 %v4935_v22  ;;  %931 = vmatpush.bf16.msra.mxu3 %v4947_v25  ;;  %v4920_v49 = vld [vmem:[%s9547_s1 + $0x18] sm:$0xf0]  ;;  %v4847_v52 = vor.u32 %v6098_v46, %v4844_v47  ;;  %v6096_v54 = vld [vmem:[%s9547_s1 + $0xa4] sm:$0xf]  ;;  %v4836_v55 = vld [vmem:[%s9547_s1 + $0xa8] sm:$0xf0] }
   0xe   :  { %v4923_v56 = vor.u32 %v6078_v48, %v4920_v49  ;;  %v6072_v57 = vld [vmem:[%s9548_s0 + $0xe0] sm:$0xff]  ;;  %v4912_v59 = vld [vmem:[%s9547_s1 + $0x8] sm:$0xf0]  ;;  %v4839_v61 = vor.u32 %v6096_v54, %v4836_v55  ;;  %v6094_v62 = vld [vmem:[%s9547_s1 + $0x94] sm:$0xf] }
   0xf   :  { %v6076_v58 = vld [vmem:[%s9547_s1 + $0x4] sm:$0xf]  ;;  %v4828_v63 = vld [vmem:[%s9547_s1 + $0x98] sm:$0xf0]  ;;  %v4820_v3 = vld [vmem:[%s9547_s1 + $0x88] sm:$0xf0] }
  0x10   :  { %418 = vmatpush.bf16.msra.mxu0 %v4819_v28  ;;  %6275 = vmatpush.bf16.msra.mxu1 %v4819_v28  ;;  %v6044_v60 = vld [vmem:[%s9548_s0] sm:$0xff]  ;;  %v4915_v0 = vor.u32 %v6076_v58, %v4912_v59  ;;  %v4831_v1 = vor.u32 %v6094_v62, %v4828_v63  ;;  %v5070_v4 = vld [vmem:[%s9547_s1 + $0x110] sm:$0xf]  ;;  %v6111_v5 = vld [vmem:[%s9547_s1 + $0x114] sm:$0xf0] }
  0x11   :  { %784 = vmatpush.bf16.msra.mxu2 %v4927_v31  ;;  %932 = vmatpush.bf16.msra.mxu3 %v4939_v35  ;;  %v6092_v2 = vld [vmem:[%s9547_s1 + $0x84] sm:$0xf]  ;;  %v5071_v7 = vor.u32 %v6111_v5, %v5070_v4  ;;  %v6090_v8 = vld [vmem:[%s9547_s1 + $0x74] sm:$0xf]  ;;  %v4812_v9 = vld [vmem:[%s9547_s1 + $0x78] sm:$0xf0] }
  0x12   :  { %v4823_v6 = vor.u32 %v6092_v2, %v4820_v3  ;;  %v4815_v10 = vor.u32 %v6090_v8, %v4812_v9  ;;  %v6088_v11 = vld [vmem:[%s9547_s1 + $0x64] sm:$0xf]  ;;  %v4804_v12 = vld [vmem:[%s9547_s1 + $0x68] sm:$0xf0]  ;;  %v6563_v13 = vld [vmem:[%s9548_s0 + $0x10] sm:$0xff] }
  0x13   :  { %v6110_v14 = vld [vmem:[%s9547_s1 + $0x114] sm:$0xf]  ;;  %v5072_v15 = vld [vmem:[%s9547_s1 + $0x118] sm:$0xf0]  ;;  %v4807_v16 = vor.u32 %v6088_v11, %v4804_v12  ;;  %v6592_v19 = vld [vmem:[%s9548_s0 + $0x20] sm:$0xff] }
  0x14   :  { %419 = vmatpush.bf16.msra.mxu0 %v4811_v39  ;;  %6276 = vmatpush.bf16.msra.mxu1 %v4811_v39  ;;  %v5075_v17 = vor.u32 %v6110_v14, %v5072_v15  ;;  %v6579_v18 = vld [vmem:[%s9548_s0 + $0x18] sm:$0xff]  ;;  %v6605_v20 = vld [vmem:[%s9548_s0 + $0x28] sm:$0xff]  ;;  %v6108_v21 = vld [vmem:[%s9547_s1 + $0x104] sm:$0xf] }
  0x15   :  { %785 = vmatpush.bf16.msra.mxu2 %v4919_v40  ;;  %933 = vmatpush.bf16.msra.mxu3 %v4931_v44  ;;  %v5064_v22 = vld [vmem:[%s9547_s1 + $0x108] sm:$0xf0]  ;;  %v5062_v24 = vld [vmem:[%s9547_s1 + $0x100] sm:$0xf]  ;;  %v6109_v25 = vld [vmem:[%s9547_s1 + $0x104] sm:$0xf0] }
  0x16   :  { %v5067_v23 = vor.u32 %v6108_v21, %v5064_v22  ;;  %v5063_v26 = vor.u32 %v6109_v25, %v5062_v24  ;;  %v6630_v27 = vld [vmem:[%s9548_s0 + $0x30] sm:$0xff]  ;;  %v6643_v28 = vld [vmem:[%s9548_s0 + $0x38] sm:$0xff]  ;;  %v6052_v29 = vld [vmem:[%s9548_s0 + $0x40] sm:$0xff] }
  0x17   :  { %v6053_v30 = vld [vmem:[%s9548_s0 + $0x48] sm:$0xff]  ;;  %v6054_v39 = vld [vmem:[%s9548_s0 + $0x50] sm:$0xff]  ;;  %v5056_v43 = vld [vmem:[%s9547_s1 + $0xf8] sm:$0xf0] }
  0x18   :  { %420 = vmatpush.bf16.msra.mxu0 %v4803_v50  ;;  %6277 = vmatpush.bf16.msra.mxu1 %v4803_v50  ;;  %v6106_v42 = vld [vmem:[%s9547_s1 + $0xf4] sm:$0xf]  ;;  %v6055_v58 = vld [vmem:[%s9548_s0 + $0x58] sm:$0xff]  ;;  %v6057_v24 = vld [vmem:[%s9548_s0 + $0x68] sm:$0xff] }
  0x19   :  { %786 = vmatpush.bf16.msra.mxu2 %v4911_v51  ;;  %934 = vmatpush.bf16.msra.mxu3 %v4923_v56  ;;  %v5059_v44 = vor.u32 %v6106_v42, %v5056_v43  ;;  %v5054_v51 = vld [vmem:[%s9547_s1 + $0xf0] sm:$0xf] }
  0x1a   :  { %v6058_v43 = vld [vmem:[%s9548_s0 + $0x70] sm:$0xff] }
  0x1b   :  { %4848 = vmatmul.msk.bf16.vlgmr.msra.gmra.mxu0 %vm328_vm0, %v6045_v53  ;;  %4875 = vmatmul.msk.bf16.vlgmr.msra.gmra.mxu1 %vm328_vm0, %v6072_v57 }
  0x1c   :  { %564 = vmatpush.bf16.msrb.mxu1 %v4847_v52  ;;  %4956 = vmatmul.msk.bf16.vlgmr.msra.gmra.mxu2 %vm328_vm0, %v6044_v60  ;;  %v6107_v52 = vld [vmem:[%s9547_s1 + $0xf4] sm:$0xf0] }
  0x1d   :  { %935 = vmatpush.bf16.msra.mxu3 %v4915_v0  ;;  %1160 = vmatpush.bf16.msrb.mxu0 %v5071_v7  ;;  %v6056_v7 = vld [vmem:[%s9548_s0 + $0x60] sm:$0xff] }
  0x20   :  { %565 = vmatpush.bf16.msrb.mxu1 %v4839_v61  ;;  %4984 = vmatmul.msk.bf16.vlgmr.msra.gmra.mxu3 %vm328_vm0, %v6044_v60 }
  0x21   :  { %1161 = vmatpush.bf16.msrb.mxu0 %v5063_v26 }
  0x24   :  { %566 = vmatpush.bf16.msrb.mxu1 %v4831_v1 }
  0x28   :  { %567 = vmatpush.bf16.msrb.mxu1 %v4823_v6 }
  0x2b   :  { %4849 = vmatmul.msk.bf16.gmra.mxu0 %vm328_vm0, %v6563_v13 }
  0x2c   :  { %568 = vmatpush.bf16.msrb.mxu1 %v4815_v10  ;;  %4957 = vmatmul.msk.bf16.gmra.mxu2 %vm328_vm0, %v6045_v53 }
  0x30   :  { %569 = vmatpush.bf16.msrb.mxu1 %v4807_v16  ;;  %4985 = vmatmul.msk.bf16.gmra.mxu3 %vm328_vm0, %v6045_v53 }
  0x33   :  { %4876 = vmatmul.msk.bf16.vlgmr.msrb.gmra.mxu1 %vm328_vm0, %v6045_v53  ;;  %v5055_v53 = vor.u32 %v6107_v52, %v5054_v51 }
  0x34   :  { %1309 = vmatpush.bf16.msra.mxu1 %v5075_v17 }
  0x35   :  { %1162 = vmatpush.bf16.msrb.mxu0 %v5055_v53 }
  0x38   :  { %1310 = vmatpush.bf16.msra.mxu1 %v5067_v23 }
  0x3b   :  { %4850 = vmatmul.msk.bf16.gmra.mxu0 %vm328_vm0, %v6579_v18 }
  0x3c   :  { %4958 = vmatmul.msk.bf16.gmra.mxu2 %vm328_vm0, %v6563_v13  ;;  %1311 = vmatpush.bf16.msra.mxu1 %v5059_v44 }
  0x40   :  { %4986 = vmatmul.msk.bf16.gmra.mxu3 %vm328_vm0, %v6563_v13 }
  0x43   :  { %4877 = vmatmul.msk.bf16.gmra.mxu1 %vm328_vm0, %v6563_v13 }
  0x4b   :  { %4851 = vmatmul.msk.bf16.gmra.mxu0 %vm328_vm0, %v6592_v19 }
  0x4c   :  { %4959 = vmatmul.msk.bf16.gmra.mxu2 %vm328_vm0, %v6579_v18 }
  0x50   :  { %4987 = vmatmul.msk.bf16.gmra.mxu3 %vm328_vm0, %v6579_v18 }
  0x53   :  { %4878 = vmatmul.msk.bf16.gmra.mxu1 %vm328_vm0, %v6579_v18 }
  0x5b   :  { %4852 = vmatmul.msk.bf16.gmra.mxu0 %vm328_vm0, %v6605_v20 }
  0x5c   :  { %4960 = vmatmul.msk.bf16.gmra.mxu2 %vm328_vm0, %v6592_v19 }
  0x60   :  { %4988 = vmatmul.msk.bf16.gmra.mxu3 %vm328_vm0, %v6592_v19 }
  0x63   :  { %4879 = vmatmul.msk.bf16.gmra.mxu1 %vm328_vm0, %v6592_v19 }
  0x6b   :  { %4853 = vmatmul.msk.bf16.gmra.mxu0 %vm328_vm0, %v6630_v27 }
  0x6c   :  { %4961 = vmatmul.msk.bf16.gmra.mxu2 %vm328_vm0, %v6605_v20 }
  0x70   :  { %4989 = vmatmul.msk.bf16.gmra.mxu3 %vm328_vm0, %v6605_v20 }
  0x73   :  { %4880 = vmatmul.msk.bf16.gmra.mxu1 %vm328_vm0, %v6605_v20 }
  0x7b   :  { %4854 = vmatmul.msk.bf16.gmra.mxu0 %vm328_vm0, %v6643_v28 }
  0x7c   :  { %4962 = vmatmul.msk.bf16.gmra.mxu2 %vm328_vm0, %v6630_v27 }
  0x80   :  { %4990 = vmatmul.msk.bf16.gmra.mxu3 %vm328_vm0, %v6630_v27 }
  0x83   :  { %4881 = vmatmul.msk.bf16.gmra.mxu1 %vm328_vm0, %v6630_v27 }
  0x8b   :  { %4855 = vmatmul.msk.bf16.gmra.mxu0 %vm328_vm0, %v6052_v29 }
  0x8c   :  { %4963 = vmatmul.msk.bf16.gmra.mxu2 %vm328_vm0, %v6643_v28 }
  0x90   :  { %4991 = vmatmul.msk.bf16.gmra.mxu3 %vm328_vm0, %v6643_v28 }
  0x93   :  { %4882 = vmatmul.msk.bf16.gmra.mxu1 %vm328_vm0, %v6643_v28 }
  0x98   :  { %v422_v31 = vpop.f32.mrf.mxu0  ;;  %v6666_v32 = vpop.f32.mrf.mxu1 }
  0x99   :  { %9566 = vst [vmem:[#allocation2_spill] sm:$0xff] %v6666_v32 }
  0x9b   :  { %4856 = vmatmul.msk.bf16.gmra.mxu0 %vm328_vm0, %v6053_v30 }
  0x9c   :  { %4964 = vmatmul.msk.bf16.gmra.mxu2 %vm328_vm0, %v6052_v29 }
  0x9f   :  { %v788_v33 = vpop.f32.mrf.mxu2 }
  0xa0   :  { %v6670_v34 = vadd.f32 %v788_v33, %v422_v31  ;;  %v424_v35 = vpop.f32.mrf.mxu0  ;;  %4992 = vmatmul.msk.bf16.gmra.mxu3 %vm328_vm0, %v6052_v29  ;;  %v6674_v37 = vpop.f32.mrf.mxu1 }
  0xa1   :  { %9567 = vst [vmem:[#allocation3_spill] sm:$0xff] %v6674_v37  ;;  %v6065_v37 = vld [vmem:[%s9548_s0 + $0xa8] sm:$0xff] }
  0xa3   :  { %4883 = vmatmul.msk.bf16.gmra.mxu1 %vm328_vm0, %v6052_v29  ;;  %v937_v36 = vpop.f32.mrf.mxu3 }
  0xa7   :  { %v790_v38 = vpop.f32.mrf.mxu2 }
  0xa8   :  { %v6679_v40 = vadd.f32 %v790_v38, %v424_v35  ;;  %v427_v41 = vpop.f32.mrf.mxu0 }
  0xab   :  { %4857 = vmatmul.msk.bf16.gmra.mxu0 %vm328_vm0, %v6054_v39  ;;  %v939_v45 = vpop.f32.mrf.mxu3 }
  0xac   :  { %4965 = vmatmul.msk.bf16.gmra.mxu2 %vm328_vm0, %v6053_v30 }
  0xaf   :  { %v793_v48 = vpop.f32.mrf.mxu2 }
  0xb0   :  { %v571_v46 = vpop.f32.mrf.mxu1  ;;  %v6691_v49 = vadd.f32 %v793_v48, %v427_v41  ;;  %v429_v50 = vpop.f32.mrf.mxu0  ;;  %4993 = vmatmul.msk.bf16.gmra.mxu3 %vm328_vm0, %v6053_v30 }
  0xb1   :  { %v6689_v47 = vadd.f32 %v937_v36, %v571_v46 }
  0xb3   :  { %4884 = vmatmul.msk.bf16.gmra.mxu1 %vm328_vm0, %v6053_v30  ;;  %v942_v54 = vpop.f32.mrf.mxu3 }
  0xb7   :  { %v795_v57 = vpop.f32.mrf.mxu2 }
  0xb8   :  { %v573_v55 = vpop.f32.mrf.mxu1  ;;  %v6706_v59 = vadd.f32 %v795_v57, %v429_v50  ;;  %v432_v60 = vpop.f32.mrf.mxu0 }
  0xb9   :  { %v6701_v56 = vadd.f32 %v939_v45, %v573_v55  ;;  %v5048_v55 = vld [vmem:[%s9547_s1 + $0xe8] sm:$0xf0] }
  0xbb   :  { %4858 = vmatmul.msk.bf16.gmra.mxu0 %vm328_vm0, %v6055_v58  ;;  %v944_v61 = vpop.f32.mrf.mxu3 }
  0xbc   :  { %4966 = vmatmul.msk.bf16.gmra.mxu2 %vm328_vm0, %v6054_v39 }
  0xbf   :  { %v798_v0 = vpop.f32.mrf.mxu2 }
  0xc0   :  { %v576_v62 = vpop.f32.mrf.mxu1  ;;  %v6712_v1 = vadd.f32 %v798_v0, %v432_v60  ;;  %v434_v2 = vpop.f32.mrf.mxu0  ;;  %4994 = vmatmul.msk.bf16.gmra.mxu3 %vm328_vm0, %v6054_v39  ;;  %v6059_v0 = vld [vmem:[%s9548_s0 + $0x78] sm:$0xff] }
  0xc1   :  { %v6710_v63 = vadd.f32 %v942_v54, %v576_v62  ;;  %v6104_v54 = vld [vmem:[%s9547_s1 + $0xe4] sm:$0xf] }
  0xc2   :  { %v5051_v57 = vor.u32 %v6104_v54, %v5048_v55  ;;  %v6061_v54 = vld [vmem:[%s9548_s0 + $0x88] sm:$0xff] }
  0xc3   :  { %4885 = vmatmul.msk.bf16.gmra.mxu1 %vm328_vm0, %v6054_v39  ;;  %v947_v3 = vpop.f32.mrf.mxu3 }
  0xc4   :  { %1312 = vmatpush.bf16.msra.mxu1 %v5051_v57 }
  0xc7   :  { %v800_v6 = vpop.f32.mrf.mxu2 }
  0xc8   :  { %v578_v4 = vpop.f32.mrf.mxu1  ;;  %v6721_v8 = vadd.f32 %v800_v6, %v434_v2  ;;  %v437_v9 = vpop.f32.mrf.mxu0  ;;  %v6105_v6 = vld [vmem:[%s9547_s1 + $0xe4] sm:$0xf0] }
  0xc9   :  { %v6716_v5 = vadd.f32 %v944_v61, %v578_v4  ;;  %v5046_v4 = vld [vmem:[%s9547_s1 + $0xe0] sm:$0xf] }
  0xcb   :  { %4859 = vmatmul.msk.bf16.gmra.mxu0 %vm328_vm0, %v6056_v7  ;;  %v949_v10 = vpop.f32.mrf.mxu3 }
  0xcc   :  { %4967 = vmatmul.msk.bf16.gmra.mxu2 %vm328_vm0, %v6055_v58 }
  0xcf   :  { %v803_v14 = vpop.f32.mrf.mxu2 }
  0xd0   :  { %v581_v11 = vpop.f32.mrf.mxu1  ;;  %v6727_v15 = vadd.f32 %v803_v14, %v437_v9  ;;  %v439_v16 = vpop.f32.mrf.mxu0  ;;  %4995 = vmatmul.msk.bf16.gmra.mxu3 %vm328_vm0, %v6055_v58 }
  0xd1   :  { %v6725_v12 = vadd.f32 %v947_v3, %v581_v11 }
  0xd3   :  { %4886 = vmatmul.msk.bf16.gmra.mxu1 %vm328_vm0, %v6055_v58  ;;  %v952_v17 = vpop.f32.mrf.mxu3 }
  0xd7   :  { %v805_v23 = vpop.f32.mrf.mxu2 }
  0xd8   :  { %v583_v21 = vpop.f32.mrf.mxu1  ;;  %v6736_v25 = vadd.f32 %v805_v23, %v439_v16  ;;  %v442_v26 = vpop.f32.mrf.mxu0 }
  0xd9   :  { %v6731_v22 = vadd.f32 %v949_v10, %v583_v21 }
  0xdb   :  { %4860 = vmatmul.msk.bf16.gmra.mxu0 %vm328_vm0, %v6057_v24  ;;  %v954_v29 = vpop.f32.mrf.mxu3 }
  0xdc   :  { %4968 = vmatmul.msk.bf16.gmra.mxu2 %vm328_vm0, %v6056_v7 }
  0xdf   :  { %v808_v33 = vpop.f32.mrf.mxu2 }
  0xe0   :  { %v586_v30 = vpop.f32.mrf.mxu1  ;;  %v6742_v35 = vadd.f32 %v808_v33, %v442_v26  ;;  %v444_v36 = vpop.f32.mrf.mxu0  ;;  %4996 = vmatmul.msk.bf16.gmra.mxu3 %vm328_vm0, %v6056_v7 }
  0xe1   :  { %v6740_v31 = vadd.f32 %v952_v17, %v586_v30 }
  0xe3   :  { %4887 = vmatmul.msk.bf16.gmra.mxu1 %vm328_vm0, %v6056_v7  ;;  %v957_v38 = vpop.f32.mrf.mxu3  ;;  %v5047_v7 = vor.u32 %v6105_v6, %v5046_v4 }
  0xe5   :  { %1163 = vmatpush.bf16.msrb.mxu0 %v5047_v7 }
  0xe7   :  { %v810_v42 = vpop.f32.mrf.mxu2 }
  0xe8   :  { %v588_v39 = vpop.f32.mrf.mxu1  ;;  %v6751_v44 = vadd.f32 %v810_v42, %v444_v36  ;;  %v447_v45 = vpop.f32.mrf.mxu0 }
  0xe9   :  { %v6746_v41 = vadd.f32 %v954_v29, %v588_v39  ;;  %v6060_v29 = vld [vmem:[%s9548_s0 + $0x80] sm:$0xff] }
  0xeb   :  { %4861 = vmatmul.msk.bf16.gmra.mxu0 %vm328_vm0, %v6058_v43  ;;  %v959_v46 = vpop.f32.mrf.mxu3 }
  0xec   :  { %4969 = vmatmul.msk.bf16.gmra.mxu2 %vm328_vm0, %v6057_v24 }
  0xef   :  { %v813_v51 = vpop.f32.mrf.mxu2 }
  0xf0   :  { %v591_v48 = vpop.f32.mrf.mxu1  ;;  %v6757_v52 = vadd.f32 %v813_v51, %v447_v45  ;;  %v449_v53 = vpop.f32.mrf.mxu0  ;;  %4997 = vmatmul.msk.bf16.gmra.mxu3 %vm328_vm0, %v6057_v24 }
  0xf1   :  { %v6755_v50 = vadd.f32 %v957_v38, %v591_v48 }
  0xf3   :  { %4888 = vmatmul.msk.bf16.gmra.mxu1 %vm328_vm0, %v6057_v24  ;;  %v962_v58 = vpop.f32.mrf.mxu3 }
  0xf7   :  { %v815_v62 = vpop.f32.mrf.mxu2 }
  0xf8   :  { %v593_v60 = vpop.f32.mrf.mxu1  ;;  %v6772_v2 = vadd.f32 %v815_v62, %v449_v53  ;;  %v452_v3 = vpop.f32.mrf.mxu0 }
  0xf9   :  { %v6767_v61 = vadd.f32 %v959_v46, %v593_v60 }
  0xfb   :  { %4862 = vmatmul.msk.bf16.gmra.mxu0 %vm328_vm0, %v6059_v0  ;;  %v964_v9 = vpop.f32.mrf.mxu3 }
  0xfc   :  { %4970 = vmatmul.msk.bf16.gmra.mxu2 %vm328_vm0, %v6058_v43 }
  0xff   :  { %v818_v14 = vpop.f32.mrf.mxu2 }
 0x100   :  { %v596_v10 = vpop.f32.mrf.mxu1  ;;  %v6784_v16 = vadd.f32 %v818_v14, %v452_v3  ;;  %v454_v17 = vpop.f32.mrf.mxu0  ;;  %4998 = vmatmul.msk.bf16.gmra.mxu3 %vm328_vm0, %v6058_v43  ;;  %v6062_v14 = vld [vmem:[%s9548_s0 + $0x90] sm:$0xff] }
 0x101   :  { %v6782_v11 = vadd.f32 %v962_v58, %v596_v10 }
 0x103   :  { %4889 = vmatmul.msk.bf16.gmra.mxu1 %vm328_vm0, %v6058_v43  ;;  %v967_v21 = vpop.f32.mrf.mxu3 }
 0x107   :  { %v820_v26 = vpop.f32.mrf.mxu2 }
 0x108   :  { %v598_v23 = vpop.f32.mrf.mxu1  ;;  %v6793_v30 = vadd.f32 %v820_v26, %v454_v17  ;;  %v457_v33 = vpop.f32.mrf.mxu0 }
 0x109   :  { %v6788_v24 = vadd.f32 %v964_v9, %v598_v23 }
 0x10b   :  { %4863 = vmatmul.msk.bf16.gmra.mxu0 %vm328_vm0, %v6060_v29  ;;  %v969_v36 = vpop.f32.mrf.mxu3 }
 0x10c   :  { %4971 = vmatmul.msk.bf16.gmra.mxu2 %vm328_vm0, %v6059_v0 }
 0x10f   :  { %v823_v42 = vpop.f32.mrf.mxu2 }
 0x110   :  { %v601_v38 = vpop.f32.mrf.mxu1  ;;  %v6799_v43 = vadd.f32 %v823_v42, %v457_v33  ;;  %v459_v45 = vpop.f32.mrf.mxu0  ;;  %4999 = vmatmul.msk.bf16.gmra.mxu3 %vm328_vm0, %v6059_v0 }
 0x111   :  { %v6797_v39 = vadd.f32 %v967_v21, %v601_v38 }
 0x113   :  { %4890 = vmatmul.msk.bf16.gmra.mxu1 %vm328_vm0, %v6059_v0  ;;  %v972_v46 = vpop.f32.mrf.mxu3 }
 0x117   :  { %v825_v53 = vpop.f32.mrf.mxu2 }
 0x118   :  { %v603_v48 = vpop.f32.mrf.mxu1  ;;  %v6808_v55 = vadd.f32 %v825_v53, %v459_v45  ;;  %v462_v57 = vpop.f32.mrf.mxu0  ;;  %v6063_v53 = vld [vmem:[%s9548_s0 + $0x98] sm:$0xff] }
 0x119   :  { %v6803_v51 = vadd.f32 %v969_v36, %v603_v48 }
 0x11b   :  { %4864 = vmatmul.msk.bf16.gmra.mxu0 %vm328_vm0, %v6061_v54  ;;  %v974_v58 = vpop.f32.mrf.mxu3 }
 0x11c   :  { %4972 = vmatmul.msk.bf16.gmra.mxu2 %vm328_vm0, %v6060_v29 }
 0x11f   :  { %v828_v0 = vpop.f32.mrf.mxu2 }
 0x120   :  { %v606_v60 = vpop.f32.mrf.mxu1  ;;  %v6814_v3 = vadd.f32 %v828_v0, %v462_v57  ;;  %v464_v4 = vpop.f32.mrf.mxu0  ;;  %5000 = vmatmul.msk.bf16.gmra.mxu3 %vm328_vm0, %v6060_v29  ;;  %v5040_v0 = vld [vmem:[%s9547_s1 + $0xd8] sm:$0xf0] }
 0x121   :  { %v6812_v62 = vadd.f32 %v972_v46, %v606_v60 }
 0x123   :  { %4891 = vmatmul.msk.bf16.gmra.mxu1 %vm328_vm0, %v6060_v29  ;;  %v977_v6 = vpop.f32.mrf.mxu3 }
 0x127   :  { %v830_v10 = vpop.f32.mrf.mxu2 }
 0x128   :  { %v608_v7 = vpop.f32.mrf.mxu1  ;;  %v6823_v17 = vadd.f32 %v830_v10, %v464_v4  ;;  %v467_v21 = vpop.f32.mrf.mxu0 }
 0x129   :  { %v6818_v9 = vadd.f32 %v974_v58, %v608_v7 }
 0x12b   :  { %4865 = vmatmul.msk.bf16.gmra.mxu0 %vm328_vm0, %v6062_v14  ;;  %v979_v23 = vpop.f32.mrf.mxu3 }
 0x12c   :  { %4973 = vmatmul.msk.bf16.gmra.mxu2 %vm328_vm0, %v6061_v54 }
 0x12f   :  { %v833_v29 = vpop.f32.mrf.mxu2 }
 0x130   :  { %v611_v26 = vpop.f32.mrf.mxu1  ;;  %v6829_v36 = vadd.f32 %v833_v29, %v467_v21  ;;  %v469_v38 = vpop.f32.mrf.mxu0  ;;  %5001 = vmatmul.msk.bf16.gmra.mxu3 %vm328_vm0, %v6061_v54  ;;  %v6103_v29 = vld [vmem:[%s9547_s1 + $0xd4] sm:$0xf0] }
 0x131   :  { %v6827_v33 = vadd.f32 %v977_v6, %v611_v26  ;;  %v5038_v26 = vld [vmem:[%s9547_s1 + $0xd0] sm:$0xf] }
 0x133   :  { %4892 = vmatmul.msk.bf16.gmra.mxu1 %vm328_vm0, %v6061_v54  ;;  %v982_v42 = vpop.f32.mrf.mxu3  ;;  %v6102_v54 = vld [vmem:[%s9547_s1 + $0xd4] sm:$0xf] }
 0x134   :  { %v5043_v6 = vor.u32 %v6102_v54, %v5040_v0  ;;  %v6064_v54 = vld [vmem:[%s9548_s0 + $0xa0] sm:$0xff] }
 0x136   :  { %1313 = vmatpush.bf16.msra.mxu1 %v5043_v6 }
 0x137   :  { %v835_v48 = vpop.f32.mrf.mxu2 }
 0x138   :  { %v613_v45 = vpop.f32.mrf.mxu1  ;;  %v6838_v57 = vadd.f32 %v835_v48, %v469_v38  ;;  %v472_v58 = vpop.f32.mrf.mxu0  ;;  %v5039_v38 = vor.u32 %v6103_v29, %v5038_v26 }
 0x139   :  { %v6833_v46 = vadd.f32 %v979_v23, %v613_v45 }
 0x13a   :  { %1164 = vmatpush.bf16.msrb.mxu0 %v5039_v38 }
 0x13b   :  { %4866 = vmatmul.msk.bf16.gmra.mxu0 %vm328_vm0, %v6063_v53  ;;  %v984_v60 = vpop.f32.mrf.mxu3 }
 0x13c   :  { %4974 = vmatmul.msk.bf16.gmra.mxu2 %vm328_vm0, %v6062_v14 }
 0x13f   :  { %v838_v10 = vpop.f32.mrf.mxu2 }
 0x140   :  { %v616_v4 = vpop.f32.mrf.mxu1  ;;  %v6850_v21 = vadd.f32 %v838_v10, %v472_v58  ;;  %v474_v23 = vpop.f32.mrf.mxu0  ;;  %5002 = vmatmul.msk.bf16.gmra.mxu3 %vm328_vm0, %v6062_v14 }
 0x141   :  { %v6848_v7 = vadd.f32 %v982_v42, %v616_v4 }
 0x143   :  { %4893 = vmatmul.msk.bf16.gmra.mxu1 %vm328_vm0, %v6062_v14  ;;  %v987_v42 = vpop.f32.mrf.mxu3 }
 0x147   :  { %v840_v58 = vpop.f32.mrf.mxu2 }
 0x148   :  { %v618_v45 = vpop.f32.mrf.mxu1  ;;  %v6865_v0 = vadd.f32 %v840_v58, %v474_v23  ;;  %v477_v4 = vpop.f32.mrf.mxu0 }
 0x149   :  { %v6860_v48 = vadd.f32 %v984_v60, %v618_v45 }
 0x14b   :  { %9568 = vst [vmem:[#allocation4_spill] sm:$0xff] %v6860_v48  ;;  %4867 = vmatmul.msk.bf16.gmra.mxu0 %vm328_vm0, %v6064_v54  ;;  %v989_v6 = vpop.f32.mrf.mxu3  ;;  %v6066_v48 = vld [vmem:[%s9548_s0 + $0xb0] sm:$0xff] }
 0x14c   :  { %4975 = vmatmul.msk.bf16.gmra.mxu2 %vm328_vm0, %v6063_v53 }
 0x14f   :  { %v843_v26 = vpop.f32.mrf.mxu2 }
 0x150   :  { %v621_v14 = vpop.f32.mrf.mxu1  ;;  %v6871_v29 = vadd.f32 %v843_v26, %v477_v4  ;;  %v479_v60 = vpop.f32.mrf.mxu0  ;;  %5003 = vmatmul.msk.bf16.gmra.mxu3 %vm328_vm0, %v6063_v53 }
 0x151   :  { %v6869_v10 = vadd.f32 %v987_v42, %v621_v14 }
 0x153   :  { %9569 = vst [vmem:[#allocation5_spill] sm:$0xff] %v6869_v10  ;;  %4894 = vmatmul.msk.bf16.gmra.mxu1 %vm328_vm0, %v6063_v53  ;;  %v992_v38 = vpop.f32.mrf.mxu3 }
 0x157   :  { %v845_v58 = vpop.f32.mrf.mxu2 }
 0x158   :  { %v623_v23 = vpop.f32.mrf.mxu1  ;;  %v6880_v32 = vadd.f32 %v845_v58, %v479_v60  ;;  %v482_v42 = vpop.f32.mrf.mxu0 }
 0x159   :  { %v6875_v45 = vadd.f32 %v989_v6, %v623_v23 }
 0x15a   :  { %9571 = vst [vmem:[#allocation7_spill] sm:$0xff] %v6880_v32 }
 0x15b   :  { %9570 = vst [vmem:[#allocation6_spill] sm:$0xff] %v6875_v45  ;;  %4868 = vmatmul.msk.bf16.gmra.mxu0 %vm328_vm0, %v6065_v37  ;;  %v994_v4 = vpop.f32.mrf.mxu3 }
 0x15c   :  { %4976 = vmatmul.msk.bf16.gmra.mxu2 %vm328_vm0, %v6064_v54 }
 0x15f   :  { %v848_v53 = vpop.f32.mrf.mxu2 }
 0x160   :  { %v626_v14 = vpop.f32.mrf.mxu1  ;;  %v6886_v10 = vadd.f32 %v848_v53, %v482_v42  ;;  %v484_v6 = vpop.f32.mrf.mxu0  ;;  %5004 = vmatmul.msk.bf16.gmra.mxu3 %vm328_vm0, %v6064_v54  ;;  %v5190_v42 = vld [vmem:[%s9547_s1 + $0x170] sm:$0xf]  ;;  %v5192_v53 = vld [vmem:[%s9547_s1 + $0x178] sm:$0xf0] }
 0x161   :  { %v6884_v26 = vadd.f32 %v992_v38, %v626_v14 }
 0x162   :  { %9573 = vst [vmem:[#allocation9_spill] sm:$0xff] %v6886_v10 }
 0x163   :  { %9572 = vst [vmem:[#allocation8_spill] sm:$0xff] %v6884_v26  ;;  %4895 = vmatmul.msk.bf16.gmra.mxu1 %vm328_vm0, %v6064_v54  ;;  %v997_v23 = vpop.f32.mrf.mxu3  ;;  %v6123_v54 = vld [vmem:[%s9547_s1 + $0x174] sm:$0xf0] }
 0x164   :  { %v5191_v14 = vor.u32 %v6123_v54, %v5190_v42 }
 0x166   :  { %1651 = vmatpush.bf16.msrb.mxu2 %v5191_v14 }
 0x167   :  { %v850_v45 = vpop.f32.mrf.mxu2 }
 0x168   :  { %v628_v60 = vpop.f32.mrf.mxu1  ;;  %v6895_v32 = vadd.f32 %v850_v45, %v484_v6  ;;  %v487_v38 = vpop.f32.mrf.mxu0 }
 0x169   :  { %v6890_v58 = vadd.f32 %v994_v4, %v628_v60  ;;  %v6122_v4 = vld [vmem:[%s9547_s1 + $0x174] sm:$0xf] }
 0x16a   :  { %9575 = vst [vmem:[#allocation11_spill] sm:$0xff] %v6895_v32  ;;  %v5195_v45 = vor.u32 %v6122_v4, %v5192_v53  ;;  %v6067_v53 = vld [vmem:[%s9548_s0 + $0xb8] sm:$0xff] }
 0x16b   :  { %9574 = vst [vmem:[#allocation10_spill] sm:$0xff] %v6890_v58  ;;  %4869 = vmatmul.msk.bf16.gmra.mxu0 %vm328_vm0, %v6066_v48  ;;  %v999_v6 = vpop.f32.mrf.mxu3 }
 0x16c   :  { %4977 = vmatmul.msk.bf16.gmra.mxu2 %vm328_vm0, %v6065_v37  ;;  %1800 = vmatpush.bf16.msrb.mxu3 %v5195_v45 }
 0x16f   :  { %v853_v26 = vpop.f32.mrf.mxu2 }
 0x170   :  { %v631_v60 = vpop.f32.mrf.mxu1  ;;  %v6913_v32 = vadd.f32 %v853_v26, %v487_v38  ;;  %v489_v10 = vpop.f32.mrf.mxu0  ;;  %5005 = vmatmul.msk.bf16.gmra.mxu3 %vm328_vm0, %v6065_v37 }
 0x171   :  { %v6911_v58 = vadd.f32 %v997_v23, %v631_v60 }
 0x172   :  { %9577 = vst [vmem:[#allocation13_spill] sm:$0xff] %v6913_v32 }
 0x173   :  { %9576 = vst [vmem:[#allocation12_spill] sm:$0xff] %v6911_v58  ;;  %4896 = vmatmul.msk.bf16.gmra.mxu1 %vm328_vm0, %v6065_v37  ;;  %v1002_v42 = vpop.f32.mrf.mxu3 }
 0x177   :  { %v855_v14 = vpop.f32.mrf.mxu2 }
 0x178   :  { %v633_v54 = vpop.f32.mrf.mxu1  ;;  %v6922_v45 = vadd.f32 %v855_v14, %v489_v10  ;;  %v492_v23 = vpop.f32.mrf.mxu0 }
 0x179   :  { %v6917_v4 = vadd.f32 %v999_v6, %v633_v54 }
 0x17a   :  { %9579 = vst [vmem:[#allocation15_spill] sm:$0xff] %v6922_v45  ;;  %v6068_v45 = vld [vmem:[%s9548_s0 + $0xc0] sm:$0xff] }
 0x17b   :  { %9578 = vst [vmem:[#allocation14_spill] sm:$0xff] %v6917_v4  ;;  %4870 = vmatmul.msk.bf16.gmra.mxu0 %vm328_vm0, %v6067_v53  ;;  %v1004_v26 = vpop.f32.mrf.mxu3 }
 0x17c   :  { %4978 = vmatmul.msk.bf16.gmra.mxu2 %vm328_vm0, %v6066_v48 }
 0x17f   :  { %v858_v37 = vpop.f32.mrf.mxu2 }
 0x180   :  { %v636_v38 = vpop.f32.mrf.mxu1  ;;  %v6928_v58 = vadd.f32 %v858_v37, %v492_v23  ;;  %v494_v6 = vpop.f32.mrf.mxu0  ;;  %5006 = vmatmul.msk.bf16.gmra.mxu3 %vm328_vm0, %v6066_v48  ;;  %v6100_v23 = vld [vmem:[%s9547_s1 + $0xc4] sm:$0xf]  ;;  %v6101_v37 = vld [vmem:[%s9547_s1 + $0xc4] sm:$0xf0] }
 0x181   :  { %v6926_v60 = vadd.f32 %v1002_v42, %v636_v38 }
 0x182   :  { %9581 = vst [vmem:[#allocation17_spill] sm:$0xff] %v6928_v58 }
 0x183   :  { %9580 = vst [vmem:[#allocation16_spill] sm:$0xff] %v6926_v60  ;;  %4897 = vmatmul.msk.bf16.gmra.mxu1 %vm328_vm0, %v6066_v48  ;;  %v1007_v54 = vpop.f32.mrf.mxu3  ;;  %v5032_v48 = vld [vmem:[%s9547_s1 + $0xc8] sm:$0xf0] }
 0x184   :  { %v5035_v38 = vor.u32 %v6100_v23, %v5032_v48 }
 0x186   :  { %1314 = vmatpush.bf16.msra.mxu1 %v5035_v38 }
 0x187   :  { %v860_v4 = vpop.f32.mrf.mxu2 }
 0x188   :  { %v638_v10 = vpop.f32.mrf.mxu1  ;;  %v6937_v32 = vadd.f32 %v860_v4, %v494_v6  ;;  %v497_v42 = vpop.f32.mrf.mxu0 }
 0x189   :  { %v6932_v14 = vadd.f32 %v1004_v26, %v638_v10  ;;  %v5030_v26 = vld [vmem:[%s9547_s1 + $0xc0] sm:$0xf] }
 0x18a   :  { %9583 = vst [vmem:[#allocation19_spill] sm:$0xff] %v6937_v32  ;;  %v5031_v4 = vor.u32 %v6101_v37, %v5030_v26  ;;  %v6069_v37 = vld [vmem:[%s9548_s0 + $0xc8] sm:$0xff] }
 0x18b   :  { %9582 = vst [vmem:[#allocation18_spill] sm:$0xff] %v6932_v14  ;;  %4871 = vmatmul.msk.bf16.gmra.mxu0 %vm328_vm0, %v6068_v45  ;;  %v1009_v6 = vpop.f32.mrf.mxu3 }
 0x18c   :  { %4979 = vmatmul.msk.bf16.gmra.mxu2 %vm328_vm0, %v6067_v53  ;;  %1165 = vmatpush.bf16.msrb.mxu0 %v5031_v4 }
 0x18f   :  { %v863_v60 = vpop.f32.mrf.mxu2 }
 0x190   :  { %v641_v10 = vpop.f32.mrf.mxu1  ;;  %v6955_v32 = vadd.f32 %v863_v60, %v497_v42  ;;  %v499_v58 = vpop.f32.mrf.mxu0  ;;  %5007 = vmatmul.msk.bf16.gmra.mxu3 %vm328_vm0, %v6067_v53 }
 0x191   :  { %v6953_v14 = vadd.f32 %v1007_v54, %v641_v10 }
 0x192   :  { %9585 = vst [vmem:[#allocation21_spill] sm:$0xff] %v6955_v32 }
 0x193   :  { %9584 = vst [vmem:[#allocation20_spill] sm:$0xff] %v6953_v14  ;;  %4898 = vmatmul.msk.bf16.gmra.mxu1 %vm328_vm0, %v6067_v53  ;;  %v1012_v23 = vpop.f32.mrf.mxu3 }
 0x197   :  { %v865_v38 = vpop.f32.mrf.mxu2 }
 0x198   :  { %v643_v48 = vpop.f32.mrf.mxu1  ;;  %v6964_v4 = vadd.f32 %v865_v38, %v499_v58  ;;  %v502_v54 = vpop.f32.mrf.mxu0 }
 0x199   :  { %v6959_v26 = vadd.f32 %v1009_v6, %v643_v48 }
 0x19a   :  { %9587 = vst [vmem:[#allocation23_spill] sm:$0xff] %v6964_v4 }
 0x19b   :  { %9586 = vst [vmem:[#allocation22_spill] sm:$0xff] %v6959_v26  ;;  %4872 = vmatmul.msk.bf16.gmra.mxu0 %vm328_vm0, %v6069_v37  ;;  %v1014_v60 = vpop.f32.mrf.mxu3  ;;  %v5182_v26 = vld [vmem:[%s9547_s1 + $0x160] sm:$0xf] }
 0x19c   :  { %4980 = vmatmul.msk.bf16.gmra.mxu2 %vm328_vm0, %v6068_v45 }
 0x19f   :  { %v868_v53 = vpop.f32.mrf.mxu2 }
 0x1a0   :  { %v646_v42 = vpop.f32.mrf.mxu1  ;;  %v6970_v14 = vadd.f32 %v868_v53, %v502_v54  ;;  %v504_v6 = vpop.f32.mrf.mxu0  ;;  %5008 = vmatmul.msk.bf16.gmra.mxu3 %vm328_vm0, %v6068_v45  ;;  %v6070_v54 = vld [vmem:[%s9548_s0 + $0xd0] sm:$0xff] }
 0x1a1   :  { %v6968_v10 = vadd.f32 %v1012_v23, %v646_v42  ;;  %v6121_v23 = vld [vmem:[%s9547_s1 + $0x164] sm:$0xf0] }
 0x1a2   :  { %9589 = vst [vmem:[#allocation25_spill] sm:$0xff] %v6970_v14  ;;  %v5183_v53 = vor.u32 %v6121_v23, %v5182_v26  ;;  %v6117_v23 = vld [vmem:[%s9547_s1 + $0x144] sm:$0xf0] }
 0x1a3   :  { %9588 = vst [vmem:[#allocation24_spill] sm:$0xff] %v6968_v10  ;;  %4899 = vmatmul.msk.bf16.gmra.mxu1 %vm328_vm0, %v6068_v45  ;;  %v1017_v48 = vpop.f32.mrf.mxu3 }
 0x1a4   :  { %1652 = vmatpush.bf16.msrb.mxu2 %v5183_v53 }
 0x1a7   :  { %v870_v42 = vpop.f32.mrf.mxu2 }
 0x1a8   :  { %v648_v58 = vpop.f32.mrf.mxu1  ;;  %v6985_v10 = vadd.f32 %v870_v42, %v504_v6  ;;  %v507_v45 = vpop.f32.mrf.mxu0  ;;  %v5166_v6 = vld [vmem:[%s9547_s1 + $0x140] sm:$0xf] }
 0x1a9   :  { %v6974_v38 = vadd.f32 %v1014_v60, %v648_v58  ;;  %v5174_v60 = vld [vmem:[%s9547_s1 + $0x150] sm:$0xf]  ;;  %v6119_v58 = vld [vmem:[%s9547_s1 + $0x154] sm:$0xf0]  ;;  %v5167_v53 = vor.u32 %v6117_v23, %v5166_v6 }
 0x1aa   :  { %9591 = vst [vmem:[#allocation27_spill] sm:$0xff] %v6985_v10 }
 0x1ab   :  { %9590 = vst [vmem:[#allocation26_spill] sm:$0xff] %v6974_v38  ;;  %4873 = vmatmul.msk.bf16.gmra.mxu0 %vm328_vm0, %v6070_v54  ;;  %v5175_v38 = vor.u32 %v6119_v58, %v5174_v60  ;;  %v1019_v14 = vpop.f32.mrf.mxu3  ;;  %v6115_v58 = vld [vmem:[%s9547_s1 + $0x134] sm:$0xf0] }
 0x1ac   :  { %4981 = vmatmul.msk.bf16.gmra.mxu2 %vm328_vm0, %v6069_v37 }
 0x1ad   :  { %1653 = vmatpush.bf16.msrb.mxu2 %v5175_v38  ;;  %v5158_v38 = vld [vmem:[%s9547_s1 + $0x130] sm:$0xf] }
 0x1ae   :  { %v5159_v6 = vor.u32 %v6115_v58, %v5158_v38  ;;  %v5176_v58 = vld [vmem:[%s9547_s1 + $0x158] sm:$0xf0] }
 0x1af   :  { %v873_v42 = vpop.f32.mrf.mxu2 }
 0x1b0   :  { %v651_v4 = vpop.f32.mrf.mxu1  ;;  %v7003_v10 = vadd.f32 %v873_v42, %v507_v45  ;;  %v509_v60 = vpop.f32.mrf.mxu0  ;;  %5009 = vmatmul.msk.bf16.gmra.mxu3 %vm328_vm0, %v6069_v37 }
 0x1b1   :  { %v6995_v26 = vadd.f32 %v1017_v48, %v651_v4  ;;  %v6120_v4 = vld [vmem:[%s9547_s1 + $0x164] sm:$0xf]  ;;  %v5184_v48 = vld [vmem:[%s9547_s1 + $0x168] sm:$0xf0]  ;;  %1654 = vmatpush.bf16.msrb.mxu2 %v5167_v53 }
 0x1b2   :  { %9593 = vst [vmem:[#allocation29_spill] sm:$0xff] %v7003_v10  ;;  %v5187_v45 = vor.u32 %v6120_v4, %v5184_v48  ;;  %v5150_v10 = vld [vmem:[%s9547_s1 + $0x120] sm:$0xf]  ;;  %v6071_v4 = vld [vmem:[%s9548_s0 + $0xd8] sm:$0xff] }
 0x1b3   :  { %9592 = vst [vmem:[#allocation28_spill] sm:$0xff] %v6995_v26  ;;  %4900 = vmatmul.msk.bf16.gmra.mxu1 %vm328_vm0, %v6069_v37  ;;  %v1022_v23 = vpop.f32.mrf.mxu3  ;;  %v6113_v37 = vld [vmem:[%s9547_s1 + $0x124] sm:$0xf0] }
 0x1b4   :  { %1801 = vmatpush.bf16.msrb.mxu3 %v5187_v45  ;;  %v5151_v48 = vor.u32 %v6113_v37, %v5150_v10  ;;  %v6116_v37 = vld [vmem:[%s9547_s1 + $0x144] sm:$0xf] }
 0x1b5   :  { %1655 = vmatpush.bf16.msrb.mxu2 %v5159_v6 }
 0x1b7   :  { %v875_v53 = vpop.f32.mrf.mxu2 }
 0x1b8   :  { %v653_v42 = vpop.f32.mrf.mxu1  ;;  %v7030_v38 = vadd.f32 %v875_v53, %v509_v60  ;;  %v512_v45 = vpop.f32.mrf.mxu0  ;;  %v5168_v53 = vld [vmem:[%s9547_s1 + $0x148] sm:$0xf0] }
 0x1b9   :  { %v7019_v26 = vadd.f32 %v1019_v14, %v653_v42  ;;  %1656 = vmatpush.bf16.msrb.mxu2 %v5151_v48  ;;  %v6118_v14 = vld [vmem:[%s9547_s1 + $0x154] sm:$0xf]  ;;  %v5171_v32 = vor.u32 %v6116_v37, %v5168_v53 }
 0x1ba   :  { %9595 = vst [vmem:[#allocation31_spill] sm:$0xff] %v7030_v38  ;;  %v5179_v42 = vor.u32 %v6118_v14, %v5176_v58 }
 0x1bb   :  { %9594 = vst [vmem:[#allocation30_spill] sm:$0xff] %v7019_v26  ;;  %4874 = vmatmul.msk.bf16.gmra.mxu0 %vm328_vm0, %v6071_v4  ;;  %v1024_v6 = vpop.f32.mrf.mxu3 }
 0x1bc   :  { %4982 = vmatmul.msk.bf16.gmra.mxu2 %vm328_vm0, %v6070_v54  ;;  %1802 = vmatpush.bf16.msrb.mxu3 %v5179_v42 }
 0x1bf   :  { %v878_v60 = vpop.f32.mrf.mxu2 }
 0x1c0   :  { %v656_v26 = vpop.f32.mrf.mxu1  ;;  %v7048_v48 = vadd.f32 %v878_v60, %v512_v45  ;;  %v514_v38 = vpop.f32.mrf.mxu0  ;;  %5010 = vmatmul.msk.bf16.gmra.mxu3 %vm328_vm0, %v6070_v54 }
 0x1c1   :  { %v7040_v10 = vadd.f32 %v1022_v23, %v656_v26  ;;  %1803 = vmatpush.bf16.msrb.mxu3 %v5171_v32  ;;  %v6114_v26 = vld [vmem:[%s9547_s1 + $0x134] sm:$0xf]  ;;  %v5160_v23 = vld [vmem:[%s9547_s1 + $0x138] sm:$0xf0]  ;;  %v5152_v32 = vld [vmem:[%s9547_s1 + $0x128] sm:$0xf0] }
 0x1c2   :  { %v5163_v58 = vor.u32 %v6114_v26, %v5160_v23 }
 0x1c3   :  { %9596 = vst [vmem:[#allocation32_spill] sm:$0xff] %v7040_v10  ;;  %4901 = vmatmul.msk.bf16.gmra.mxu1 %vm328_vm0, %v6070_v54  ;;  %v1027_v14 = vpop.f32.mrf.mxu3  ;;  %v6112_v54 = vld [vmem:[%s9547_s1 + $0x124] sm:$0xf] }
 0x1c4   :  { %v5155_v10 = vor.u32 %v6112_v54, %v5152_v32  ;;  %v5312_v54 = vld [vmem:[%s9547_s1 + $0x1d8] sm:$0xf0] }
 0x1c5   :  { %1804 = vmatpush.bf16.msrb.mxu3 %v5163_v58 }
 0x1c7   :  { %v880_v60 = vpop.f32.mrf.mxu2 }
 0x1c8   :  { %v658_v42 = vpop.f32.mrf.mxu1  ;;  %v7066_v37 = vadd.f32 %v880_v60, %v514_v38  ;;  %v517_v53 = vpop.f32.mrf.mxu0  ;;  %v5310_v38 = vld [vmem:[%s9547_s1 + $0x1d0] sm:$0xf]  ;;  %v6134_v60 = vld [vmem:[%s9547_s1 + $0x1d4] sm:$0xf] }
 0x1c9   :  { %v7058_v45 = vadd.f32 %v1024_v6, %v658_v42  ;;  %1805 = vmatpush.bf16.msrb.mxu3 %v5155_v10  ;;  %v6135_v10 = vld [vmem:[%s9547_s1 + $0x1d4] sm:$0xf0]  ;;  %v5315_v32 = vor.u32 %v6134_v60, %v5312_v54 }
 0x1ca   :  { %9598 = vst [vmem:[#allocation34_spill] sm:$0xff] %v7066_v37 }
 0x1cb   :  { %9597 = vst [vmem:[#allocation33_spill] sm:$0xff] %v7058_v45  ;;  %5076 = vmatmul.msk.bf16.vlgmr.msrb.gmra.mxu0 %vm328_vm0, %v6563_v13  ;;  %v1029_v6 = vpop.f32.mrf.mxu3  ;;  %2291 = vmatpush.bf16.msrb.mxu1 %v5315_v32 }
 0x1cc   :  { %4983 = vmatmul.msk.bf16.gmra.mxu2 %vm328_vm0, %v6071_v4 }
 0x1cf   :  { %v883_v58 = vpop.f32.mrf.mxu2 }
 0x1d0   :  { %v661_v26 = vpop.f32.mrf.mxu1  ;;  %v7073_v42 = vadd.f32 %v883_v58, %v517_v53  ;;  %v519_v45 = vpop.f32.mrf.mxu0  ;;  %5011 = vmatmul.msk.bf16.gmra.mxu3 %vm328_vm0, %v6071_v4 }
 0x1d1   :  { %v7071_v23 = vadd.f32 %v1027_v14, %v661_v26  ;;  %v5311_v14 = vor.u32 %v6135_v10, %v5310_v38 }
 0x1d2   :  { %9600 = vst [vmem:[#allocation36_spill] sm:$0xff] %v7073_v42 }
 0x1d3   :  { %9599 = vst [vmem:[#allocation35_spill] sm:$0xff] %v7071_v23  ;;  %4902 = vmatmul.msk.bf16.gmra.mxu1 %vm328_vm0, %v6071_v4  ;;  %2142 = vmatpush.bf16.msra.mxu0 %v5311_v14  ;;  %v1032_v53 = vpop.f32.mrf.mxu3 }
 0x1d7   :  { %v885_v23 = vpop.f32.mrf.mxu2 }
 0x1d8   :  { %v663_v26 = vpop.f32.mrf.mxu1  ;;  %v7091_v42 = vadd.f32 %v885_v23, %v519_v45  ;;  %v522_v37 = vpop.f32.mrf.mxu0  ;;  %v6283_v45 = vld [vmem:[%s9548_s0 + $0xe0] sm:$0xff] }
 0x1d9   :  { %v7089_v58 = vadd.f32 %v1029_v6, %v663_v26 }
 0x1db   :  { %9601 = vst [vmem:[#allocation37_spill] sm:$0xff] %v7089_v58  ;;  %5077 = vmatmul.msk.bf16.gmra.mxu0 %vm328_vm0, %v6579_v18  ;;  %v1034_v4 = vpop.f32.mrf.mxu3 }
 0x1dc   :  { %5196 = vmatmul.msk.bf16.vlgmr.msrb.gmra.mxu2 %vm328_vm0, %v6579_v18 }
 0x1df   :  { %v888_v60 = vpop.f32.mrf.mxu2 }
 0x1e0   :  { %v666_v38 = vpop.f32.mrf.mxu1  ;;  %v7099_v14 = vadd.f32 %v888_v60, %v522_v37  ;;  %v524_v54 = vpop.f32.mrf.mxu0  ;;  %5224 = vmatmul.msk.bf16.vlgmr.msrb.gmra.mxu3 %vm328_vm0, %v6579_v18 }
 0x1e1   :  { %v7097_v10 = vadd.f32 %v1032_v53, %v666_v38 }
 0x1e2   :  { %9603 = vst [vmem:[#allocation39_spill] sm:$0xff] %v7099_v14 }
 0x1e3   :  { %9602 = vst [vmem:[#allocation38_spill] sm:$0xff] %v7097_v10  ;;  %4903 = vmatmul.msk.bf16.gmra.mxu1 %vm328_vm0, %v6283_v45  ;;  %v1037_v6 = vpop.f32.mrf.mxu3 }
 0x1e7   :  { %v890_v26 = vpop.f32.mrf.mxu2 }
 0x1e8   :  { %v668_v23 = vpop.f32.mrf.mxu1  ;;  %v7109_v53 = vadd.f32 %v890_v26, %v524_v54  ;;  %v527_v38 = vpop.f32.mrf.mxu0 }
 0x1e9   :  { %v7107_v32 = vadd.f32 %v1034_v4, %v668_v23 }
 0x1ea   :  { %9605 = vst [vmem:[#allocation41_spill] sm:$0xff] %v7109_v53 }
 0x1eb   :  { %9604 = vst [vmem:[#allocation40_spill] sm:$0xff] %v7107_v32  ;;  %5078 = vmatmul.msk.bf16.gmra.mxu0 %vm328_vm0, %v6592_v19  ;;  %v1039_v37 = vpop.f32.mrf.mxu3 }
 0x1ec   :  { %5197 = vmatmul.msk.bf16.gmra.mxu2 %vm328_vm0, %v6592_v19 }
 0x1ef   :  { %v893_v10 = vpop.f32.mrf.mxu2 }
 0x1f0   :  { %v671_v60 = vpop.f32.mrf.mxu1  ;;  %v7117_v58 = vadd.f32 %v893_v10, %v527_v38  ;;  %v529_v14 = vpop.f32.mrf.mxu0  ;;  %5225 = vmatmul.msk.bf16.gmra.mxu3 %vm328_vm0, %v6592_v19 }
 0x1f1   :  { %v7115_v45 = vadd.f32 %v1037_v6, %v671_v60 }
 0x1f3   :  { %9606 = vst [vmem:[#allocation42_spill] sm:$0xff] %v7115_v45  ;;  %5104 = vmatmul.msk.bf16.vlgmr.msra.gmra.mxu1 %vm328_vm0, %v6563_v13  ;;  %v1042_v4 = vpop.f32.mrf.mxu3 }
 0x1f7   :  { %v895_v26 = vpop.f32.mrf.mxu2 }
 0x1f8   :  { %v673_v54 = vpop.f32.mrf.mxu1  ;;  %v7125_v32 = vadd.f32 %v895_v26, %v529_v14  ;;  %v532_v53 = vpop.f32.mrf.mxu0 }
 0x1f9   :  { %v7123_v23 = vadd.f32 %v1039_v37, %v673_v54 }
 0x1fa   :  { %9608 = vst [vmem:[#allocation44_spill] sm:$0xff] %v7125_v32 }
 0x1fb   :  { %9607 = vst [vmem:[#allocation43_spill] sm:$0xff] %v7123_v23  ;;  %5079 = vmatmul.msk.bf16.gmra.mxu0 %vm328_vm0, %v6605_v20  ;;  %v1044_v10 = vpop.f32.mrf.mxu3 }
 0x1fc   :  { %5198 = vmatmul.msk.bf16.gmra.mxu2 %vm328_vm0, %v6605_v20 }
 0x1ff   :  { %v898_v38 = vpop.f32.mrf.mxu2 }
 0x200   :  { %v676_v6 = vpop.f32.mrf.mxu1  ;;  %v7133_v19 = vadd.f32 %v898_v38, %v532_v53  ;;  %v534_v60 = vpop.f32.mrf.mxu0  ;;  %5226 = vmatmul.msk.bf16.gmra.mxu3 %vm328_vm0, %v6605_v20 }
 0x201   :  { %v7131_v13 = vadd.f32 %v1042_v4, %v676_v6 }
 0x202   :  { %9610 = vst [vmem:[#allocation46_spill] sm:$0xff] %v7133_v19 }
 0x203   :  { %9609 = vst [vmem:[#allocation45_spill] sm:$0xff] %v7131_v13  ;;  %5105 = vmatmul.msk.bf16.gmra.mxu1 %vm328_vm0, %v6579_v18  ;;  %v1047_v14 = vpop.f32.mrf.mxu3 }
 0x207   :  { %v900_v26 = vpop.f32.mrf.mxu2 }
 0x208   :  { %v678_v37 = vpop.f32.mrf.mxu1  ;;  %v7141_v23 = vadd.f32 %v900_v26, %v534_v60  ;;  %v537_v45 = vpop.f32.mrf.mxu0 }
 0x209   :  { %v7139_v54 = vadd.f32 %v1044_v10, %v678_v37  ;;  %v7154_v10 = vld [vmem:[%s9548_s0 + $0x20] sm:$0xff] }
 0x20a   :  { %9612 = vst [vmem:[#allocation48_spill] sm:$0xff] %v7141_v23 }
 0x20b   :  { %9611 = vst [vmem:[#allocation47_spill] sm:$0xff] %v7139_v54  ;;  %5080 = vmatmul.msk.bf16.gmra.mxu0 %vm328_vm0, %v6630_v27  ;;  %v1049_v53 = vpop.f32.mrf.mxu3 }
 0x20c   :  { %5199 = vmatmul.msk.bf16.gmra.mxu2 %vm328_vm0, %v6630_v27 }
 0x20f   :  { %v903_v6 = vpop.f32.mrf.mxu2 }
 0x210   :  { %v681_v4 = vpop.f32.mrf.mxu1  ;;  %v7149_v20 = vadd.f32 %v903_v6, %v537_v45  ;;  %v539_v38 = vpop.f32.mrf.mxu0  ;;  %5227 = vmatmul.msk.bf16.gmra.mxu3 %vm328_vm0, %v6630_v27  ;;  %v6133_v27 = vld [vmem:[%s9547_s1 + $0x1c4] sm:$0xf0] }
 0x211   :  { %v7147_v18 = vadd.f32 %v1047_v14, %v681_v4 }
 0x212   :  { %9614 = vst [vmem:[#allocation50_spill] sm:$0xff] %v7149_v20  ;;  %v7187_v20 = vld [vmem:[%s9548_s0 + $0x28] sm:$0xff] }
 0x213   :  { %9613 = vst [vmem:[#allocation49_spill] sm:$0xff] %v7147_v18  ;;  %5106 = vmatmul.msk.bf16.gmra.mxu1 %vm328_vm0, %v7154_v10  ;;  %v1052_v60 = vpop.f32.mrf.mxu3  ;;  %v5302_v18 = vld [vmem:[%s9547_s1 + $0x1c0] sm:$0xf] }
 0x214   :  { %9619 = vst [vmem:[#allocation55_spill] sm:$0xff] %v7187_v20 }
 0x217   :  { %v905_v14 = vpop.f32.mrf.mxu2 }
 0x218   :  { %v683_v37 = vpop.f32.mrf.mxu1  ;;  %v7162_v4 = vadd.f32 %v905_v14, %v539_v38  ;;  %v542_v45 = vpop.f32.mrf.mxu0  ;;  %v5304_v14 = vld [vmem:[%s9547_s1 + $0x1c8] sm:$0xf0] }
 0x219   :  { %v7160_v26 = vadd.f32 %v1049_v53, %v683_v37  ;;  %v6132_v53 = vld [vmem:[%s9547_s1 + $0x1c4] sm:$0xf]  ;;  %v5303_v37 = vor.u32 %v6133_v27, %v5302_v18  ;;  %v6286_v18 = vld [vmem:[%s9548_s0 + $0x38] sm:$0xff] }
 0x21a   :  { %9616 = vst [vmem:[#allocation52_spill] sm:$0xff] %v7162_v4 }
 0x21b   :  { %9615 = vst [vmem:[#allocation51_spill] sm:$0xff] %v7160_v26  ;;  %5081 = vmatmul.msk.bf16.gmra.mxu0 %vm328_vm0, %v6643_v28  ;;  %v1054_v6 = vpop.f32.mrf.mxu3  ;;  %v5307_v26 = vor.u32 %v6132_v53, %v5304_v14 }
 0x21c   :  { %5200 = vmatmul.msk.bf16.gmra.mxu2 %vm328_vm0, %v6643_v28  ;;  %2143 = vmatpush.bf16.msra.mxu0 %v5303_v37  ;;  %v6287_v37 = vld [vmem:[%s9548_s0 + $0x40] sm:$0xff] }
 0x21d   :  { %2292 = vmatpush.bf16.msrb.mxu1 %v5307_v26 }
 0x21f   :  { %v908_v54 = vpop.f32.mrf.mxu2 }
 0x220   :  { %v686_v38 = vpop.f32.mrf.mxu1  ;;  %v7182_v4 = vadd.f32 %v908_v54, %v542_v45  ;;  %v544_v13 = vpop.f32.mrf.mxu0  ;;  %5228 = vmatmul.msk.bf16.gmra.mxu3 %vm328_vm0, %v6286_v18 }
 0x221   :  { %v7180_v28 = vadd.f32 %v1052_v60, %v686_v38 }
 0x222   :  { %9618 = vst [vmem:[#allocation54_spill] sm:$0xff] %v7182_v4 }
 0x223   :  { %9617 = vst [vmem:[#allocation53_spill] sm:$0xff] %v7180_v28  ;;  %5107 = vmatmul.msk.bf16.gmra.mxu1 %vm328_vm0, %v7187_v20  ;;  %v1057_v60 = vpop.f32.mrf.mxu3 }
 0x227   :  { %v910_v45 = vpop.f32.mrf.mxu2 }
 0x228   :  { %v688_v27 = vpop.f32.mrf.mxu1  ;;  %v7197_v53 = vadd.f32 %v910_v45, %v544_v13  ;;  %v547_v38 = vpop.f32.mrf.mxu0  ;;  %v7211_v13 = vld [vmem:[%s9548_s0 + $0x30] sm:$0xff] }
 0x229   :  { %v7195_v54 = vadd.f32 %v1054_v6, %v688_v27  ;;  %9624 = vst [vmem:[#allocation60_spill] sm:$0xff] %v7211_v13 }
 0x22a   :  { %9621 = vst [vmem:[#allocation57_spill] sm:$0xff] %v7197_v53 }
 0x22b   :  { %9620 = vst [vmem:[#allocation56_spill] sm:$0xff] %v7195_v54  ;;  %5082 = vmatmul.msk.bf16.gmra.mxu0 %vm328_vm0, %v6287_v37  ;;  %v1059_v14 = vpop.f32.mrf.mxu3 }
 0x22c   :  { %5201 = vmatmul.msk.bf16.gmra.mxu2 %vm328_vm0, %v6287_v37 }
 0x22f   :  { %v913_v26 = vpop.f32.mrf.mxu2 }
 0x230   :  { %v691_v28 = vpop.f32.mrf.mxu1  ;;  %v7206_v23 = vadd.f32 %v913_v26, %v547_v38  ;;  %v549_v6 = vpop.f32.mrf.mxu0  ;;  %5229 = vmatmul.msk.bf16.gmra.mxu3 %vm328_vm0, %v6287_v37  ;;  %v6289_v26 = vld [vmem:[%s9548_s0 + $0x48] sm:$0xff] }
 0x231   :  { %v7204_v4 = vadd.f32 %v1057_v60, %v691_v28 }
 0x232   :  { %9623 = vst [vmem:[#allocation59_spill] sm:$0xff] %v7206_v23 }
 0x233   :  { %9622 = vst [vmem:[#allocation58_spill] sm:$0xff] %v7204_v4  ;;  %5108 = vmatmul.msk.bf16.gmra.mxu1 %vm328_vm0, %v7211_v13  ;;  %v1062_v27 = vpop.f32.mrf.mxu3 }
 0x237   :  { %v915_v28 = vpop.f32.mrf.mxu2 }
 0x238   :  { %v693_v45 = vpop.f32.mrf.mxu1  ;;  %v7218_v60 = vadd.f32 %v915_v28, %v549_v6  ;;  %v552_v38 = vpop.f32.mrf.mxu0 }
 0x239   :  { %v7216_v54 = vadd.f32 %v1059_v14, %v693_v45 }
 0x23a   :  { %9626 = vst [vmem:[#allocation62_spill] sm:$0xff] %v7218_v60 }
 0x23b   :  { %9625 = vst [vmem:[#allocation61_spill] sm:$0xff] %v7216_v54  ;;  %5083 = vmatmul.msk.bf16.gmra.mxu0 %vm328_vm0, %v6289_v26  ;;  %v1064_v4 = vpop.f32.mrf.mxu3 }
 0x23c   :  { %5202 = vmatmul.msk.bf16.gmra.mxu2 %vm328_vm0, %v6289_v26 }
 0x23f   :  { %v918_v13 = vpop.f32.mrf.mxu2 }
 0x240   :  { %v696_v23 = vpop.f32.mrf.mxu1  ;;  %v7227_v19 = vadd.f32 %v918_v13, %v552_v38  ;;  %v554_v14 = vpop.f32.mrf.mxu0  ;;  %5230 = vmatmul.msk.bf16.gmra.mxu3 %vm328_vm0, %v6289_v26 }
 0x241   :  { %v7225_v53 = vadd.f32 %v1062_v27, %v696_v23  ;;  %v6290_v23 = vld [vmem:[%s9548_s0 + $0x50] sm:$0xff] }
 0x243   :  { %9627 = vst [vmem:[#allocation63_spill] sm:$0xff] %v7225_v53  ;;  %5109 = vmatmul.msk.bf16.gmra.mxu1 %vm328_vm0, %v6286_v18  ;;  %v1067_v6 = vpop.f32.mrf.mxu3 }
 0x247   :  { %v920_v54 = vpop.f32.mrf.mxu2 }
 0x248   :  { %v698_v45 = vpop.f32.mrf.mxu1  ;;  %v7233_v60 = vadd.f32 %v920_v54, %v554_v14  ;;  %v1167_v32 = vpop.f32.mrf.mxu0 }
 0x249   :  { %v7231_v28 = vadd.f32 %v1064_v4, %v698_v45  ;;  %v1456_v20 = vadd.f32 %v1167_v32, %v6670_v34 }
 0x24a   :  { %9629 = vst [vmem:[#allocation65_spill] sm:$0xff] %v7233_v60 }
 0x24b   :  { %9628 = vst [vmem:[#allocation64_spill] sm:$0xff] %v7231_v28  ;;  %5084 = vmatmul.msk.bf16.gmra.mxu0 %vm328_vm0, %v6290_v23  ;;  %v1069_v18 = vpop.f32.mrf.mxu3 }
 0x24c   :  { %5203 = vmatmul.msk.bf16.gmra.mxu2 %vm328_vm0, %v6290_v23 }
 0x24f   :  { %v7243_v4 = vpop.f32.mrf.mxu2 }
 0x250   :  { %v701_v13 = vpop.f32.mrf.mxu1  ;;  %9631 = vst [vmem:[#allocation67_spill] sm:$0xff] %v7243_v4  ;;  %v1169_v38 = vpop.f32.mrf.mxu0  ;;  %5231 = vmatmul.msk.bf16.gmra.mxu3 %vm328_vm0, %v6290_v23 }
 0x251   :  { %v7241_v27 = vadd.f32 %v1067_v6, %v701_v13  ;;  %v1458_v54 = vadd.f32 %v1169_v38, %v6679_v40  ;;  %v6291_v6 = vld [vmem:[%s9548_s0 + $0x58] sm:$0xff] }
 0x253   :  { %9630 = vst [vmem:[#allocation66_spill] sm:$0xff] %v7241_v27  ;;  %5110 = vmatmul.msk.bf16.gmra.mxu1 %vm328_vm0, %v6287_v37  ;;  %v1072_v34 = vpop.f32.mrf.mxu3 }
 0x257   :  { %v7250_v45 = vpop.f32.mrf.mxu2 }
 0x258   :  { %v703_v32 = vpop.f32.mrf.mxu1  ;;  %9633 = vst [vmem:[#allocation69_spill] sm:$0xff] %v7250_v45  ;;  %v1172_v28 = vpop.f32.mrf.mxu0 }
 0x259   :  { %v7248_v14 = vadd.f32 %v1069_v18, %v703_v32  ;;  %v1460_v53 = vadd.f32 %v1172_v28, %v6691_v49 }
 0x25b   :  { %9632 = vst [vmem:[#allocation68_spill] sm:$0xff] %v7248_v14  ;;  %5085 = vmatmul.msk.bf16.gmra.mxu0 %vm328_vm0, %v6291_v6  ;;  %v1074_v40 = vpop.f32.mrf.mxu3 }
 0x25c   :  { %5204 = vmatmul.msk.bf16.gmra.mxu2 %vm328_vm0, %v6291_v6 }
 0x25f   :  { %v1658_v38 = vpop.f32.mrf.mxu2 }
 0x260   :  { %v706_v37 = vpop.f32.mrf.mxu1  ;;  %v7260_v18 = vadd.f32 %v1658_v38, %v1456_v20  ;;  %v1174_v32 = vpop.f32.mrf.mxu0  ;;  %5232 = vmatmul.msk.bf16.gmra.mxu3 %vm328_vm0, %v6291_v6  ;;  %v5294_v20 = vld [vmem:[%s9547_s1 + $0x1b0] sm:$0xf] }
 0x261   :  { %v7258_v13 = vadd.f32 %v1072_v34, %v706_v37  ;;  %v1462_v49 = vadd.f32 %v1174_v32, %v6706_v59  ;;  %v6130_v59 = vld [vmem:[%s9547_s1 + $0x1b4] sm:$0xf] }
 0x263   :  { %9634 = vst [vmem:[#allocation70_spill] sm:$0xff] %v7258_v13  ;;  %5111 = vmatmul.msk.bf16.gmra.mxu1 %vm328_vm0, %v6289_v26  ;;  %v1807_v28 = vpop.f32.mrf.mxu3  ;;  %v6131_v26 = vld [vmem:[%s9547_s1 + $0x1b4] sm:$0xf0] }
 0x267   :  { %v1660_v45 = vpop.f32.mrf.mxu2 }
 0x268   :  { %v708_v14 = vpop.f32.mrf.mxu1  ;;  %v7267_v4 = vadd.f32 %v1660_v45, %v1458_v54  ;;  %v1177_v60 = vpop.f32.mrf.mxu0  ;;  %v5296_v54 = vld [vmem:[%s9547_s1 + $0x1b8] sm:$0xf0] }
 0x269   :  { %v7265_v27 = vadd.f32 %v1074_v40, %v708_v14  ;;  %v1464_v34 = vadd.f32 %v1177_v60, %v6712_v1  ;;  %v5295_v14 = vor.u32 %v6131_v26, %v5294_v20  ;;  %v5299_v45 = vor.u32 %v6130_v59, %v5296_v54  ;;  %v6292_v40 = vld [vmem:[%s9548_s0 + $0x60] sm:$0xff] }
 0x26b   :  { %9635 = vst [vmem:[#allocation71_spill] sm:$0xff] %v7265_v27  ;;  %5086 = vmatmul.msk.bf16.gmra.mxu0 %vm328_vm0, %v6292_v40  ;;  %v1809_v37 = vpop.f32.mrf.mxu3  ;;  %2293 = vmatpush.bf16.msrb.mxu1 %v5299_v45 }
 0x26c   :  { %5205 = vmatmul.msk.bf16.gmra.mxu2 %vm328_vm0, %v6292_v40  ;;  %2144 = vmatpush.bf16.msra.mxu0 %v5295_v14 }
 0x26f   :  { %v1663_v60 = vpop.f32.mrf.mxu2 }
 0x270   :  { %v1316_v38 = vpop.f32.mrf.mxu1  ;;  %v7288_v32 = vadd.f32 %v1663_v60, %v1460_v53  ;;  %v1179_v26 = vpop.f32.mrf.mxu0  ;;  %5233 = vmatmul.msk.bf16.gmra.mxu3 %vm328_vm0, %v6292_v40 }
 0x271   :  { %v1457_v1 = vadd.f32 %v1316_v38, %v6689_v47  ;;  %v1466_v59 = vadd.f32 %v1179_v26, %v6721_v8 }
 0x273   :  { %v7290_v20 = vadd.f32 %v1807_v28, %v1457_v1  ;;  %5112 = vmatmul.msk.bf16.gmra.mxu1 %vm328_vm0, %v6290_v23  ;;  %v1812_v54 = vpop.f32.mrf.mxu3  ;;  %v6293_v23 = vld [vmem:[%s9548_s0 + $0x68] sm:$0xff] }
 0x277   :  { %v1665_v13 = vpop.f32.mrf.mxu2 }
 0x278   :  { %v1318_v27 = vpop.f32.mrf.mxu1  ;;  %v7296_v45 = vadd.f32 %v1665_v13, %v1462_v49  ;;  %v1182_v53 = vpop.f32.mrf.mxu0 }
 0x279   :  { %v1459_v14 = vadd.f32 %v1318_v27, %v6701_v56  ;;  %v1468_v28 = vadd.f32 %v1182_v53, %v6727_v15 }
 0x27b   :  { %v7298_v47 = vadd.f32 %v1809_v37, %v1459_v14  ;;  %5087 = vmatmul.msk.bf16.gmra.mxu0 %vm328_vm0, %v6293_v23  ;;  %v1814_v8 = vpop.f32.mrf.mxu3 }
 0x27c   :  { %5206 = vmatmul.msk.bf16.gmra.mxu2 %vm328_vm0, %v6293_v23 }
 0x27f   :  { %v1668_v27 = vpop.f32.mrf.mxu2 }
 0x280   :  { %v1321_v38 = vpop.f32.mrf.mxu1  ;;  %v7307_v13 = vadd.f32 %v1668_v27, %v1464_v34  ;;  %v1184_v37 = vpop.f32.mrf.mxu0  ;;  %5234 = vmatmul.msk.bf16.gmra.mxu3 %vm328_vm0, %v6293_v23 }
 0x281   :  { %v1461_v56 = vadd.f32 %v1321_v38, %v6710_v63  ;;  %v1470_v15 = vadd.f32 %v1184_v37, %v6736_v25 }
 0x283   :  { %v7309_v49 = vadd.f32 %v1812_v54, %v1461_v56  ;;  %5113 = vmatmul.msk.bf16.gmra.mxu1 %vm328_vm0, %v6291_v6  ;;  %v1817_v1 = vpop.f32.mrf.mxu3  ;;  %v6294_v6 = vld [vmem:[%s9548_s0 + $0x70] sm:$0xff] }
 0x287   :  { %v1670_v14 = vpop.f32.mrf.mxu2 }
 0x288   :  { %v1323_v60 = vpop.f32.mrf.mxu1  ;;  %v7315_v53 = vadd.f32 %v1670_v14, %v1466_v59  ;;  %v1187_v34 = vpop.f32.mrf.mxu0 }
 0x289   :  { %v1463_v26 = vadd.f32 %v1323_v60, %v6716_v5  ;;  %v1472_v54 = vadd.f32 %v1187_v34, %v6742_v35 }
 0x28b   :  { %v7317_v63 = vadd.f32 %v1814_v8, %v1463_v26  ;;  %5088 = vmatmul.msk.bf16.gmra.mxu0 %vm328_vm0, %v6294_v6  ;;  %v1819_v25 = vpop.f32.mrf.mxu3 }
 0x28c   :  { %5207 = vmatmul.msk.bf16.gmra.mxu2 %vm328_vm0, %v6294_v6 }
 0x28f   :  { %v1673_v56 = vpop.f32.mrf.mxu2 }
 0x290   :  { %v1326_v38 = vpop.f32.mrf.mxu1  ;;  %v7326_v59 = vadd.f32 %v1673_v56, %v1468_v28  ;;  %v1189_v27 = vpop.f32.mrf.mxu0  ;;  %5235 = vmatmul.msk.bf16.gmra.mxu3 %vm328_vm0, %v6294_v6 }
 0x291   :  { %v1465_v5 = vadd.f32 %v1326_v38, %v6725_v12  ;;  %v1474_v35 = vadd.f32 %v1189_v27, %v6751_v44 }
 0x293   :  { %v7328_v8 = vadd.f32 %v1817_v1, %v1465_v5  ;;  %5114 = vmatmul.msk.bf16.gmra.mxu1 %vm328_vm0, %v6292_v40  ;;  %v1822_v37 = vpop.f32.mrf.mxu3  ;;  %v6295_v40 = vld [vmem:[%s9548_s0 + $0x78] sm:$0xff] }
 0x297   :  { %v1675_v14 = vpop.f32.mrf.mxu2 }
 0x298   :  { %v1328_v60 = vpop.f32.mrf.mxu1  ;;  %v7334_v34 = vadd.f32 %v1675_v14, %v1470_v15  ;;  %v1192_v28 = vpop.f32.mrf.mxu0 }
 0x299   :  { %v1467_v26 = vadd.f32 %v1328_v60, %v6731_v22  ;;  %v1476_v1 = vadd.f32 %v1192_v28, %v6757_v52 }
 0x29b   :  { %v7336_v12 = vadd.f32 %v1819_v25, %v1467_v26  ;;  %5089 = vmatmul.msk.bf16.gmra.mxu0 %vm328_vm0, %v6295_v40  ;;  %v1824_v44 = vpop.f32.mrf.mxu3 }
 0x29c   :  { %5208 = vmatmul.msk.bf16.gmra.mxu2 %vm328_vm0, %v6295_v40 }
 0x29f   :  { %v1678_v5 = vpop.f32.mrf.mxu2 }
 0x2a0   :  { %v1331_v38 = vpop.f32.mrf.mxu1  ;;  %v7345_v15 = vadd.f32 %v1678_v5, %v1472_v54  ;;  %v1194_v56 = vpop.f32.mrf.mxu0  ;;  %5236 = vmatmul.msk.bf16.gmra.mxu3 %vm328_vm0, %v6295_v40 }
 0x2a1   :  { %v1469_v22 = vadd.f32 %v1331_v38, %v6740_v31  ;;  %v1478_v52 = vadd.f32 %v1194_v56, %v6772_v2  ;;  %v5286_v56 = vld [vmem:[%s9547_s1 + $0x1a0] sm:$0xf] }
 0x2a3   :  { %v7347_v25 = vadd.f32 %v1822_v37, %v1469_v22  ;;  %5115 = vmatmul.msk.bf16.gmra.mxu1 %vm328_vm0, %v6293_v23  ;;  %v1827_v27 = vpop.f32.mrf.mxu3  ;;  %v6296_v23 = vld [vmem:[%s9548_s0 + $0x80] sm:$0xff] }
 0x2a7   :  { %v1680_v14 = vpop.f32.mrf.mxu2 }
 0x2a8   :  { %v1333_v60 = vpop.f32.mrf.mxu1  ;;  %v7353_v28 = vadd.f32 %v1680_v14, %v1474_v35  ;;  %v1197_v54 = vpop.f32.mrf.mxu0 }
 0x2a9   :  { %v1471_v26 = vadd.f32 %v1333_v60, %v6746_v41  ;;  %v1480_v37 = vadd.f32 %v1197_v54, %v6784_v16 }
 0x2ab   :  { %v7355_v31 = vadd.f32 %v1824_v44, %v1471_v26  ;;  %5090 = vmatmul.msk.bf16.gmra.mxu0 %vm328_vm0, %v6296_v23  ;;  %v1829_v2 = vpop.f32.mrf.mxu3 }
 0x2ac   :  { %5209 = vmatmul.msk.bf16.gmra.mxu2 %vm328_vm0, %v6296_v23 }
 0x2af   :  { %v1683_v22 = vpop.f32.mrf.mxu2 }
 0x2b0   :  { %v1336_v38 = vpop.f32.mrf.mxu1  ;;  %v7364_v35 = vadd.f32 %v1683_v22, %v1476_v1  ;;  %v1199_v5 = vpop.f32.mrf.mxu0  ;;  %5237 = vmatmul.msk.bf16.gmra.mxu3 %vm328_vm0, %v6296_v23  ;;  %v6128_v1 = vld [vmem:[%s9547_s1 + $0x1a4] sm:$0xf] }
 0x2b1   :  { %v1473_v41 = vadd.f32 %v1336_v38, %v6755_v50  ;;  %v1482_v16 = vadd.f32 %v1199_v5, %v6793_v30  ;;  %v6129_v50 = vld [vmem:[%s9547_s1 + $0x1a4] sm:$0xf0] }
 0x2b3   :  { %v7366_v44 = vadd.f32 %v1827_v27, %v1473_v41  ;;  %5116 = vmatmul.msk.bf16.gmra.mxu1 %vm328_vm0, %v6294_v6  ;;  %v5287_v27 = vor.u32 %v6129_v50, %v5286_v56  ;;  %v5288_v6 = vld [vmem:[%s9547_s1 + $0x1a8] sm:$0xf0]  ;;  %v1832_v60 = vpop.f32.mrf.mxu3 }
 0x2b4   :  { %v5291_v30 = vor.u32 %v6128_v1, %v5288_v6  ;;  %v6297_v56 = vld [vmem:[%s9548_s0 + $0x88] sm:$0xff] }
 0x2b5   :  { %2145 = vmatpush.bf16.msra.mxu0 %v5287_v27 }
 0x2b6   :  { %2294 = vmatpush.bf16.msrb.mxu1 %v5291_v30 }
 0x2b7   :  { %v1685_v54 = vpop.f32.mrf.mxu2 }
 0x2b8   :  { %v1338_v26 = vpop.f32.mrf.mxu1  ;;  %v7384_v38 = vadd.f32 %v1685_v54, %v1478_v52  ;;  %v1202_v22 = vpop.f32.mrf.mxu0 }
 0x2b9   :  { %v1475_v14 = vadd.f32 %v1338_v26, %v6767_v61  ;;  %v1484_v5 = vadd.f32 %v1202_v22, %v6799_v43 }
 0x2bb   :  { %v7386_v41 = vadd.f32 %v1829_v2, %v1475_v14  ;;  %5091 = vmatmul.msk.bf16.gmra.mxu0 %vm328_vm0, %v6297_v56  ;;  %v1834_v50 = vpop.f32.mrf.mxu3 }
 0x2bc   :  { %5210 = vmatmul.msk.bf16.gmra.mxu2 %vm328_vm0, %v6297_v56 }
 0x2bf   :  { %v1688_v27 = vpop.f32.mrf.mxu2 }
 0x2c0   :  { %v1341_v1 = vpop.f32.mrf.mxu1  ;;  %v7395_v52 = vadd.f32 %v1688_v27, %v1480_v37  ;;  %v1204_v6 = vpop.f32.mrf.mxu0  ;;  %5238 = vmatmul.msk.bf16.gmra.mxu3 %vm328_vm0, %v6297_v56 }
 0x2c1   :  { %v1477_v61 = vadd.f32 %v1341_v1, %v6782_v11  ;;  %v1486_v43 = vadd.f32 %v1204_v6, %v6808_v55 }
 0x2c3   :  { %v7397_v2 = vadd.f32 %v1832_v60, %v1477_v61  ;;  %5117 = vmatmul.msk.bf16.gmra.mxu1 %vm328_vm0, %v6295_v40  ;;  %v1837_v30 = vpop.f32.mrf.mxu3  ;;  %v6298_v40 = vld [vmem:[%s9548_s0 + $0x90] sm:$0xff] }
 0x2c7   :  { %v1690_v54 = vpop.f32.mrf.mxu2 }
 0x2c8   :  { %v1343_v26 = vpop.f32.mrf.mxu1  ;;  %v7403_v22 = vadd.f32 %v1690_v54, %v1482_v16  ;;  %v1207_v37 = vpop.f32.mrf.mxu0 }
 0x2c9   :  { %v1479_v14 = vadd.f32 %v1343_v26, %v6788_v24  ;;  %v1488_v60 = vadd.f32 %v1207_v37, %v6814_v3 }
 0x2cb   :  { %v7405_v11 = vadd.f32 %v1834_v50, %v1479_v14  ;;  %5092 = vmatmul.msk.bf16.gmra.mxu0 %vm328_vm0, %v6298_v40  ;;  %v1839_v55 = vpop.f32.mrf.mxu3 }
 0x2cc   :  { %5211 = vmatmul.msk.bf16.gmra.mxu2 %vm328_vm0, %v6298_v40 }
 0x2cf   :  { %v1693_v61 = vpop.f32.mrf.mxu2 }
 0x2d0   :  { %v1346_v1 = vpop.f32.mrf.mxu1  ;;  %v7414_v16 = vadd.f32 %v1693_v61, %v1484_v5  ;;  %v1209_v27 = vpop.f32.mrf.mxu0  ;;  %5239 = vmatmul.msk.bf16.gmra.mxu3 %vm328_vm0, %v6298_v40 }
 0x2d1   :  { %v1481_v24 = vadd.f32 %v1346_v1, %v6797_v39  ;;  %v1490_v3 = vadd.f32 %v1209_v27, %v6823_v17 }
 0x2d3   :  { %v7416_v50 = vadd.f32 %v1837_v30, %v1481_v24  ;;  %5118 = vmatmul.msk.bf16.gmra.mxu1 %vm328_vm0, %v6296_v23  ;;  %v1842_v6 = vpop.f32.mrf.mxu3  ;;  %v6299_v23 = vld [vmem:[%s9548_s0 + $0x98] sm:$0xff] }
 0x2d7   :  { %v1695_v54 = vpop.f32.mrf.mxu2 }
 0x2d8   :  { %v1348_v26 = vpop.f32.mrf.mxu1  ;;  %v7422_v37 = vadd.f32 %v1695_v54, %v1486_v43  ;;  %v1212_v5 = vpop.f32.mrf.mxu0 }
 0x2d9   :  { %v1483_v14 = vadd.f32 %v1348_v26, %v6803_v51  ;;  %v1492_v30 = vadd.f32 %v1212_v5, %v6829_v36 }
 0x2db   :  { %v7424_v39 = vadd.f32 %v1839_v55, %v1483_v14  ;;  %5093 = vmatmul.msk.bf16.gmra.mxu0 %vm328_vm0, %v6299_v23  ;;  %v1844_v17 = vpop.f32.mrf.mxu3 }
 0x2dc   :  { %5212 = vmatmul.msk.bf16.gmra.mxu2 %vm328_vm0, %v6299_v23 }
 0x2dd   :  { %9636 = vst [vmem:[#allocation72_spill] sm:$0xff] %v7424_v39 }
 0x2df   :  { %v1698_v24 = vpop.f32.mrf.mxu2 }
 0x2e0   :  { %v1351_v1 = vpop.f32.mrf.mxu1  ;;  %v7433_v43 = vadd.f32 %v1698_v24, %v1488_v60  ;;  %v1214_v61 = vpop.f32.mrf.mxu0  ;;  %5240 = vmatmul.msk.bf16.gmra.mxu3 %vm328_vm0, %v6299_v23 }
 0x2e1   :  { %v1485_v51 = vadd.f32 %v1351_v1, %v6812_v62  ;;  %v1494_v36 = vadd.f32 %v1214_v61, %v6838_v57 }
 0x2e3   :  { %v7435_v55 = vadd.f32 %v1842_v6, %v1485_v51  ;;  %5119 = vmatmul.msk.bf16.gmra.mxu1 %vm328_vm0, %v6297_v56  ;;  %v1847_v27 = vpop.f32.mrf.mxu3  ;;  %v6300_v56 = vld [vmem:[%s9548_s0 + $0xa0] sm:$0xff] }
 0x2e7   :  { %v1700_v54 = vpop.f32.mrf.mxu2 }
 0x2e8   :  { %v1353_v26 = vpop.f32.mrf.mxu1  ;;  %v7441_v5 = vadd.f32 %v1700_v54, %v1490_v3  ;;  %v1217_v60 = vpop.f32.mrf.mxu0 }
 0x2e9   :  { %v1487_v14 = vadd.f32 %v1353_v26, %v6818_v9  ;;  %v1496_v6 = vadd.f32 %v1217_v60, %v6850_v21 }
 0x2eb   :  { %v7443_v62 = vadd.f32 %v1844_v17, %v1487_v14  ;;  %5094 = vmatmul.msk.bf16.gmra.mxu0 %vm328_vm0, %v6300_v56  ;;  %v1849_v57 = vpop.f32.mrf.mxu3 }
 0x2ec   :  { %5213 = vmatmul.msk.bf16.gmra.mxu2 %vm328_vm0, %v6300_v56 }
 0x2ed   :  { %9637 = vst [vmem:[#allocation73_spill] sm:$0xff] %v7443_v62  ;;  %v9642_v62 = vld [vmem:[#allocation4_spill] sm:$0xff] }
 0x2ef   :  { %v1703_v51 = vpop.f32.mrf.mxu2 }
 0x2f0   :  { %v1356_v1 = vpop.f32.mrf.mxu1  ;;  %v7452_v3 = vadd.f32 %v1703_v51, %v1492_v30  ;;  %v1219_v24 = vpop.f32.mrf.mxu0  ;;  %5241 = vmatmul.msk.bf16.gmra.mxu3 %vm328_vm0, %v6300_v56 }
 0x2f1   :  { %v1489_v9 = vadd.f32 %v1356_v1, %v6827_v33  ;;  %v1498_v21 = vadd.f32 %v1219_v24, %v6865_v0 }
 0x2f3   :  { %v7454_v17 = vadd.f32 %v1847_v27, %v1489_v9  ;;  %5120 = vmatmul.msk.bf16.gmra.mxu1 %vm328_vm0, %v6298_v40  ;;  %v1852_v61 = vpop.f32.mrf.mxu3  ;;  %v6301_v40 = vld [vmem:[%s9548_s0 + $0xa8] sm:$0xff]  ;;  %v5280_v9 = vld [vmem:[%s9547_s1 + $0x198] sm:$0xf0] }
 0x2f5   :  { %9638 = vst [vmem:[#allocation74_spill] sm:$0xff] %v7454_v17 }
 0x2f7   :  { %v1705_v54 = vpop.f32.mrf.mxu2 }
 0x2f8   :  { %v1358_v26 = vpop.f32.mrf.mxu1  ;;  %v7460_v60 = vadd.f32 %v1705_v54, %v1494_v36  ;;  %v1222_v30 = vpop.f32.mrf.mxu0  ;;  %v6127_v36 = vld [vmem:[%s9547_s1 + $0x194] sm:$0xf0] }
 0x2f9   :  { %v1491_v14 = vadd.f32 %v1358_v26, %v6833_v46  ;;  %v1500_v27 = vadd.f32 %v1222_v30, %v6871_v29  ;;  %v5278_v46 = vld [vmem:[%s9547_s1 + $0x190] sm:$0xf]  ;;  %v6126_v29 = vld [vmem:[%s9547_s1 + $0x194] sm:$0xf] }
 0x2fa   :  { %v5279_v1 = vor.u32 %v6127_v36, %v5278_v46  ;;  %v5283_v24 = vor.u32 %v6126_v29, %v5280_v9 }
 0x2fb   :  { %v7462_v33 = vadd.f32 %v1849_v57, %v1491_v14  ;;  %5095 = vmatmul.msk.bf16.gmra.mxu0 %vm328_vm0, %v6301_v40  ;;  %v1854_v0 = vpop.f32.mrf.mxu3 }
 0x2fc   :  { %5214 = vmatmul.msk.bf16.gmra.mxu2 %vm328_vm0, %v6301_v40  ;;  %2146 = vmatpush.bf16.msra.mxu0 %v5279_v1 }
 0x2fd   :  { %9639 = vst [vmem:[#allocation75_spill] sm:$0xff] %v7462_v33  ;;  %v9641_v33 = vld [vmem:[#allocation7_spill] sm:$0xff]  ;;  %2295 = vmatpush.bf16.msrb.mxu1 %v5283_v24 }
 0x2ff   :  { %v1708_v26 = vpop.f32.mrf.mxu2 }
 0x300   :  { %v1361_v57 = vpop.f32.mrf.mxu1  ;;  %v7483_v14 = vadd.f32 %v1708_v26, %v1496_v6  ;;  %v1224_v30 = vpop.f32.mrf.mxu0  ;;  %5242 = vmatmul.msk.bf16.gmra.mxu3 %vm328_vm0, %v6301_v40  ;;  %v9648_v26 = vld [vmem:[#allocation11_spill] sm:$0xff] }
 0x301   :  { %v1493_v51 = vadd.f32 %v1361_v57, %v6848_v7  ;;  %v1502_v17 = vadd.f32 %v1224_v30, %v9641_v33 }
 0x303   :  { %v7485_v54 = vadd.f32 %v1852_v61, %v1493_v51  ;;  %5121 = vmatmul.msk.bf16.gmra.mxu1 %vm328_vm0, %v6299_v23  ;;  %v1857_v46 = vpop.f32.mrf.mxu3  ;;  %v9645_v61 = vld [vmem:[#allocation9_spill] sm:$0xff]  ;;  %v6302_v23 = vld [vmem:[%s9548_s0 + $0xb0] sm:$0xff] }
 0x304   :  { %v9646_v51 = vld [vmem:[#allocation5_spill] sm:$0xff] }
 0x305   :  { %9640 = vst [vmem:[#allocation76_spill] sm:$0xff] %v7485_v54 }
 0x307   :  { %v1710_v7 = vpop.f32.mrf.mxu2 }
 0x308   :  { %v1363_v36 = vpop.f32.mrf.mxu1  ;;  %v7491_v29 = vadd.f32 %v1710_v7, %v1498_v21  ;;  %v1227_v6 = vpop.f32.mrf.mxu0 }
 0x309   :  { %v1495_v39 = vadd.f32 %v1363_v36, %v9642_v62  ;;  %v1504_v1 = vadd.f32 %v1227_v6, %v9645_v61  ;;  %v9649_v6 = vld [vmem:[#allocation6_spill] sm:$0xff] }
 0x30a   :  { %9643 = vst [vmem:[#allocation7_spill] sm:$0xff] %v7491_v29 }
 0x30b   :  { %v7493_v57 = vadd.f32 %v1854_v0, %v1495_v39  ;;  %5096 = vmatmul.msk.bf16.gmra.mxu0 %vm328_vm0, %v6302_v23  ;;  %v1859_v33 = vpop.f32.mrf.mxu3 }
 0x30c   :  { %5215 = vmatmul.msk.bf16.gmra.mxu2 %vm328_vm0, %v6302_v23 }
 0x30d   :  { %9644 = vst [vmem:[#allocation4_spill] sm:$0xff] %v7493_v57 }
 0x30f   :  { %v1713_v24 = vpop.f32.mrf.mxu2 }
 0x310   :  { %v1366_v9 = vpop.f32.mrf.mxu1  ;;  %v7502_v21 = vadd.f32 %v1713_v24, %v1500_v27  ;;  %v1229_v0 = vpop.f32.mrf.mxu0  ;;  %5243 = vmatmul.msk.bf16.gmra.mxu3 %vm328_vm0, %v6302_v23 }
 0x311   :  { %v1497_v62 = vadd.f32 %v1366_v9, %v9646_v51  ;;  %v1506_v30 = vadd.f32 %v1229_v0, %v9648_v26  ;;  %v9652_v51 = vld [vmem:[#allocation13_spill] sm:$0xff]  ;;  %v9653_v0 = vld [vmem:[#allocation8_spill] sm:$0xff] }
 0x313   :  { %v7504_v39 = vadd.f32 %v1857_v46, %v1497_v62  ;;  %5122 = vmatmul.msk.bf16.gmra.mxu1 %vm328_vm0, %v6300_v56  ;;  %v1862_v36 = vpop.f32.mrf.mxu3  ;;  %v6303_v56 = vld [vmem:[%s9548_s0 + $0xb8] sm:$0xff] }
 0x315   :  { %9647 = vst [vmem:[#allocation9_spill] sm:$0xff] %v7504_v39 }
 0x317   :  { %v1715_v57 = vpop.f32.mrf.mxu2 }
 0x318   :  { %v1368_v7 = vpop.f32.mrf.mxu1  ;;  %v7510_v29 = vadd.f32 %v1715_v57, %v1502_v17  ;;  %v1232_v27 = vpop.f32.mrf.mxu0 }
 0x319   :  { %v1499_v61 = vadd.f32 %v1368_v7, %v9649_v6  ;;  %v1508_v46 = vadd.f32 %v1232_v27, %v9652_v51  ;;  %v9656_v6 = vld [vmem:[#allocation15_spill] sm:$0xff] }
 0x31a   :  { %9650 = vst [vmem:[#allocation5_spill] sm:$0xff] %v7510_v29 }
 0x31b   :  { %v7512_v9 = vadd.f32 %v1859_v33, %v1499_v61  ;;  %5097 = vmatmul.msk.bf16.gmra.mxu0 %vm328_vm0, %v6303_v56  ;;  %v1864_v62 = vpop.f32.mrf.mxu3 }
 0x31c   :  { %5216 = vmatmul.msk.bf16.gmra.mxu2 %vm328_vm0, %v6303_v56 }
 0x31d   :  { %9651 = vst [vmem:[#allocation11_spill] sm:$0xff] %v7512_v9  ;;  %v9657_v9 = vld [vmem:[#allocation10_spill] sm:$0xff] }
 0x31f   :  { %v1718_v7 = vpop.f32.mrf.mxu2 }
 0x320   :  { %v1371_v24 = vpop.f32.mrf.mxu1  ;;  %v7521_v17 = vadd.f32 %v1718_v7, %v1504_v1  ;;  %v1234_v33 = vpop.f32.mrf.mxu0  ;;  %5244 = vmatmul.msk.bf16.gmra.mxu3 %vm328_vm0, %v6303_v56 }
 0x321   :  { %v1501_v26 = vadd.f32 %v1371_v24, %v9653_v0  ;;  %v1510_v61 = vadd.f32 %v1234_v33, %v9656_v6  ;;  %v6166_v0 = vld [vmem:[%s9549_s3 + $0xf4] sm:$0xf] }
 0x322   :  { %9654 = vst [vmem:[#allocation6_spill] sm:$0xff] %v7521_v17  ;;  %v9661_v6 = vld [vmem:[#allocation12_spill] sm:$0xff] }
 0x323   :  { %v7523_v57 = vadd.f32 %v1862_v36, %v1501_v26  ;;  %5123 = vmatmul.msk.bf16.gmra.mxu1 %vm328_vm0, %v6301_v40  ;;  %v1867_v27 = vpop.f32.mrf.mxu3  ;;  %v5446_v36 = vld [vmem:[%s9549_s3 + $0xf0] sm:$0xf]  ;;  %v6167_v40 = vld [vmem:[%s9549_s3 + $0xf4] sm:$0xf0] }
 0x324   :  { %v9660_v26 = vld [vmem:[#allocation17_spill] sm:$0xff]  ;;  %v5447_v7 = vor.u32 %v6167_v40, %v5446_v36 }
 0x325   :  { %9655 = vst [vmem:[#allocation13_spill] sm:$0xff] %v7523_v57 }
 0x326   :  { %2895 = vmatpush.bf16.msra.mxu2 %v5447_v7 }
 0x327   :  { %v1720_v29 = vpop.f32.mrf.mxu2 }
 0x328   :  { %v1373_v51 = vpop.f32.mrf.mxu1  ;;  %v7529_v54 = vadd.f32 %v1720_v29, %v1506_v30  ;;  %v1237_v1 = vpop.f32.mrf.mxu0  ;;  %v5448_v29 = vld [vmem:[%s9549_s3 + $0xf8] sm:$0xf0]  ;;  %v6304_v30 = vld [vmem:[%s9548_s0 + $0xc0] sm:$0xff] }
 0x329   :  { %v1503_v39 = vadd.f32 %v1373_v51, %v9657_v9  ;;  %v1512_v9 = vadd.f32 %v1237_v1, %v9660_v26  ;;  %v9664_v26 = vld [vmem:[#allocation19_spill] sm:$0xff] }
 0x32a   :  { %9658 = vst [vmem:[#allocation8_spill] sm:$0xff] %v7529_v54  ;;  %v9665_v54 = vld [vmem:[#allocation14_spill] sm:$0xff] }
 0x32b   :  { %v7531_v24 = vadd.f32 %v1864_v62, %v1503_v39  ;;  %v5451_v39 = vor.u32 %v6166_v0, %v5448_v29  ;;  %5098 = vmatmul.msk.bf16.gmra.mxu0 %vm328_vm0, %v6304_v30  ;;  %v1869_v62 = vpop.f32.mrf.mxu3 }
 0x32c   :  { %5217 = vmatmul.msk.bf16.gmra.mxu2 %vm328_vm0, %v6304_v30 }
 0x32d   :  { %9659 = vst [vmem:[#allocation15_spill] sm:$0xff] %v7531_v24  ;;  %2954 = vmatpush.bf16.msra.mxu3 %v5451_v39 }
 0x32f   :  { %v1723_v1 = vpop.f32.mrf.mxu2 }
 0x330   :  { %v1376_v33 = vpop.f32.mrf.mxu1  ;;  %v7552_v36 = vadd.f32 %v1723_v1, %v1508_v46  ;;  %v1239_v0 = vpop.f32.mrf.mxu0  ;;  %5245 = vmatmul.msk.bf16.gmra.mxu3 %vm328_vm0, %v6304_v30 }
 0x331   :  { %v1505_v51 = vadd.f32 %v1376_v33, %v9661_v6  ;;  %v1514_v29 = vadd.f32 %v1239_v0, %v9664_v26  ;;  %v9668_v6 = vld [vmem:[#allocation21_spill] sm:$0xff]  ;;  %v9669_v0 = vld [vmem:[#allocation16_spill] sm:$0xff]  ;;  %v9671_v26 = vld [vmem:[#allocation23_spill] sm:$0xff] }
 0x332   :  { %9662 = vst [vmem:[#allocation10_spill] sm:$0xff] %v7552_v36 }
 0x333   :  { %v7554_v40 = vadd.f32 %v1867_v27, %v1505_v51  ;;  %5124 = vmatmul.msk.bf16.gmra.mxu1 %vm328_vm0, %v6302_v23  ;;  %v1872_v7 = vpop.f32.mrf.mxu3  ;;  %v6305_v23 = vld [vmem:[%s9548_s0 + $0xc8] sm:$0xff] }
 0x335   :  { %9663 = vst [vmem:[#allocation17_spill] sm:$0xff] %v7554_v40 }
 0x337   :  { %v1725_v39 = vpop.f32.mrf.mxu2 }
 0x338   :  { %v1378_v24 = vpop.f32.mrf.mxu1  ;;  %v7560_v17 = vadd.f32 %v1725_v39, %v1510_v61  ;;  %v1242_v46 = vpop.f32.mrf.mxu0 }
 0x339   :  { %v1507_v57 = vadd.f32 %v1378_v24, %v9665_v54  ;;  %v1516_v27 = vadd.f32 %v1242_v46, %v9668_v6 }
 0x33a   :  { %9666 = vst [vmem:[#allocation12_spill] sm:$0xff] %v7560_v17 }
 0x33b   :  { %v7562_v33 = vadd.f32 %v1869_v62, %v1507_v57  ;;  %5099 = vmatmul.msk.bf16.gmra.mxu0 %vm328_vm0, %v6305_v23  ;;  %v1874_v51 = vpop.f32.mrf.mxu3 }
 0x33c   :  { %5218 = vmatmul.msk.bf16.gmra.mxu2 %vm328_vm0, %v6305_v23 }
 0x33d   :  { %9667 = vst [vmem:[#allocation19_spill] sm:$0xff] %v7562_v33  ;;  %v9672_v33 = vld [vmem:[#allocation18_spill] sm:$0xff] }
 0x33f   :  { %v1728_v24 = vpop.f32.mrf.mxu2 }
 0x340   :  { %v1381_v1 = vpop.f32.mrf.mxu1  ;;  %v7571_v61 = vadd.f32 %v1728_v24, %v1512_v9  ;;  %v1244_v62 = vpop.f32.mrf.mxu0  ;;  %5246 = vmatmul.msk.bf16.gmra.mxu3 %vm328_vm0, %v6305_v23 }
 0x341   :  { %v1509_v54 = vadd.f32 %v1381_v1, %v9669_v0  ;;  %v1518_v39 = vadd.f32 %v1244_v62, %v9671_v26  ;;  %v6124_v0 = vld [vmem:[%s9547_s1 + $0x184] sm:$0xf]  ;;  %v9676_v26 = vld [vmem:[#allocation20_spill] sm:$0xff] }
 0x343   :  { %v7573_v57 = vadd.f32 %v1872_v7, %v1509_v54  ;;  %5125 = vmatmul.msk.bf16.gmra.mxu1 %vm328_vm0, %v6303_v56  ;;  %v1877_v46 = vpop.f32.mrf.mxu3  ;;  %v5270_v7 = vld [vmem:[%s9547_s1 + $0x180] sm:$0xf]  ;;  %v6125_v56 = vld [vmem:[%s9547_s1 + $0x184] sm:$0xf0]  ;;  %v9675_v54 = vld [vmem:[#allocation25_spill] sm:$0xff] }
 0x344   :  { %v5271_v24 = vor.u32 %v6125_v56, %v5270_v7 }
 0x345   :  { %9670 = vst [vmem:[#allocation14_spill] sm:$0xff] %v7573_v57 }
 0x346   :  { %2147 = vmatpush.bf16.msra.mxu0 %v5271_v24 }
 0x347   :  { %v1730_v17 = vpop.f32.mrf.mxu2 }
 0x348   :  { %v1383_v6 = vpop.f32.mrf.mxu1  ;;  %v7579_v36 = vadd.f32 %v1730_v17, %v1514_v29  ;;  %v1247_v9 = vpop.f32.mrf.mxu0  ;;  %v5272_v17 = vld [vmem:[%s9547_s1 + $0x188] sm:$0xf0]  ;;  %v7599_v29 = vld [vmem:[%s9548_s0 + $0xd0] sm:$0xff] }
 0x349   :  { %v1511_v40 = vadd.f32 %v1383_v6, %v9672_v33  ;;  %v1520_v33 = vadd.f32 %v1247_v9, %v9675_v54  ;;  %v9678_v54 = vld [vmem:[#allocation27_spill] sm:$0xff] }
 0x34a   :  { %9673 = vst [vmem:[#allocation21_spill] sm:$0xff] %v7579_v36  ;;  %v9680_v36 = vld [vmem:[#allocation22_spill] sm:$0xff] }
 0x34b   :  { %v7581_v1 = vadd.f32 %v1874_v51, %v1511_v40  ;;  %v5275_v40 = vor.u32 %v6124_v0, %v5272_v17  ;;  %5100 = vmatmul.msk.bf16.gmra.mxu0 %vm328_vm0, %v7599_v29  ;;  %v1879_v51 = vpop.f32.mrf.mxu3 }
 0x34c   :  { %5219 = vmatmul.msk.bf16.gmra.mxu2 %vm328_vm0, %v7599_v29 }
 0x34d   :  { %9674 = vst [vmem:[#allocation16_spill] sm:$0xff] %v7581_v1  ;;  %2296 = vmatpush.bf16.msrb.mxu1 %v5275_v40 }
 0x34f   :  { %v1733_v9 = vpop.f32.mrf.mxu2 }
 0x350   :  { %v1386_v62 = vpop.f32.mrf.mxu1  ;;  %v7606_v7 = vadd.f32 %v1733_v9, %v1516_v27  ;;  %v1249_v0 = vpop.f32.mrf.mxu0  ;;  %5247 = vmatmul.msk.bf16.gmra.mxu3 %vm328_vm0, %v7599_v29 }
 0x351   :  { %v1513_v6 = vadd.f32 %v1386_v62, %v9676_v26  ;;  %v7612_v17 = vadd.f32 %v1249_v0, %v9678_v54  ;;  %v9682_v26 = vld [vmem:[#allocation29_spill] sm:$0xff]  ;;  %v9683_v54 = vld [vmem:[#allocation24_spill] sm:$0xff] }
 0x353   :  { %v7608_v56 = vadd.f32 %v1877_v46, %v1513_v6  ;;  %5126 = vmatmul.msk.bf16.gmra.mxu1 %vm328_vm0, %v6304_v30  ;;  %9679 = vst [vmem:[#allocation18_spill] sm:$0xff] %v7612_v17  ;;  %v1882_v1 = vpop.f32.mrf.mxu3  ;;  %v6307_v30 = vld [vmem:[%s9548_s0 + $0xd8] sm:$0xff] }
 0x355   :  { %9677 = vst [vmem:[#allocation23_spill] sm:$0xff] %v7608_v56 }
 0x357   :  { %v1735_v57 = vpop.f32.mrf.mxu2 }
 0x358   :  { %v1388_v24 = vpop.f32.mrf.mxu1  ;;  %v7617_v62 = vadd.f32 %v1735_v57, %v1518_v39  ;;  %v1252_v46 = vpop.f32.mrf.mxu0 }
 0x359   :  { %v1515_v40 = vadd.f32 %v1388_v24, %v9680_v36  ;;  %v1524_v6 = vadd.f32 %v1252_v46, %v9682_v26  ;;  %v6165_v46 = vld [vmem:[%s9549_s3 + $0xe4] sm:$0xf0]  ;;  %v6164_v26 = vld [vmem:[%s9549_s3 + $0xe4] sm:$0xf] }
 0x35b   :  { %v7619_v27 = vadd.f32 %v1879_v51, %v1515_v40  ;;  %5101 = vmatmul.msk.bf16.gmra.mxu0 %vm328_vm0, %v6307_v30  ;;  %v1884_v9 = vpop.f32.mrf.mxu3  ;;  %v5438_v40 = vld [vmem:[%s9549_s3 + $0xe0] sm:$0xf] }
 0x35c   :  { %5220 = vmatmul.msk.bf16.gmra.mxu2 %vm328_vm0, %v6307_v30 }
 0x35d   :  { %9681 = vst [vmem:[#allocation25_spill] sm:$0xff] %v7619_v27  ;;  %v9687_v27 = vld [vmem:[#allocation26_spill] sm:$0xff] }
 0x35f   :  { %v1738_v24 = vpop.f32.mrf.mxu2 }
 0x360   :  { %v1391_v0 = vpop.f32.mrf.mxu1  ;;  %v7628_v57 = vadd.f32 %v1738_v24, %v1520_v33  ;;  %v1254_v51 = vpop.f32.mrf.mxu0  ;;  %5248 = vmatmul.msk.bf16.gmra.mxu3 %vm328_vm0, %v6307_v30 }
 0x361   :  { %v1517_v36 = vadd.f32 %v1391_v0, %v9683_v54  ;;  %v9685_v0 = vld [vmem:[#allocation31_spill] sm:$0xff] }
 0x362   :  { %v7643_v33 = vadd.f32 %v1254_v51, %v9685_v0 }
 0x363   :  { %v7630_v39 = vadd.f32 %v1882_v1, %v1517_v36  ;;  %5127 = vmatmul.msk.bf16.gmra.mxu1 %vm328_vm0, %v6305_v23  ;;  %v5439_v1 = vor.u32 %v6165_v46, %v5438_v40  ;;  %v5440_v23 = vld [vmem:[%s9549_s3 + $0xe8] sm:$0xf0]  ;;  %v1887_v36 = vpop.f32.mrf.mxu3  ;;  %v6308_v40 = vld [vmem:[%s9548_s0 + $0xe0] sm:$0xff] }
 0x364   :  { %9686 = vst [vmem:[#allocation27_spill] sm:$0xff] %v7643_v33  ;;  %v5443_v54 = vor.u32 %v6164_v26, %v5440_v23 }
 0x365   :  { %9684 = vst [vmem:[#allocation20_spill] sm:$0xff] %v7630_v39  ;;  %2896 = vmatpush.bf16.msra.mxu2 %v5439_v1  ;;  %v9691_v1 = vld [vmem:[#allocation28_spill] sm:$0xff] }
 0x366   :  { %2955 = vmatpush.bf16.msra.mxu3 %v5443_v54 }
 0x367   :  { %v7650_v39 = vpop.f32.mrf.mxu2 }
 0x368   :  { %v1393_v24 = vpop.f32.mrf.mxu1  ;;  %9688 = vst [vmem:[#allocation22_spill] sm:$0xff] %v7650_v39  ;;  %v1257_v51 = vpop.f32.mrf.mxu0  ;;  %v9704_v39 = vld [vmem:[#allocation33_spill] sm:$0xff] }
 0x369   :  { %v1519_v17 = vadd.f32 %v1393_v24, %v9687_v27  ;;  %v1528_v0 = vadd.f32 %v1257_v51, %v7048_v48  ;;  %v9694_v48 = vld [vmem:[#allocation34_spill] sm:$0xff] }
 0x36b   :  { %v7652_v56 = vadd.f32 %v1884_v9, %v1519_v17  ;;  %5102 = vmatmul.msk.bf16.gmra.mxu0 %vm328_vm0, %v6308_v40  ;;  %v7660_v46 = vpop.f32.mrf.mxu3 }
 0x36c   :  { %5221 = vmatmul.msk.bf16.gmra.mxu2 %vm328_vm0, %v6308_v40  ;;  %9690 = vst [vmem:[#allocation24_spill] sm:$0xff] %v7660_v46  ;;  %v9696_v46 = vld [vmem:[#allocation30_spill] sm:$0xff] }
 0x36d   :  { %9689 = vst [vmem:[#allocation29_spill] sm:$0xff] %v7652_v56 }
 0x36f   :  { %v1743_v23 = vpop.f32.mrf.mxu2 }
 0x370   :  { %v1396_v26 = vpop.f32.mrf.mxu1  ;;  %v7663_v54 = vadd.f32 %v1743_v23, %v1524_v6  ;;  %v1259_v9 = vpop.f32.mrf.mxu0  ;;  %5249 = vmatmul.msk.bf16.gmra.mxu3 %vm328_vm0, %v6308_v40  ;;  %v6073_v6 = vld [vmem:[%s9548_s0 + $0xe8] sm:$0xff] }
 0x371   :  { %v1521_v27 = vadd.f32 %v1396_v26, %v9691_v1  ;;  %v7670_v24 = vadd.f32 %v1259_v9, %v9694_v48  ;;  %v9699_v1 = vld [vmem:[#allocation36_spill] sm:$0xff] }
 0x372   :  { %9692 = vst [vmem:[#allocation31_spill] sm:$0xff] %v7663_v54  ;;  %v9701_v48 = vld [vmem:[#allocation32_spill] sm:$0xff] }
 0x373   :  { %v7665_v17 = vadd.f32 %v1887_v36, %v1521_v27  ;;  %5128 = vmatmul.msk.bf16.gmra.mxu1 %vm328_vm0, %v7599_v29  ;;  %9695 = vst [vmem:[#allocation28_spill] sm:$0xff] %v7670_v24  ;;  %v1892_v51 = vpop.f32.mrf.mxu3 }
 0x375   :  { %9693 = vst [vmem:[#allocation26_spill] sm:$0xff] %v7665_v17 }
 0x377   :  { %v7676_v26 = vpop.f32.mrf.mxu2 }
 0x378   :  { %v1398_v56 = vpop.f32.mrf.mxu1  ;;  %9698 = vst [vmem:[#allocation30_spill] sm:$0xff] %v7676_v26  ;;  %v1262_v36 = vpop.f32.mrf.mxu0 }
 0x379   :  { %v7674_v33 = vadd.f32 %v1398_v56, %v9696_v46  ;;  %v1532_v27 = vadd.f32 %v1262_v36, %v9699_v1 }
 0x37b   :  { %9697 = vst [vmem:[#allocation34_spill] sm:$0xff] %v7674_v33  ;;  %5103 = vmatmul.msk.bf16.gmra.mxu0 %vm328_vm0, %v6073_v6  ;;  %v7684_v23 = vpop.f32.mrf.mxu3 }
 0x37c   :  { %5222 = vmatmul.msk.bf16.gmra.mxu2 %vm328_vm0, %v6073_v6  ;;  %9700 = vst [vmem:[#allocation36_spill] sm:$0xff] %v7684_v23 }
 0x37f   :  { %v1748_v56 = vpop.f32.mrf.mxu2 }
 0x380   :  { %v1401_v9 = vpop.f32.mrf.mxu1  ;;  %v7687_v46 = vadd.f32 %v1748_v56, %v1528_v0  ;;  %v1264_v17 = vpop.f32.mrf.mxu0  ;;  %5250 = vmatmul.msk.bf16.gmra.mxu3 %vm328_vm0, %v6073_v6  ;;  %v6074_v0 = vld [vmem:[%s9548_s0 + $0xf0] sm:$0xff] }
 0x381   :  { %v1525_v24 = vadd.f32 %v1401_v9, %v9701_v48  ;;  %v7693_v26 = vadd.f32 %v1264_v17, %v7091_v42  ;;  %v9709_v17 = vld [vmem:[#allocation35_spill] sm:$0xff] }
 0x383   :  { %v7689_v33 = vadd.f32 %v1892_v51, %v1525_v24  ;;  %5129 = vmatmul.msk.bf16.gmra.mxu1 %vm328_vm0, %v6307_v30  ;;  %9703 = vst [vmem:[#allocation77_spill] sm:$0xff] %v7693_v26  ;;  %v1897_v36 = vpop.f32.mrf.mxu3  ;;  %v9707_v24 = vld [vmem:[#allocation39_spill] sm:$0xff]  ;;  %v9712_v26 = vld [vmem:[#allocation41_spill] sm:$0xff] }
 0x385   :  { %9702 = vst [vmem:[#allocation32_spill] sm:$0xff] %v7689_v33 }
 0x387   :  { %v7699_v54 = vpop.f32.mrf.mxu2 }
 0x388   :  { %v1403_v1 = vpop.f32.mrf.mxu1  ;;  %9706 = vst [vmem:[#allocation78_spill] sm:$0xff] %v7699_v54  ;;  %v1267_v9 = vpop.f32.mrf.mxu0  ;;  %v9714_v54 = vld [vmem:[#allocation37_spill] sm:$0xff] }
 0x389   :  { %v7697_v23 = vadd.f32 %v1403_v1, %v9704_v39  ;;  %v1536_v51 = vadd.f32 %v1267_v9, %v9707_v24 }
 0x38b   :  { %9705 = vst [vmem:[#allocation33_spill] sm:$0xff] %v7697_v23  ;;  %5316 = vmatmul.msk.bf16.vlgmr.msra.gmra.mxu0 %vm328_vm0, %v7154_v10  ;;  %v7708_v42 = vpop.f32.mrf.mxu3 }
 0x38c   :  { %5223 = vmatmul.msk.bf16.gmra.mxu2 %vm328_vm0, %v6074_v0  ;;  %9708 = vst [vmem:[#allocation39_spill] sm:$0xff] %v7708_v42 }
 0x38f   :  { %v1753_v48 = vpop.f32.mrf.mxu2 }
 0x390   :  { %v1406_v30 = vpop.f32.mrf.mxu1  ;;  %v7711_v56 = vadd.f32 %v1753_v48, %v1532_v27  ;;  %v1269_v23 = vpop.f32.mrf.mxu0  ;;  %5251 = vmatmul.msk.bf16.gmra.mxu3 %vm328_vm0, %v6074_v0  ;;  %v5430_v27 = vld [vmem:[%s9549_s3 + $0xd0] sm:$0xf] }
 0x391   :  { %v1529_v39 = vadd.f32 %v1406_v30, %v9709_v17  ;;  %v7717_v9 = vadd.f32 %v1269_v23, %v9712_v26  ;;  %v6162_v26 = vld [vmem:[%s9549_s3 + $0xd4] sm:$0xf]  ;;  %v9717_v17 = vld [vmem:[#allocation55_spill] sm:$0xff] }
 0x392   :  { %9710 = vst [vmem:[#allocation35_spill] sm:$0xff] %v7711_v56 }
 0x393   :  { %v7713_v1 = vadd.f32 %v1897_v36, %v1529_v39  ;;  %5130 = vmatmul.msk.bf16.gmra.mxu1 %vm328_vm0, %v6308_v40  ;;  %9713 = vst [vmem:[#allocation41_spill] sm:$0xff] %v7717_v9  ;;  %v1902_v10 = vpop.f32.mrf.mxu3  ;;  %v6163_v40 = vld [vmem:[%s9549_s3 + $0xd4] sm:$0xf0] }
 0x394   :  { %v5431_v36 = vor.u32 %v6163_v40, %v5430_v27  ;;  %v9722_v27 = vld [vmem:[#allocation44_spill] sm:$0xff] }
 0x395   :  { %9711 = vst [vmem:[#allocation79_spill] sm:$0xff] %v7713_v1 }
 0x396   :  { %2897 = vmatpush.bf16.msra.mxu2 %v5431_v36  ;;  %v9724_v36 = vld [vmem:[#allocation40_spill] sm:$0xff] }
 0x397   :  { %v7723_v33 = vpop.f32.mrf.mxu2 }
 0x398   :  { %v1408_v24 = vpop.f32.mrf.mxu1  ;;  %9716 = vst [vmem:[#allocation80_spill] sm:$0xff] %v7723_v33  ;;  %v1272_v30 = vpop.f32.mrf.mxu0 }
 0x399   :  { %v7721_v42 = vadd.f32 %v1408_v24, %v9714_v54  ;;  %v1540_v23 = vadd.f32 %v1272_v30, %v7117_v58  ;;  %v5432_v54 = vld [vmem:[%s9549_s3 + $0xd8] sm:$0xf0]  ;;  %v9719_v24 = vld [vmem:[#allocation38_spill] sm:$0xff] }
 0x39a   :  { %v5435_v0 = vor.u32 %v6162_v26, %v5432_v54 }
 0x39b   :  { %9715 = vst [vmem:[#allocation37_spill] sm:$0xff] %v7721_v42  ;;  %5317 = vmatmul.msk.bf16.gmra.mxu0 %vm328_vm0, %v9717_v17  ;;  %v7740_v39 = vpop.f32.mrf.mxu3 }
 0x39c   :  { %9718 = vst [vmem:[#allocation55_spill] sm:$0xff] %v7740_v39  ;;  %2956 = vmatpush.bf16.msra.mxu3 %v5435_v0 }
 0x39f   :  { %v1758_v9 = vpop.f32.mrf.mxu2 }
 0x3a0   :  { %v1411_v48 = vpop.f32.mrf.mxu1  ;;  %v7743_v1 = vadd.f32 %v1758_v9, %v1536_v51  ;;  %v1274_v30 = vpop.f32.mrf.mxu0  ;;  %v9728_v51 = vld [vmem:[#allocation60_spill] sm:$0xff] }
 0x3a1   :  { %v1533_v42 = vadd.f32 %v1411_v48, %v9719_v24  ;;  %v7749_v40 = vadd.f32 %v1274_v30, %v9722_v27  ;;  %v9727_v48 = vld [vmem:[#allocation46_spill] sm:$0xff] }
 0x3a2   :  { %9720 = vst [vmem:[#allocation38_spill] sm:$0xff] %v7743_v1  ;;  %v9758_v1 = vld [vmem:[#allocation59_spill] sm:$0xff] }
 0x3a3   :  { %v7745_v58 = vadd.f32 %v1902_v10, %v1533_v42  ;;  %5131 = vmatmul.msk.bf16.gmra.mxu1 %vm328_vm0, %v6073_v6  ;;  %9723 = vst [vmem:[#allocation44_spill] sm:$0xff] %v7749_v40  ;;  %v1907_v26 = vpop.f32.mrf.mxu3  ;;  %v9730_v6 = vld [vmem:[#allocation42_spill] sm:$0xff] }
 0x3a5   :  { %9721 = vst [vmem:[#allocation81_spill] sm:$0xff] %v7745_v58  ;;  %v9745_v58 = vld [vmem:[#allocation47_spill] sm:$0xff] }
 0x3a7   :  { %v7754_v0 = vpop.f32.mrf.mxu2 }
 0x3a8   :  { %v1413_v54 = vpop.f32.mrf.mxu1  ;;  %9726 = vst [vmem:[#allocation82_spill] sm:$0xff] %v7754_v0  ;;  %v1277_v39 = vpop.f32.mrf.mxu0 }
 0x3a9   :  { %v7752_v17 = vadd.f32 %v1413_v54, %v9724_v36  ;;  %v1544_v24 = vadd.f32 %v1277_v39, %v9727_v48  ;;  %v6309_v36 = vld [vmem:[%s9548_s0 + $0x20] sm:$0xff]  ;;  %v9733_v39 = vld [vmem:[#allocation48_spill] sm:$0xff] }
 0x3ab   :  { %9725 = vst [vmem:[#allocation40_spill] sm:$0xff] %v7752_v17  ;;  %5318 = vmatmul.msk.bf16.gmra.mxu0 %vm328_vm0, %v9728_v51  ;;  %v7759_v42 = vpop.f32.mrf.mxu3  ;;  %v9735_v17 = vld [vmem:[#allocation43_spill] sm:$0xff] }
 0x3ac   :  { %9729 = vst [vmem:[#allocation46_spill] sm:$0xff] %v7759_v42 }
 0x3af   :  { %v1763_v30 = vpop.f32.mrf.mxu2 }
 0x3b0   :  { %v1416_v9 = vpop.f32.mrf.mxu1  ;;  %v7762_v27 = vadd.f32 %v1763_v30, %v1540_v23  ;;  %v1279_v54 = vpop.f32.mrf.mxu0 }
 0x3b1   :  { %v1537_v10 = vadd.f32 %v1416_v9, %v9730_v6  ;;  %v7771_v48 = vadd.f32 %v1279_v54, %v9733_v39 }
 0x3b2   :  { %9731 = vst [vmem:[#allocation60_spill] sm:$0xff] %v7762_v27 }
 0x3b3   :  { %v7764_v40 = vadd.f32 %v1907_v26, %v1537_v10  ;;  %5344 = vmatmul.msk.bf16.vlgmr.msrb.gmra.mxu1 %vm328_vm0, %v6309_v36  ;;  %9734 = vst [vmem:[#allocation48_spill] sm:$0xff] %v7771_v48  ;;  %v1912_v51 = vpop.f32.mrf.mxu3  ;;  %v9738_v26 = vld [vmem:[#allocation50_spill] sm:$0xff]  ;;  %v6310_v10 = vld [vmem:[%s9548_s0 + $0x38] sm:$0xff] }
 0x3b4   :  { %v9740_v36 = vld [vmem:[#allocation45_spill] sm:$0xff] }
 0x3b5   :  { %9732 = vst [vmem:[#allocation42_spill] sm:$0xff] %v7764_v40 }
 0x3b7   :  { %v7776_v9 = vpop.f32.mrf.mxu2 }
 0x3b8   :  { %v1418_v42 = vpop.f32.mrf.mxu1  ;;  %9737 = vst [vmem:[#allocation83_spill] sm:$0xff] %v7776_v9  ;;  %v1282_v23 = vpop.f32.mrf.mxu0 }
 0x3b9   :  { %v7774_v0 = vadd.f32 %v1418_v42, %v9735_v17  ;;  %v1548_v6 = vadd.f32 %v1282_v23, %v9738_v26  ;;  %v6311_v23 = vld [vmem:[%s9548_s0 + $0x28] sm:$0xff]  ;;  %v9743_v26 = vld [vmem:[#allocation52_spill] sm:$0xff] }
 0x3bb   :  { %9736 = vst [vmem:[#allocation43_spill] sm:$0xff] %v7774_v0  ;;  %5319 = vmatmul.msk.bf16.gmra.mxu0 %vm328_vm0, %v6310_v10  ;;  %v7783_v30 = vpop.f32.mrf.mxu3 }
 0x3bc   :  { %9739 = vst [vmem:[#allocation50_spill] sm:$0xff] %v7783_v30 }
 0x3bf   :  { %v1768_v48 = vpop.f32.mrf.mxu2 }
 0x3c0   :  { %v1421_v54 = vpop.f32.mrf.mxu1  ;;  %v7786_v40 = vadd.f32 %v1768_v48, %v1544_v24  ;;  %v1284_v42 = vpop.f32.mrf.mxu0  ;;  %v9748_v48 = vld [vmem:[#allocation54_spill] sm:$0xff] }
 0x3c1   :  { %v1541_v39 = vadd.f32 %v1421_v54, %v9740_v36  ;;  %v7795_v0 = vadd.f32 %v1284_v42, %v9743_v26  ;;  %v6312_v36 = vld [vmem:[%s9548_s0 + $0x40] sm:$0xff] }
 0x3c2   :  { %9741 = vst [vmem:[#allocation45_spill] sm:$0xff] %v7786_v40 }
 0x3c3   :  { %v7788_v17 = vadd.f32 %v1912_v51, %v1541_v39  ;;  %5345 = vmatmul.msk.bf16.gmra.mxu1 %vm328_vm0, %v6311_v23  ;;  %9744 = vst [vmem:[#allocation52_spill] sm:$0xff] %v7795_v0  ;;  %v1917_v9 = vpop.f32.mrf.mxu3  ;;  %v9750_v23 = vld [vmem:[#allocation49_spill] sm:$0xff] }
 0x3c5   :  { %9742 = vst [vmem:[#allocation84_spill] sm:$0xff] %v7788_v17 }
 0x3c7   :  { %v7800_v54 = vpop.f32.mrf.mxu2 }
 0x3c8   :  { %v1423_v30 = vpop.f32.mrf.mxu1  ;;  %9747 = vst [vmem:[#allocation85_spill] sm:$0xff] %v7800_v54  ;;  %v1287_v24 = vpop.f32.mrf.mxu0 }
 0x3c9   :  { %v7798_v27 = vadd.f32 %v1423_v30, %v9745_v58  ;;  %v1552_v51 = vadd.f32 %v1287_v24, %v9748_v48  ;;  %v6313_v24 = vld [vmem:[%s9548_s0 + $0x30] sm:$0xff]  ;;  %v5422_v48 = vld [vmem:[%s9549_s3 + $0xc0] sm:$0xf] }
 0x3cb   :  { %9746 = vst [vmem:[#allocation47_spill] sm:$0xff] %v7798_v27  ;;  %5320 = vmatmul.msk.bf16.gmra.mxu0 %vm328_vm0, %v6312_v36  ;;  %v7807_v39 = vpop.f32.mrf.mxu3  ;;  %v9755_v27 = vld [vmem:[#allocation51_spill] sm:$0xff] }
 0x3cc   :  { %9749 = vst [vmem:[#allocation54_spill] sm:$0xff] %v7807_v39 }
 0x3cf   :  { %v1773_v0 = vpop.f32.mrf.mxu2 }
 0x3d0   :  { %v1426_v42 = vpop.f32.mrf.mxu1  ;;  %v7810_v17 = vadd.f32 %v1773_v0, %v1548_v6  ;;  %v1289_v30 = vpop.f32.mrf.mxu0  ;;  %v6160_v0 = vld [vmem:[%s9549_s3 + $0xc4] sm:$0xf] }
 0x3d1   :  { %v1545_v26 = vadd.f32 %v1426_v42, %v9750_v23  ;;  %v6161_v42 = vld [vmem:[%s9549_s3 + $0xc4] sm:$0xf0] }
 0x3d2   :  { %9751 = vst [vmem:[#allocation49_spill] sm:$0xff] %v7810_v17  ;;  %v5423_v23 = vor.u32 %v6161_v42, %v5422_v48 }
 0x3d3   :  { %v7812_v58 = vadd.f32 %v1917_v9, %v1545_v26  ;;  %5346 = vmatmul.msk.bf16.gmra.mxu1 %vm328_vm0, %v6313_v24  ;;  %v9753_v9 = vld [vmem:[#allocation57_spill] sm:$0xff]  ;;  %v5424_v26 = vld [vmem:[%s9549_s3 + $0xc8] sm:$0xf0]  ;;  %v1922_v39 = vpop.f32.mrf.mxu3 }
 0x3d4   :  { %v7828_v6 = vadd.f32 %v1289_v30, %v9753_v9  ;;  %v5427_v24 = vor.u32 %v6160_v0, %v5424_v26  ;;  %2898 = vmatpush.bf16.msra.mxu2 %v5423_v23  ;;  %v6314_v30 = vld [vmem:[%s9548_s0 + $0x48] sm:$0xff]  ;;  %v9760_v0 = vld [vmem:[#allocation53_spill] sm:$0xff] }
 0x3d5   :  { %9752 = vst [vmem:[#allocation86_spill] sm:$0xff] %v7812_v58 }
 0x3d6   :  { %9754 = vst [vmem:[#allocation57_spill] sm:$0xff] %v7828_v6  ;;  %2957 = vmatpush.bf16.msra.mxu3 %v5427_v24  ;;  %v9765_v6 = vld [vmem:[#allocation56_spill] sm:$0xff] }
 0x3d7   :  { %v7836_v17 = vpop.f32.mrf.mxu2 }
 0x3d8   :  { %v1428_v58 = vpop.f32.mrf.mxu1  ;;  %9757 = vst [vmem:[#allocation87_spill] sm:$0xff] %v7836_v17  ;;  %v1292_v40 = vpop.f32.mrf.mxu0 }
 0x3d9   :  { %v7834_v54 = vadd.f32 %v1428_v58, %v9755_v27  ;;  %v1556_v33 = vadd.f32 %v1292_v40, %v9758_v1  ;;  %v9763_v1 = vld [vmem:[#allocation62_spill] sm:$0xff] }
 0x3db   :  { %9756 = vst [vmem:[#allocation51_spill] sm:$0xff] %v7834_v54  ;;  %5321 = vmatmul.msk.bf16.gmra.mxu0 %vm328_vm0, %v6314_v30  ;;  %v7843_v48 = vpop.f32.mrf.mxu3 }
 0x3dc   :  { %9759 = vst [vmem:[#allocation59_spill] sm:$0xff] %v7843_v48 }
 0x3df   :  { %v1778_v23 = vpop.f32.mrf.mxu2 }
 0x3e0   :  { %v1431_v42 = vpop.f32.mrf.mxu1  ;;  %v7846_v26 = vadd.f32 %v1778_v23, %v1552_v51  ;;  %v1294_v58 = vpop.f32.mrf.mxu0  ;;  %v6315_v51 = vld [vmem:[%s9548_s0 + $0x50] sm:$0xff] }
 0x3e1   :  { %v1549_v9 = vadd.f32 %v1431_v42, %v9760_v0  ;;  %v7852_v40 = vadd.f32 %v1294_v58, %v9763_v1  ;;  %v9769_v0 = vld [vmem:[#allocation58_spill] sm:$0xff] }
 0x3e2   :  { %9761 = vst [vmem:[#allocation53_spill] sm:$0xff] %v7846_v26 }
 0x3e3   :  { %v7848_v27 = vadd.f32 %v1922_v39, %v1549_v9  ;;  %5347 = vmatmul.msk.bf16.gmra.mxu1 %vm328_vm0, %v6310_v10  ;;  %9764 = vst [vmem:[#allocation62_spill] sm:$0xff] %v7852_v40  ;;  %v1927_v24 = vpop.f32.mrf.mxu3  ;;  %v9773_v40 = vld [vmem:[#allocation61_spill] sm:$0xff] }
 0x3e5   :  { %9762 = vst [vmem:[#allocation88_spill] sm:$0xff] %v7848_v27  ;;  %v9776_v27 = vld [vmem:[#allocation67_spill] sm:$0xff] }
 0x3e7   :  { %v7857_v48 = vpop.f32.mrf.mxu2 }
 0x3e8   :  { %v1433_v54 = vpop.f32.mrf.mxu1  ;;  %9767 = vst [vmem:[#allocation89_spill] sm:$0xff] %v7857_v48  ;;  %v1297_v56 = vpop.f32.mrf.mxu0 }
 0x3e9   :  { %v7855_v17 = vadd.f32 %v1433_v54, %v9765_v6  ;;  %v1560_v42 = vadd.f32 %v1297_v56, %v7227_v19  ;;  %v9771_v19 = vld [vmem:[#allocation65_spill] sm:$0xff] }
 0x3eb   :  { %9766 = vst [vmem:[#allocation56_spill] sm:$0xff] %v7855_v17  ;;  %5322 = vmatmul.msk.bf16.gmra.mxu0 %vm328_vm0, %v6315_v51  ;;  %v7864_v10 = vpop.f32.mrf.mxu3 }
 0x3ec   :  { %9768 = vst [vmem:[#allocation90_spill] sm:$0xff] %v7864_v10  ;;  %v9775_v10 = vld [vmem:[#allocation2_spill] sm:$0xff] }
 0x3ed   :  { %v924_v26 = vadd.f32 %v9776_v27, %v9775_v10 }
 0x3ef   :  { %v1783_v23 = vpop.f32.mrf.mxu2 }
 0x3f0   :  { %v1436_v39 = vpop.f32.mrf.mxu1  ;;  %v7867_v58 = vadd.f32 %v1783_v23, %v1556_v33  ;;  %v1299_v6 = vpop.f32.mrf.mxu0 }
 0x3f1   :  { %v1553_v9 = vadd.f32 %v1436_v39, %v9769_v0  ;;  %v7873_v56 = vadd.f32 %v1299_v6, %v9771_v19  ;;  %v9779_v6 = vld [vmem:[#allocation3_spill] sm:$0xff]  ;;  %v9780_v19 = vld [vmem:[#allocation69_spill] sm:$0xff] }
 0x3f3   :  { %v7869_v54 = vadd.f32 %v1927_v24, %v1553_v9  ;;  %5348 = vmatmul.msk.bf16.gmra.mxu1 %vm328_vm0, %v6312_v36  ;;  %9772 = vst [vmem:[#allocation65_spill] sm:$0xff] %v7873_v56  ;;  %v1932_v17 = vpop.f32.mrf.mxu3  ;;  %v6316_v24 = vld [vmem:[%s9548_s0 + $0x58] sm:$0xff]  ;;  %v9778_v9 = vld [vmem:[#allocation63_spill] sm:$0xff] }
 0x3f5   :  { %9770 = vst [vmem:[#allocation58_spill] sm:$0xff] %v7869_v54  ;;  %v9783_v54 = vld [vmem:[#allocation64_spill] sm:$0xff] }
 0x3f7   :  { %v7880_v39 = vpop.f32.mrf.mxu2 }
 0x3f8   :  { %v1438_v1 = vpop.f32.mrf.mxu1  ;;  %9777 = vst [vmem:[#allocation2_spill] sm:$0xff] %v7880_v39  ;;  %v1302_v33 = vpop.f32.mrf.mxu0 }
 0x3f9   :  { %v7876_v48 = vadd.f32 %v1438_v1, %v9773_v40  ;;  %v1564_v0 = vadd.f32 %v1302_v33, %v924_v26  ;;  %v926_v40 = vadd.f32 %v9780_v19, %v9779_v6 }
 0x3fb   :  { %9774 = vst [vmem:[#allocation61_spill] sm:$0xff] %v7876_v48  ;;  %5323 = vmatmul.msk.bf16.gmra.mxu0 %vm328_vm0, %v6316_v24  ;;  %v7889_v48 = vpop.f32.mrf.mxu3 }
 0x3fc   :  { %9781 = vst [vmem:[#allocation67_spill] sm:$0xff] %v7889_v48 }
 0x3ff   :  { %v1788_v1 = vpop.f32.mrf.mxu2 }
 0x400   :  { %v1441_v36 = vpop.f32.mrf.mxu1  ;;  %v7891_v27 = vadd.f32 %v1788_v1, %v1560_v42  ;;  %v1304_v26 = vpop.f32.mrf.mxu0  ;;  %v6159_v42 = vld [vmem:[%s9549_s3 + $0xb4] sm:$0xf0] }
 0x401   :  { %v1557_v23 = vadd.f32 %v1441_v36, %v9778_v9  ;;  %v7896_v33 = vadd.f32 %v1304_v26, %v926_v40  ;;  %v5414_v36 = vld [vmem:[%s9549_s3 + $0xb0] sm:$0xf]  ;;  %v6317_v40 = vld [vmem:[%s9548_s0 + $0x60] sm:$0xff] }
 0x402   :  { %v9786_v26 = vld [vmem:[#allocation66_spill] sm:$0xff] }
 0x403   :  { %v7893_v10 = vadd.f32 %v1932_v17, %v1557_v23  ;;  %5349 = vmatmul.msk.bf16.gmra.mxu1 %vm328_vm0, %v6314_v30  ;;  %9782 = vst [vmem:[#allocation63_spill] sm:$0xff] %v7896_v33  ;;  %v6158_v17 = vld [vmem:[%s9549_s3 + $0xb4] sm:$0xf]  ;;  %v5415_v30 = vor.u32 %v6159_v42, %v5414_v36  ;;  %v1937_v19 = vpop.f32.mrf.mxu3 }
 0x405   :  { %2899 = vmatpush.bf16.msra.mxu2 %v5415_v30 }
 0x407   :  { %v7910_v9 = vpop.f32.mrf.mxu2 }
 0x408   :  { %v1443_v56 = vpop.f32.mrf.mxu1  ;;  %9785 = vst [vmem:[#allocation69_spill] sm:$0xff] %v7910_v9 }
 0x409   :  { %v7899_v39 = vadd.f32 %v1443_v56, %v9783_v54  ;;  %v5416_v54 = vld [vmem:[%s9549_s3 + $0xb8] sm:$0xf0]  ;;  %v2149_v56 = vpop.f32.mrf.mxu0 }
 0x40a   :  { %v5419_v23 = vor.u32 %v6158_v17, %v5416_v54  ;;  %v2438_v6 = vadd.f32 %v2149_v56, %v7260_v18  ;;  %v9787_v56 = vld [vmem:[#allocation68_spill] sm:$0xff] }
 0x40b   :  { %9784 = vst [vmem:[#allocation3_spill] sm:$0xff] %v7899_v39  ;;  %5324 = vmatmul.msk.bf16.gmra.mxu0 %vm328_vm0, %v6317_v40  ;;  %v7927_v30 = vpop.f32.mrf.mxu3 }
 0x40c   :  { %2958 = vmatpush.bf16.msra.mxu3 %v5419_v23 }
 0x40f   :  { %v1793_v42 = vpop.f32.mrf.mxu2 }
 0x410   :  { %v1446_v1 = vpop.f32.mrf.mxu1  ;;  %v7921_v48 = vadd.f32 %v1793_v42, %v1564_v0  ;;  %v6318_v0 = vld [vmem:[%s9548_s0 + $0x68] sm:$0xff] }
 0x411   :  { %v1561_v36 = vadd.f32 %v1446_v1, %v9786_v26  ;;  %v2151_v17 = vpop.f32.mrf.mxu0  ;;  %v9788_v26 = vld [vmem:[#allocation70_spill] sm:$0xff] }
 0x412   :  { %v2440_v18 = vadd.f32 %v2151_v17, %v7267_v4 }
 0x413   :  { %v7923_v39 = vadd.f32 %v1937_v19, %v1561_v36  ;;  %5350 = vmatmul.msk.bf16.gmra.mxu1 %vm328_vm0, %v6315_v51  ;;  %v1942_v51 = vpop.f32.mrf.mxu3 }
 0x418   :  { %v1448_v54 = vpop.f32.mrf.mxu1 }
 0x419   :  { %v7930_v23 = vadd.f32 %v1448_v54, %v9787_v56  ;;  %v2154_v33 = vpop.f32.mrf.mxu0  ;;  %v6319_v56 = vld [vmem:[%s9548_s0 + $0x70] sm:$0xff] }
 0x41a   :  { %v2442_v9 = vadd.f32 %v2154_v33, %v7288_v32  ;;  %v9789_v33 = vld [vmem:[#allocation71_spill] sm:$0xff] }
 0x41b   :  { %5325 = vmatmul.msk.bf16.gmra.mxu0 %vm328_vm0, %v6318_v0 }
 0x41c   :  { %v2550_v1 = vmax.f32 %v2438_v6, %v2442_v9 }
 0x420   :  { %v1451_v19 = vpop.f32.mrf.mxu1 }
 0x421   :  { %v1565_v4 = vadd.f32 %v1451_v19, %v9788_v26  ;;  %v2156_v42 = vpop.f32.mrf.mxu0 }
 0x422   :  { %v2444_v17 = vadd.f32 %v2156_v42, %v7296_v45 }
 0x423   :  { %v7938_v36 = vadd.f32 %v1942_v51, %v1565_v4  ;;  %5351 = vmatmul.msk.bf16.gmra.mxu1 %vm328_vm0, %v6316_v24 }
 0x424   :  { %v2552_v54 = vmax.f32 %v2440_v18, %v2444_v17 }
 0x428   :  { %v1453_v32 = vpop.f32.mrf.mxu1 }
 0x429   :  { %v7943_v9 = vadd.f32 %v1453_v32, %v9789_v33  ;;  %v2159_v6 = vpop.f32.mrf.mxu0 }
 0x42a   :  { %v7953_v4 = vadd.f32 %v2159_v6, %v7307_v13 }
 0x42b   :  { %9790 = vst [vmem:[#allocation64_spill] sm:$0xff] %v7943_v9  ;;  %5326 = vmatmul.msk.bf16.gmra.mxu0 %vm328_vm0, %v6319_v56 }
 0x430   :  { %v2298_v19 = vpop.f32.mrf.mxu1 }
 0x431   :  { %v2439_v51 = vadd.f32 %v2298_v19, %v7290_v20  ;;  %v2161_v26 = vpop.f32.mrf.mxu0  ;;  %v7963_v20 = vld [vmem:[%s9548_s0 + $0x78] sm:$0xff]  ;;  %v7978_v19 = vld [vmem:[%s9550_s2] ss:$0 sm:$0xff] }
 0x433   :  { %5352 = vmatmul.msk.bf16.gmra.mxu1 %vm328_vm0, %v6317_v40 }
 0x438   :  { %v2300_v24 = vpop.f32.mrf.mxu1 }
 0x439   :  { %v2441_v45 = vadd.f32 %v2300_v24, %v7298_v47  ;;  %v2164_v18 = vpop.f32.mrf.mxu0 }
 0x43a   :  { %v7956_v42 = vadd.f32 %v2164_v18, %v7326_v59  ;;  %v7970_v59 = vadd.f32 %v2161_v26, %v7315_v53  ;;  %v6156_v26 = vld [vmem:[%s9549_s3 + $0xa4] sm:$0xf] }
 0x43b   :  { %5327 = vmatmul.msk.bf16.gmra.mxu0 %vm328_vm0, %v7963_v20 }
 0x440   :  { %v2303_v40 = vpop.f32.mrf.mxu1 }
 0x441   :  { %v2443_v47 = vadd.f32 %v2303_v40, %v7309_v49  ;;  %v2166_v13 = vpop.f32.mrf.mxu0 }
 0x442   :  { %v7973_v33 = vadd.f32 %v2166_v13, %v7334_v34  ;;  %v5406_v34 = vld [vmem:[%s9549_s3 + $0xa0] sm:$0xf] }
 0x443   :  { %v2551_v32 = vmax.f32 %v2439_v51, %v2443_v47  ;;  %5353 = vmatmul.msk.bf16.gmra.mxu1 %vm328_vm0, %v6318_v0 }
 0x445   :  { %v2606_v6 = vmax.f32 %v2550_v1, %v2551_v32  ;;  %v6157_v1 = vld [vmem:[%s9549_s3 + $0xa4] sm:$0xf0] }
 0x446   :  { %v5407_v32 = vor.u32 %v6157_v1, %v5406_v34 }
 0x447   :  { %v2638_v51 = vadd.f32 %v7978_v19, %v2606_v6 }
 0x448   :  { %v2305_v49 = vpop.f32.mrf.mxu1  ;;  %2900 = vmatpush.bf16.msra.mxu2 %v5407_v32 }
 0x449   :  { %v2445_v0 = vadd.f32 %v2305_v49, %v7317_v63  ;;  %v2169_v53 = vpop.f32.mrf.mxu0  ;;  %v2666_v40 = vmax.f32 %v2638_v51, 0.0  ;;  %v5408_v63 = vld [vmem:[%s9549_s3 + $0xa8] sm:$0xf0]  ;;  %v6155_v51 = vld [vmem:[%s9549_s3 + $0x94] sm:$0xf0] }
 0x44a   :  { %v5411_v13 = vor.u32 %v6156_v26, %v5408_v63  ;;  %v5400_v26 = vld [vmem:[%s9549_s3 + $0x98] sm:$0xf0]  ;;  %v2454_v24 = vadd.f32 %v2169_v53, %v7345_v15 }
 0x44b   :  { %v2553_v18 = vmax.f32 %v2441_v45, %v2445_v0  ;;  %v7999_v45 = vld [vmem:[%s9548_s0 + $0x80] sm:$0xff]  ;;  %v6154_v0 = vld [vmem:[%s9549_s3 + $0x94] sm:$0xf] }
 0x44c   :  { %5328 = vmatmul.msk.bf16.gmra.mxu0 %vm328_vm0, %v7999_v45  ;;  %2959 = vmatpush.bf16.msra.mxu3 %v5411_v13  ;;  %v5390_v13 = vld [vmem:[%s9549_s3 + $0x80] sm:$0xf] }
 0x44d   :  { %v2607_v47 = vmax.f32 %v2552_v54, %v2553_v18  ;;  %v5398_v54 = vld [vmem:[%s9549_s3 + $0x90] sm:$0xf]  ;;  %v2694_v18 = vpack.c.bf16 %v2666_v40, %v2666_v40  ;;  %v6153_v40 = vld [vmem:[%s9549_s3 + $0x84] sm:$0xf0] }
 0x44e   :  { %v5399_v1 = vor.u32 %v6155_v51, %v5398_v54 }
 0x44f   :  { %v2639_v6 = vadd.f32 %v7978_v19, %v2607_v47  ;;  %v5403_v47 = vor.u32 %v6154_v0, %v5400_v26  ;;  %v3015_v54 = vunpack.c.l.b16 %v2694_v18  ;;  %v5391_v0 = vor.u32 %v6153_v40, %v5390_v13  ;;  %v6322_v18 = vld [vmem:[%s9548_s0 + $0x88] sm:$0xff] }
 0x450   :  { %v2308_v49 = vpop.f32.mrf.mxu1  ;;  %2901 = vmatpush.bf16.msra.mxu2 %v5399_v1 }
 0x451   :  { %v2667_v34 = vmax.f32 %v2639_v6, 0.0  ;;  %v2171_v63 = vpop.f32.mrf.mxu0  ;;  %2960 = vmatpush.bf16.msra.mxu3 %v5403_v47  ;;  %v6152_v6 = vld [vmem:[%s9549_s3 + $0x84] sm:$0xf]  ;;  %v2447_v13 = vadd.f32 %v2308_v49, %v7328_v8 }
 0x452   :  { %v2456_v15 = vadd.f32 %v2171_v63, %v7353_v28  ;;  %v9792_v28 = vmax.f32 %v7970_v59, %v7973_v33 }
 0x453   :  { %v2695_v32 = vpack.c.bf16 %v2667_v34, %v2667_v34  ;;  %5354 = vmatmul.msk.bf16.gmra.mxu1 %vm328_vm0, %v6319_v56  ;;  %v5392_v56 = vld [vmem:[%s9549_s3 + $0x88] sm:$0xf0] }
 0x454   :  { %v5395_v34 = vor.u32 %v6152_v6, %v5392_v56  ;;  %2902 = vmatpush.bf16.msra.mxu2 %v5391_v0 }
 0x455   :  { %v3016_v51 = vunpack.c.l.b16 %v2695_v32 }
 0x456   :  { %2961 = vmatpush.bf16.msra.mxu3 %v5395_v34 }
 0x457   :  { %v8029_v1 = vpack.c.b16 %v3016_v51, %v3015_v54 }
 0x458   :  { %v2310_v26 = vpop.f32.mrf.mxu1 }
 0x459   :  { %v2174_v47 = vpop.f32.mrf.mxu0  ;;  %v2449_v0 = vadd.f32 %v2310_v26, %v7336_v12 }
 0x45a   :  { %v2458_v17 = vadd.f32 %v2174_v47, %v7364_v35 }
 0x45c   :  { %v2558_v9 = vmax.f32 %v2454_v24, %v2458_v17  ;;  %5329 = vmatmul.msk.bf16.gmra.mxu0 %vm328_vm0, %v6322_v18  ;;  %v9791_v17 = vmax.f32 %v7953_v4, %v7956_v42 }
 0x460   :  { %v2313_v32 = vpop.f32.mrf.mxu1 }
 0x461   :  { %v2451_v40 = vadd.f32 %v2313_v32, %v7347_v25  ;;  %v2176_v54 = vpop.f32.mrf.mxu0 }
 0x462   :  { %v2460_v35 = vadd.f32 %v2176_v54, %v7384_v38  ;;  %v6323_v38 = vld [vmem:[%s9548_s0 + $0x90] sm:$0xff] }
 0x463   :  { %v2555_v6 = vmax.f32 %v2447_v13, %v2451_v40  ;;  %5355 = vmatmul.msk.bf16.gmra.mxu1 %vm328_vm0, %v7963_v20 }
 0x464   :  { %v2560_v53 = vmax.f32 %v2456_v15, %v2460_v35  ;;  %v6324_v15 = vld [vmem:[%s9548_s0 + $0x98] sm:$0xff] }
 0x465   :  { %v2608_v24 = vmax.f32 %v9791_v17, %v2555_v6 }
 0x467   :  { %v2640_v8 = vadd.f32 %v7978_v19, %v2608_v24 }
 0x468   :  { %v2315_v51 = vpop.f32.mrf.mxu1 }
 0x469   :  { %v2453_v25 = vadd.f32 %v2315_v51, %v7355_v31  ;;  %v2179_v56 = vpop.f32.mrf.mxu0  ;;  %v2668_v34 = vmax.f32 %v2640_v8, 0.0 }
 0x46a   :  { %v2462_v40 = vadd.f32 %v2179_v56, %v7395_v52 }
 0x46b   :  { %v2557_v49 = vmax.f32 %v2449_v0, %v2453_v25  ;;  %v2696_v42 = vpack.c.bf16 %v2668_v34, %v2668_v34 }
 0x46c   :  { %5330 = vmatmul.msk.bf16.gmra.mxu0 %vm328_vm0, %v6323_v38 }
 0x46d   :  { %v2609_v20 = vmax.f32 %v9792_v28, %v2557_v49  ;;  %v2775_v47 = vunpack.c.l.b16 %v2696_v42 }
 0x46f   :  { %v2641_v4 = vadd.f32 %v7978_v19, %v2609_v20 }
 0x470   :  { %v2318_v12 = vpop.f32.mrf.mxu1 }
 0x471   :  { %v2669_v63 = vmax.f32 %v2641_v4, 0.0  ;;  %v2181_v31 = vpop.f32.mrf.mxu0  ;;  %v2455_v35 = vadd.f32 %v2318_v12, %v7366_v44 }
 0x472   :  { %v2464_v52 = vadd.f32 %v2181_v31, %v7403_v22 }
 0x473   :  { %v2697_v26 = vpack.c.bf16 %v2669_v63, %v2669_v63  ;;  %5356 = vmatmul.msk.bf16.gmra.mxu1 %vm328_vm0, %v7999_v45 }
 0x475   :  { %v2776_v32 = vunpack.c.l.b16 %v2697_v26 }
 0x477   :  { %v8059_v59 = vpack.c.b16 %v2776_v32, %v2775_v47 }
 0x478   :  { %v2320_v33 = vpop.f32.mrf.mxu1 }
 0x479   :  { %2903 = vmatmul.bf16.vlgmr.msra.gmra.mxu2 %v8059_v59  ;;  %2962 = vmatmul.bf16.vlgmr.msra.gmra.mxu3 %v8059_v59  ;;  %v2184_v13 = vpop.f32.mrf.mxu0  ;;  %v2457_v49 = vadd.f32 %v2320_v33, %v7386_v41  ;;  %v6326_v33 = vld [vmem:[%s9548_s0 + $0xa8] sm:$0xff] }
 0x47a   :  { %v2466_v6 = vadd.f32 %v2184_v13, %v7414_v16 }
 0x47c   :  { %v2562_v54 = vmax.f32 %v2462_v40, %v2466_v6  ;;  %5331 = vmatmul.msk.bf16.gmra.mxu0 %vm328_vm0, %v6324_v15 }
 0x480   :  { %v2323_v45 = vpop.f32.mrf.mxu1 }
 0x481   :  { %v2459_v17 = vadd.f32 %v2323_v45, %v7397_v2  ;;  %v2186_v51 = vpop.f32.mrf.mxu0 }
 0x482   :  { %v2468_v16 = vadd.f32 %v2186_v51, %v7422_v37  ;;  %v9793_v51 = vld [vmem:[#allocation72_spill] sm:$0xff] }
 0x483   :  { %v2559_v24 = vmax.f32 %v2455_v35, %v2459_v17  ;;  %5357 = vmatmul.msk.bf16.gmra.mxu1 %vm328_vm0, %v6322_v18  ;;  %v6325_v18 = vld [vmem:[%s9548_s0 + $0xa0] sm:$0xff] }
 0x484   :  { %v2564_v8 = vmax.f32 %v2464_v52, %v2468_v16 }
 0x485   :  { %v2610_v0 = vmax.f32 %v2558_v9, %v2559_v24 }
 0x487   :  { %v2642_v56 = vadd.f32 %v7978_v19, %v2610_v0  ;;  %v9794_v0 = vld [vmem:[#allocation73_spill] sm:$0xff] }
 0x488   :  { %v2325_v25 = vpop.f32.mrf.mxu1 }
 0x489   :  { %v2461_v34 = vadd.f32 %v2325_v25, %v7405_v11  ;;  %v2189_v28 = vpop.f32.mrf.mxu0  ;;  %v2670_v2 = vmax.f32 %v2642_v56, 0.0 }
 0x48a   :  { %v2470_v31 = vadd.f32 %v2189_v28, %v7433_v43 }
 0x48b   :  { %v2561_v44 = vmax.f32 %v2457_v49, %v2461_v34  ;;  %v2698_v9 = vpack.c.bf16 %v2670_v2, %v2670_v2 }
 0x48c   :  { %5332 = vmatmul.msk.bf16.gmra.mxu0 %vm328_vm0, %v6325_v18 }
 0x48d   :  { %v2611_v20 = vmax.f32 %v2560_v53, %v2561_v44  ;;  %v2777_v11 = vunpack.c.l.b16 %v2698_v9 }
 0x48f   :  { %v2643_v22 = vadd.f32 %v7978_v19, %v2611_v20 }
 0x490   :  { %v2328_v37 = vpop.f32.mrf.mxu1 }
 0x491   :  { %v2671_v4 = vmax.f32 %v2643_v22, 0.0  ;;  %v2191_v12 = vpop.f32.mrf.mxu0  ;;  %v2463_v13 = vadd.f32 %v2328_v37, %v7416_v50 }
 0x492   :  { %v2472_v43 = vadd.f32 %v2191_v12, %v7441_v5  ;;  %v6328_v12 = vld [vmem:[%s9548_s0 + $0xb8] sm:$0xff] }
 0x493   :  { %v2699_v41 = vpack.c.bf16 %v2671_v4, %v2671_v4  ;;  %5358 = vmatmul.msk.bf16.gmra.mxu1 %vm328_vm0, %v6323_v38 }
 0x495   :  { %v2778_v42 = vunpack.c.l.b16 %v2699_v41 }
 0x497   :  { %v8083_v63 = vpack.c.b16 %v2778_v42, %v2777_v11  ;;  %v9795_v11 = vld [vmem:[#allocation74_spill] sm:$0xff] }
 0x498   :  { %v2330_v53 = vpop.f32.mrf.mxu1 }
 0x499   :  { %2908 = vmatmul.bf16.gmra.mxu2 %v8083_v63  ;;  %2967 = vmatmul.bf16.gmra.mxu3 %v8083_v63  ;;  %v2194_v26 = vpop.f32.mrf.mxu0  ;;  %v2465_v52 = vadd.f32 %v2330_v53, %v9793_v51  ;;  %v9796_v53 = vld [vmem:[#allocation76_spill] sm:$0xff] }
 0x49a   :  { %v2474_v47 = vadd.f32 %v2194_v26, %v7452_v3 }
 0x49c   :  { %v2566_v32 = vmax.f32 %v2470_v31, %v2474_v47  ;;  %5333 = vmatmul.msk.bf16.gmra.mxu0 %vm328_vm0, %v6326_v33 }
 0x4a0   :  { %v2333_v38 = vpop.f32.mrf.mxu1 }
 0x4a1   :  { %v2467_v40 = vadd.f32 %v2333_v38, %v7435_v55  ;;  %v2196_v45 = vpop.f32.mrf.mxu0  ;;  %v9797_v38 = vld [vmem:[#allocation7_spill] sm:$0xff] }
 0x4a2   :  { %v2476_v3 = vadd.f32 %v2196_v45, %v7460_v60 }
 0x4a3   :  { %v2563_v6 = vmax.f32 %v2463_v13, %v2467_v40  ;;  %5359 = vmatmul.msk.bf16.gmra.mxu1 %vm328_vm0, %v6324_v15  ;;  %v6327_v15 = vld [vmem:[%s9548_s0 + $0xb0] sm:$0xff]  ;;  %v9798_v13 = vld [vmem:[#allocation5_spill] sm:$0xff] }
 0x4a4   :  { %v2568_v17 = vmax.f32 %v2472_v43, %v2476_v3  ;;  %v9799_v43 = vld [vmem:[#allocation75_spill] sm:$0xff] }
 0x4a5   :  { %v2612_v35 = vmax.f32 %v2562_v54, %v2563_v6 }
 0x4a7   :  { %v2644_v16 = vadd.f32 %v7978_v19, %v2612_v35 }
 0x4a8   :  { %v2335_v24 = vpop.f32.mrf.mxu1 }
 0x4a9   :  { %v2469_v25 = vadd.f32 %v2335_v24, %v9794_v0  ;;  %v2199_v49 = vpop.f32.mrf.mxu0  ;;  %v2672_v55 = vmax.f32 %v2644_v16, 0.0  ;;  %v9800_v24 = vld [vmem:[#allocation4_spill] sm:$0xff] }
 0x4aa   :  { %v2478_v9 = vadd.f32 %v2199_v49, %v7483_v14 }
 0x4ab   :  { %v2565_v50 = vmax.f32 %v2465_v52, %v2469_v25  ;;  %v2700_v54 = vpack.c.bf16 %v2672_v55, %v2672_v55 }
 0x4ac   :  { %5334 = vmatmul.msk.bf16.gmra.mxu0 %vm328_vm0, %v6327_v15 }
 0x4ad   :  { %v2613_v56 = vmax.f32 %v2564_v8, %v2565_v50  ;;  %v2779_v2 = vunpack.c.l.b16 %v2700_v54 }
 0x4af   :  { %v2645_v5 = vadd.f32 %v7978_v19, %v2613_v56 }
 0x4b0   :  { %v2338_v60 = vpop.f32.mrf.mxu1 }
 0x4b1   :  { %v2673_v34 = vmax.f32 %v2645_v5, 0.0  ;;  %v2201_v28 = vpop.f32.mrf.mxu0  ;;  %v2471_v42 = vadd.f32 %v2338_v60, %v9795_v11  ;;  %v9804_v11 = vld [vmem:[#allocation13_spill] sm:$0xff] }
 0x4b2   :  { %v2480_v14 = vadd.f32 %v2201_v28, %v9797_v38  ;;  %v9801_v28 = vld [vmem:[#allocation6_spill] sm:$0xff]  ;;  %v9806_v38 = vld [vmem:[#allocation12_spill] sm:$0xff] }
 0x4b3   :  { %v2701_v44 = vpack.c.bf16 %v2673_v34, %v2673_v34  ;;  %5360 = vmatmul.msk.bf16.gmra.mxu1 %vm328_vm0, %v6325_v18 }
 0x4b5   :  { %v2780_v20 = vunpack.c.l.b16 %v2701_v44 }
 0x4b7   :  { %v8107_v22 = vpack.c.b16 %v2780_v20, %v2779_v2  ;;  %v9802_v20 = vld [vmem:[#allocation10_spill] sm:$0xff] }
 0x4b8   :  { %v2340_v8 = vpop.f32.mrf.mxu1 }
 0x4b9   :  { %2913 = vmatmul.bf16.gmra.mxu2 %v8107_v22  ;;  %2972 = vmatmul.bf16.gmra.mxu3 %v8107_v22  ;;  %v2204_v37 = vpop.f32.mrf.mxu0  ;;  %v2473_v3 = vadd.f32 %v2340_v8, %v9799_v43 }
 0x4ba   :  { %v2482_v4 = vadd.f32 %v2204_v37, %v7502_v21 }
 0x4bc   :  { %v2570_v41 = vmax.f32 %v2478_v9, %v2482_v4  ;;  %5335 = vmatmul.msk.bf16.gmra.mxu0 %vm328_vm0, %v6328_v12  ;;  %v9803_v4 = vld [vmem:[#allocation9_spill] sm:$0xff] }
 0x4c0   :  { %v2343_v18 = vpop.f32.mrf.mxu1 }
 0x4c1   :  { %v2475_v26 = vadd.f32 %v2343_v18, %v9796_v53  ;;  %v2206_v47 = vpop.f32.mrf.mxu0 }
 0x4c2   :  { %v2484_v21 = vadd.f32 %v2206_v47, %v9798_v13 }
 0x4c3   :  { %v2567_v31 = vmax.f32 %v2471_v42, %v2475_v26  ;;  %5361 = vmatmul.msk.bf16.gmra.mxu1 %vm328_vm0, %v6326_v33  ;;  %v6329_v33 = vld [vmem:[%s9548_s0 + $0xc0] sm:$0xff] }
 0x4c4   :  { %v2572_v6 = vmax.f32 %v2480_v14, %v2484_v21 }
 0x4c5   :  { %v2614_v40 = vmax.f32 %v2566_v32, %v2567_v31  ;;  %v9805_v31 = vld [vmem:[#allocation8_spill] sm:$0xff] }
 0x4c7   :  { %v2646_v35 = vadd.f32 %v7978_v19, %v2614_v40 }
 0x4c8   :  { %v2345_v45 = vpop.f32.mrf.mxu1 }
 0x4c9   :  { %v2477_v51 = vadd.f32 %v2345_v45, %v9800_v24  ;;  %v2209_v16 = vpop.f32.mrf.mxu0  ;;  %v2674_v0 = vmax.f32 %v2646_v35, 0.0  ;;  %v9807_v45 = vld [vmem:[#allocation11_spill] sm:$0xff] }
 0x4ca   :  { %v8136_v2 = vadd.f32 %v2209_v16, %v9801_v28  ;;  %v9808_v35 = vld [vmem:[#allocation15_spill] sm:$0xff] }
 0x4cb   :  { %v2569_v52 = vmax.f32 %v2473_v3, %v2477_v51  ;;  %v2702_v49 = vpack.c.bf16 %v2674_v0, %v2674_v0 }
 0x4cc   :  { %5336 = vmatmul.msk.bf16.gmra.mxu0 %vm328_vm0, %v6329_v33 }
 0x4cd   :  { %v2615_v25 = vmax.f32 %v2568_v17, %v2569_v52  ;;  %v2781_v60 = vunpack.c.l.b16 %v2702_v49 }
 0x4cf   :  { %v2647_v32 = vadd.f32 %v7978_v19, %v2615_v25 }
 0x4d0   :  { %v2348_v50 = vpop.f32.mrf.mxu1 }
 0x4d1   :  { %v2675_v55 = vmax.f32 %v2647_v32, 0.0  ;;  %v2211_v5 = vpop.f32.mrf.mxu0  ;;  %v2479_v18 = vadd.f32 %v2348_v50, %v9803_v4 }
 0x4d2   :  { %v8151_v47 = vadd.f32 %v2211_v5, %v9805_v31 }
 0x4d3   :  { %v2703_v56 = vpack.c.bf16 %v2675_v55, %v2675_v55  ;;  %5362 = vmatmul.msk.bf16.gmra.mxu1 %vm328_vm0, %v6327_v15  ;;  %v6330_v15 = vld [vmem:[%s9548_s0 + $0xc8] sm:$0xff] }
 0x4d5   :  { %v2782_v54 = vunpack.c.l.b16 %v2703_v56 }
 0x4d7   :  { %v8131_v34 = vpack.c.b16 %v2782_v54, %v2781_v60  ;;  %v6150_v60 = vld [vmem:[%s9549_s3 + $0x74] sm:$0xf] }
 0x4d8   :  { %v2350_v17 = vpop.f32.mrf.mxu1 }
 0x4d9   :  { %2918 = vmatmul.bf16.gmra.mxu2 %v8131_v34  ;;  %2977 = vmatmul.bf16.gmra.mxu3 %v8131_v34  ;;  %v2214_v44 = vpop.f32.mrf.mxu0  ;;  %v2481_v43 = vadd.f32 %v2350_v17, %v9807_v45 }
 0x4da   :  { %v8139_v8 = vadd.f32 %v2214_v44, %v9802_v20 }
 0x4dc   :  { %v2574_v37 = vmax.f32 %v8136_v2, %v8139_v8  ;;  %5337 = vmatmul.msk.bf16.gmra.mxu0 %vm328_vm0, %v6330_v15  ;;  %v6199_v2 = vld [vmem:[%s9549_s3 + $0x1f4] sm:$0xf0]  ;;  %v8234_v8 = vld [vmem:[%s9548_s0 + $0xe0] sm:$0xff] }
 0x4e0   :  { %v2353_v9 = vpop.f32.mrf.mxu1 }
 0x4e1   :  { %v2483_v42 = vadd.f32 %v2353_v9, %v9804_v11  ;;  %v2216_v26 = vpop.f32.mrf.mxu0  ;;  %v5502_v11 = vld [vmem:[%s9549_s3 + $0x60] sm:$0xf] }
 0x4e2   :  { %v8154_v14 = vadd.f32 %v2216_v26, %v9806_v38 }
 0x4e3   :  { %v2571_v53 = vmax.f32 %v2479_v18, %v2483_v42  ;;  %5363 = vmatmul.msk.bf16.gmra.mxu1 %vm328_vm0, %v6328_v12  ;;  %v8192_v18 = vld [vmem:[%s9548_s0 + $0xd8] sm:$0xff] }
 0x4e4   :  { %v2576_v21 = vmax.f32 %v8151_v47, %v8154_v14  ;;  %v9809_v47 = vld [vmem:[#allocation17_spill] sm:$0xff]  ;;  %v9810_v14 = vld [vmem:[#allocation14_spill] sm:$0xff] }
 0x4e5   :  { %v2616_v13 = vmax.f32 %v2570_v41, %v2571_v53  ;;  %v5504_v53 = vld [vmem:[%s9549_s3 + $0x68] sm:$0xf0] }
 0x4e7   :  { %v2648_v3 = vadd.f32 %v7978_v19, %v2616_v13 }
 0x4e8   :  { %v2355_v40 = vpop.f32.mrf.mxu1 }
 0x4e9   :  { %v2485_v24 = vadd.f32 %v2355_v40, %v9808_v35  ;;  %v2219_v52 = vpop.f32.mrf.mxu0  ;;  %v2676_v12 = vmax.f32 %v2648_v3, 0.0 }
 0x4ea   :  { %v8182_v20 = vadd.f32 %v2219_v52, %v7571_v61  ;;  %v6149_v61 = vld [vmem:[%s9549_s3 + $0x64] sm:$0xf0] }
 0x4eb   :  { %v2573_v51 = vmax.f32 %v2481_v43, %v2485_v24  ;;  %v2704_v25 = vpack.c.bf16 %v2676_v12, %v2676_v12  ;;  %v5503_v42 = vor.u32 %v6149_v61, %v5502_v11  ;;  %v9811_v43 = vld [vmem:[#allocation21_spill] sm:$0xff]  ;;  %v9812_v12 = vld [vmem:[#allocation19_spill] sm:$0xff]  ;;  %v5654_v61 = vld [vmem:[%s9549_s3 + $0x1d0] sm:$0xf] }
 0x4ec   :  { %5338 = vmatmul.msk.bf16.gmra.mxu0 %vm328_vm0, %v7599_v29  ;;  %v6151_v29 = vld [vmem:[%s9549_s3 + $0x74] sm:$0xf0] }
 0x4ed   :  { %v2617_v16 = vmax.f32 %v2572_v6, %v2573_v51  ;;  %v2783_v55 = vunpack.c.l.b16 %v2704_v25  ;;  %v5510_v6 = vld [vmem:[%s9549_s3 + $0x70] sm:$0xf] }
 0x4ee   :  { %v5511_v17 = vor.u32 %v6151_v29, %v5510_v6  ;;  %v5662_v29 = vld [vmem:[%s9549_s3 + $0x1e0] sm:$0xf] }
 0x4ef   :  { %v2649_v0 = vadd.f32 %v7978_v19, %v2617_v16 }
 0x4f0   :  { %v2358_v41 = vpop.f32.mrf.mxu1  ;;  %3099 = vmatpush.bf16.msrb.mxu2 %v5511_v17 }
 0x4f1   :  { %v2677_v32 = vmax.f32 %v2649_v0, 0.0  ;;  %v2221_v49 = vpop.f32.mrf.mxu0  ;;  %v2487_v38 = vadd.f32 %v2358_v41, %v9809_v47  ;;  %v9813_v41 = vld [vmem:[#allocation16_spill] sm:$0xff] }
 0x4f2   :  { %v8212_v3 = vadd.f32 %v2221_v49, %v9811_v43  ;;  %v5494_v47 = vld [vmem:[%s9549_s3 + $0x50] sm:$0xf] }
 0x4f3   :  { %v2705_v50 = vpack.c.bf16 %v2677_v32, %v2677_v32  ;;  %5364 = vmatmul.msk.bf16.gmra.mxu1 %vm328_vm0, %v6329_v33  ;;  %v5512_v33 = vld [vmem:[%s9549_s3 + $0x78] sm:$0xf0] }
 0x4f4   :  { %v5515_v44 = vor.u32 %v6150_v60, %v5512_v33  ;;  %3100 = vmatpush.bf16.msrb.mxu2 %v5503_v42  ;;  %v6197_v60 = vld [vmem:[%s9549_s3 + $0x1e4] sm:$0xf0] }
 0x4f5   :  { %v2784_v56 = vunpack.c.l.b16 %v2705_v50 }
 0x4f6   :  { %3158 = vmatpush.bf16.msrb.mxu3 %v5515_v44  ;;  %v6333_v44 = vld [vmem:[%s9548_s0 + $0xd0] sm:$0xff] }
 0x4f7   :  { %v8165_v5 = vpack.c.b16 %v2784_v56, %v2783_v55 }
 0x4f8   :  { %v2360_v54 = vpop.f32.mrf.mxu1 }
 0x4f9   :  { %2923 = vmatmul.bf16.gmra.mxu2 %v8165_v5  ;;  %2982 = vmatmul.bf16.gmra.mxu3 %v8165_v5  ;;  %v2224_v28 = vpop.f32.mrf.mxu0  ;;  %v2489_v16 = vadd.f32 %v2360_v54, %v9812_v12  ;;  %v5663_v54 = vor.u32 %v6197_v60, %v5662_v29  ;;  %v6193_v12 = vld [vmem:[%s9549_s3 + $0x1c4] sm:$0xf0]  ;;  %v5630_v29 = vld [vmem:[%s9549_s3 + $0x1a0] sm:$0xf] }
 0x4fa   :  { %v8185_v9 = vadd.f32 %v2224_v28, %v7606_v7  ;;  %v6148_v7 = vld [vmem:[%s9549_s3 + $0x64] sm:$0xf]  ;;  %v6189_v60 = vld [vmem:[%s9549_s3 + $0x1a4] sm:$0xf0] }
 0x4fb   :  { %v5507_v31 = vor.u32 %v6148_v7, %v5504_v53  ;;  %v6195_v7 = vld [vmem:[%s9549_s3 + $0x1d4] sm:$0xf0] }
 0x4fc   :  { %v2578_v4 = vmax.f32 %v8182_v20, %v8185_v9  ;;  %5339 = vmatmul.msk.bf16.gmra.mxu0 %vm328_vm0, %v8192_v18  ;;  %v5655_v42 = vor.u32 %v6195_v7, %v5654_v61  ;;  %v5631_v7 = vor.u32 %v6189_v60, %v5630_v29  ;;  %v9822_v20 = vld [vmem:[#allocation29_spill] sm:$0xff] }
 0x4fd   :  { %3159 = vmatpush.bf16.msrb.mxu3 %v5507_v31  ;;  %v5672_v31 = vld [vmem:[%s9549_s3 + $0x1f8] sm:$0xf0] }
 0x500   :  { %v2363_v26 = vpop.f32.mrf.mxu1 }
 0x501   :  { %v2491_v13 = vadd.f32 %v2363_v26, %v9810_v14  ;;  %v2226_v45 = vpop.f32.mrf.mxu0  ;;  %v6198_v26 = vld [vmem:[%s9549_s3 + $0x1f4] sm:$0xf] }
 0x502   :  { %v8215_v35 = vadd.f32 %v2226_v45, %v7617_v62  ;;  %v5670_v62 = vld [vmem:[%s9549_s3 + $0x1f0] sm:$0xf]  ;;  %v5675_v14 = vor.u32 %v6198_v26, %v5672_v31  ;;  %v5496_v45 = vld [vmem:[%s9549_s3 + $0x58] sm:$0xf0] }
 0x503   :  { %v2575_v40 = vmax.f32 %v2487_v38, %v2491_v13  ;;  %5365 = vmatmul.msk.bf16.gmra.mxu1 %vm328_vm0, %v6330_v15  ;;  %v6147_v13 = vld [vmem:[%s9549_s3 + $0x54] sm:$0xf0] }
 0x504   :  { %v2580_v51 = vmax.f32 %v8212_v3, %v8215_v35  ;;  %v5495_v43 = vor.u32 %v6147_v13, %v5494_v47  ;;  %3640 = vmatpush.bf16.msra.mxu1 %v5675_v14  ;;  %v5622_v14 = vld [vmem:[%s9549_s3 + $0x190] sm:$0xf]  ;;  %v6187_v13 = vld [vmem:[%s9549_s3 + $0x194] sm:$0xf0]  ;;  %v5488_v35 = vld [vmem:[%s9549_s3 + $0x48] sm:$0xf0] }
 0x505   :  { %v2618_v24 = vmax.f32 %v2574_v37, %v2575_v40  ;;  %v5671_v37 = vor.u32 %v6199_v2, %v5670_v62  ;;  %v6146_v40 = vld [vmem:[%s9549_s3 + $0x54] sm:$0xf] }
 0x506   :  { %3101 = vmatpush.bf16.msrb.mxu2 %v5495_v43  ;;  %v9821_v43 = vld [vmem:[#allocation25_spill] sm:$0xff] }
 0x507   :  { %v2650_v0 = vadd.f32 %v7978_v19, %v2618_v24  ;;  %3581 = vmatpush.bf16.msrb.mxu0 %v5671_v37  ;;  %v5499_v24 = vor.u32 %v6146_v40, %v5496_v45  ;;  %v9815_v37 = vld [vmem:[#allocation23_spill] sm:$0xff] }
 0x508   :  { %v2365_v52 = vpop.f32.mrf.mxu1 }
 0x509   :  { %v2493_v15 = vadd.f32 %v2365_v52, %v9813_v41  ;;  %v2229_v32 = vpop.f32.mrf.mxu0  ;;  %v2678_v50 = vmax.f32 %v2650_v0, 0.0  ;;  %v5646_v52 = vld [vmem:[%s9549_s3 + $0x1c0] sm:$0xf]  ;;  %3160 = vmatpush.bf16.msrb.mxu3 %v5499_v24 }
 0x50a   :  { %v8284_v41 = vadd.f32 %v2229_v32, %v7628_v57  ;;  %v8300_v57 = vld [vmem:[%s9548_s0 + $0xe8] sm:$0xff] }
 0x50b   :  { %v2577_v25 = vmax.f32 %v2489_v16, %v2493_v15  ;;  %v2706_v56 = vpack.c.bf16 %v2678_v50, %v2678_v50  ;;  %3582 = vmatpush.bf16.msrb.mxu0 %v5663_v54  ;;  %v5647_v16 = vor.u32 %v6193_v12, %v5646_v52  ;;  %v9814_v15 = vld [vmem:[#allocation31_spill] sm:$0xff]  ;;  %v5638_v50 = vld [vmem:[%s9549_s3 + $0x1b0] sm:$0xf]  ;;  %v9817_v54 = vld [vmem:[#allocation18_spill] sm:$0xff] }
 0x50c   :  { %5340 = vmatmul.msk.bf16.gmra.mxu0 %vm328_vm0, %v8234_v8  ;;  %v6185_v52 = vld [vmem:[%s9549_s3 + $0x184] sm:$0xf0] }
 0x50d   :  { %v2619_v49 = vmax.f32 %v2576_v21, %v2577_v25  ;;  %v2785_v28 = vunpack.c.l.b16 %v2706_v56  ;;  %v9816_v56 = vld [vmem:[#allocation20_spill] sm:$0xff] }
 0x50f   :  { %v2651_v55 = vadd.f32 %v7978_v19, %v2619_v49  ;;  %3583 = vmatpush.bf16.msrb.mxu0 %v5655_v42  ;;  %v6191_v49 = vld [vmem:[%s9549_s3 + $0x1b4] sm:$0xf0] }
 0x510   :  { %v2368_v21 = vpop.f32.mrf.mxu1  ;;  %v5639_v32 = vor.u32 %v6191_v49, %v5638_v50  ;;  %v6145_v49 = vld [vmem:[%s9549_s3 + $0x44] sm:$0xf0] }
 0x511   :  { %v2679_v6 = vmax.f32 %v2651_v55, 0.0  ;;  %v2231_v33 = vpop.f32.mrf.mxu0  ;;  %v2495_v55 = vadd.f32 %v2368_v21, %v9815_v37 }
 0x513   :  { %v2707_v17 = vpack.c.bf16 %v2679_v6, %v2679_v6  ;;  %5366 = vmatmul.msk.bf16.gmra.mxu1 %vm328_vm0, %v6333_v44  ;;  %3584 = vmatpush.bf16.msrb.mxu0 %v5647_v16 }
 0x515   :  { %v2786_v11 = vunpack.c.l.b16 %v2707_v17  ;;  %v9818_v17 = vld [vmem:[#allocation22_spill] sm:$0xff] }
 0x516   :  { %v2013_v44 = vadd.f32 %v9818_v17, %v9817_v54 }
 0x517   :  { %v8255_v53 = vpack.c.b16 %v2786_v11, %v2785_v28  ;;  %3585 = vmatpush.bf16.msrb.mxu0 %v5639_v32  ;;  %v9819_v28 = vld [vmem:[#allocation27_spill] sm:$0xff]  ;;  %v9820_v11 = vld [vmem:[#allocation30_spill] sm:$0xff] }
 0x518   :  { %v2370_v38 = vpop.f32.mrf.mxu1  ;;  %v2017_v61 = vadd.f32 %v9820_v11, %v9819_v28  ;;  %v8318_v21 = vadd.f32 %v2231_v33, %v2013_v44  ;;  %v5623_v33 = vor.u32 %v6187_v13, %v5622_v14  ;;  %v6144_v32 = vld [vmem:[%s9549_s3 + $0x44] sm:$0xf]  ;;  %v5664_v28 = vld [vmem:[%s9549_s3 + $0x1e8] sm:$0xf0]  ;;  %v5480_v13 = vld [vmem:[%s9549_s3 + $0x38] sm:$0xf0] }
 0x519   :  { %2928 = vmatmul.bf16.gmra.mxu2 %v8255_v53  ;;  %2987 = vmatmul.bf16.gmra.mxu3 %v8255_v53  ;;  %v2234_v0 = vpop.f32.mrf.mxu0  ;;  %v2497_v24 = vadd.f32 %v2370_v38, %v9821_v43  ;;  %v5486_v38 = vld [vmem:[%s9549_s3 + $0x40] sm:$0xf]  ;;  %v5491_v37 = vor.u32 %v6144_v32, %v5488_v35  ;;  %v6196_v44 = vld [vmem:[%s9549_s3 + $0x1e4] sm:$0xf]  ;;  %v9826_v32 = vld [vmem:[#allocation28_spill] sm:$0xff] }
 0x51a   :  { %v8287_v25 = vadd.f32 %v2234_v0, %v9814_v15  ;;  %v5487_v3 = vor.u32 %v6145_v49, %v5486_v38  ;;  %v9825_v38 = vld [vmem:[#allocation32_spill] sm:$0xff] }
 0x51b   :  { %3586 = vmatpush.bf16.msrb.mxu0 %v5631_v7  ;;  %3161 = vmatpush.bf16.msrb.mxu3 %v5491_v37  ;;  %v9829_v37 = vld [vmem:[#allocation80_spill] sm:$0xff] }
 0x51c   :  { %v2582_v62 = vmax.f32 %v8284_v41, %v8287_v25  ;;  %5341 = vmatmul.msk.bf16.gmra.mxu0 %vm328_vm0, %v8300_v57  ;;  %3102 = vmatpush.bf16.msrb.mxu2 %v5487_v3  ;;  %v9827_v3 = vld [vmem:[#allocation78_spill] sm:$0xff] }
 0x51d   :  { %v2021_v35 = vadd.f32 %v9827_v3, %v9826_v32 }
 0x51f   :  { %3587 = vmatpush.bf16.msrb.mxu0 %v5623_v33  ;;  %v6194_v33 = vld [vmem:[%s9549_s3 + $0x1d4] sm:$0xf] }
 0x520   :  { %v2373_v2 = vpop.f32.mrf.mxu1 }
 0x521   :  { %v2499_v6 = vadd.f32 %v2373_v2, %v9816_v56  ;;  %v2236_v26 = vpop.f32.mrf.mxu0  ;;  %v8357_v2 = vld [vmem:[%s9548_s0 + $0xf0] sm:$0xff] }
 0x522   :  { %v8320_v31 = vadd.f32 %v2236_v26, %v2017_v61  ;;  %v5667_v61 = vor.u32 %v6196_v44, %v5664_v28  ;;  %v6143_v26 = vld [vmem:[%s9549_s3 + $0x34] sm:$0xf0] }
 0x523   :  { %v2579_v42 = vmax.f32 %v2495_v55, %v2499_v6  ;;  %5367 = vmatmul.msk.bf16.gmra.mxu1 %vm328_vm0, %v8192_v18 }
 0x524   :  { %v2584_v18 = vmax.f32 %v8318_v21, %v8320_v31  ;;  %3641 = vmatpush.bf16.msra.mxu1 %v5667_v61 }
 0x525   :  { %v2620_v47 = vmax.f32 %v2578_v4, %v2579_v42  ;;  %v5614_v4 = vld [vmem:[%s9549_s3 + $0x180] sm:$0xf]  ;;  %v8378_v42 = vld [vmem:[%s9548_s0 + $0xf8] sm:$0xff] }
 0x526   :  { %v5615_v12 = vor.u32 %v6185_v52, %v5614_v4 }
 0x527   :  { %v2652_v40 = vadd.f32 %v7978_v19, %v2620_v47  ;;  %v6142_v47 = vld [vmem:[%s9549_s3 + $0x34] sm:$0xf] }
 0x528   :  { %v2375_v45 = vpop.f32.mrf.mxu1  ;;  %3588 = vmatpush.bf16.msrb.mxu0 %v5615_v12  ;;  %v5483_v43 = vor.u32 %v6142_v47, %v5480_v13  ;;  %v6192_v12 = vld [vmem:[%s9549_s3 + $0x1c4] sm:$0xf]  ;;  %v9831_v47 = vld [vmem:[#allocation24_spill] sm:$0xff]  ;;  %v9832_v13 = vld [vmem:[#allocation33_spill] sm:$0xff] }
 0x529   :  { %v2501_v9 = vadd.f32 %v2375_v45, %v9822_v20  ;;  %v2239_v0 = vpop.f32.mrf.mxu0  ;;  %v2680_v15 = vmax.f32 %v2652_v40, 0.0  ;;  %v5656_v40 = vld [vmem:[%s9549_s3 + $0x1d8] sm:$0xf0] }
 0x52a   :  { %v8401_v20 = vadd.f32 %v2239_v0, %v7687_v46  ;;  %3162 = vmatpush.bf16.msrb.mxu3 %v5483_v43  ;;  %v5648_v46 = vld [vmem:[%s9549_s3 + $0x1c8] sm:$0xf0] }
 0x52b   :  { %v2581_v16 = vmax.f32 %v2497_v24, %v2501_v9  ;;  %v2708_v56 = vpack.c.bf16 %v2680_v15, %v2680_v15  ;;  %v5659_v24 = vor.u32 %v6194_v33, %v5656_v40  ;;  %v9823_v9 = vld [vmem:[#allocation35_spill] sm:$0xff]  ;;  %v9824_v15 = vld [vmem:[#allocation26_spill] sm:$0xff]  ;;  %v9833_v33 = vld [vmem:[#allocation36_spill] sm:$0xff] }
 0x52c   :  { %5342 = vmatmul.msk.bf16.gmra.mxu0 %vm328_vm0, %v8357_v2  ;;  %v2018_v40 = vadd.f32 %v9833_v33, %v9832_v13  ;;  %v9836_v33 = vld [vmem:[#allocation79_spill] sm:$0xff] }
 0x52d   :  { %v2621_v50 = vmax.f32 %v2580_v51, %v2581_v16  ;;  %v2787_v54 = vunpack.c.l.b16 %v2708_v56  ;;  %3642 = vmatpush.bf16.msra.mxu1 %v5659_v24  ;;  %v5651_v16 = vor.u32 %v6192_v12, %v5648_v46  ;;  %v6186_v24 = vld [vmem:[%s9549_s3 + $0x194] sm:$0xf] }
 0x52f   :  { %v2653_v51 = vadd.f32 %v7978_v19, %v2621_v50 }
 0x530   :  { %v2378_v55 = vpop.f32.mrf.mxu1 }
 0x531   :  { %v2681_v6 = vmax.f32 %v2653_v51, 0.0  ;;  %v2241_v60 = vpop.f32.mrf.mxu0  ;;  %v2503_v50 = vadd.f32 %v2378_v55, %v9824_v15  ;;  %v9828_v51 = vld [vmem:[#allocation77_spill] sm:$0xff]  ;;  %3643 = vmatpush.bf16.msra.mxu1 %v5651_v16  ;;  %v6184_v15 = vld [vmem:[%s9549_s3 + $0x184] sm:$0xf] }
 0x532   :  { %v2025_v56 = vadd.f32 %v9829_v37, %v9828_v51  ;;  %v8430_v44 = vadd.f32 %v2241_v60, %v2021_v35  ;;  %v9830_v60 = vld [vmem:[#allocation34_spill] sm:$0xff] }
 0x533   :  { %v2709_v29 = vpack.c.bf16 %v2681_v6, %v2681_v6  ;;  %5368 = vmatmul.msk.bf16.gmra.mxu1 %vm328_vm0, %v8234_v8  ;;  %v5478_v8 = vld [vmem:[%s9549_s3 + $0x30] sm:$0xf]  ;;  %v6190_v6 = vld [vmem:[%s9549_s3 + $0x1b4] sm:$0xf] }
 0x534   :  { %v5479_v14 = vor.u32 %v6143_v26, %v5478_v8  ;;  %v6188_v26 = vld [vmem:[%s9549_s3 + $0x1a4] sm:$0xf] }
 0x535   :  { %v2788_v17 = vunpack.c.l.b16 %v2709_v29  ;;  %v5640_v29 = vld [vmem:[%s9549_s3 + $0x1b8] sm:$0xf0] }
 0x536   :  { %3103 = vmatpush.bf16.msrb.mxu2 %v5479_v14  ;;  %v5643_v55 = vor.u32 %v6190_v6, %v5640_v29  ;;  %v2014_v14 = vadd.f32 %v9831_v47, %v9830_v60  ;;  %v6141_v6 = vld [vmem:[%s9549_s3 + $0x24] sm:$0xf0]  ;;  %v6140_v29 = vld [vmem:[%s9549_s3 + $0x24] sm:$0xf]  ;;  %v9835_v60 = vld [vmem:[#allocation60_spill] sm:$0xff] }
 0x537   :  { %v8373_v11 = vpack.c.b16 %v2788_v17, %v2787_v54 }
 0x538   :  { %v2380_v7 = vpop.f32.mrf.mxu1  ;;  %3644 = vmatpush.bf16.msra.mxu1 %v5643_v55 }
 0x539   :  { %2933 = vmatmul.bf16.gmra.mxu2 %v8373_v11  ;;  %2992 = vmatmul.bf16.gmra.mxu3 %v8373_v11  ;;  %v2244_v45 = vpop.f32.mrf.mxu0 }
 0x53a   :  { %v8404_v4 = vadd.f32 %v2244_v45, %v9823_v9  ;;  %v5624_v9 = vld [vmem:[%s9549_s3 + $0x198] sm:$0xf0] }
 0x53b   :  { %v5627_v16 = vor.u32 %v6186_v24, %v5624_v9  ;;  %v9840_v24 = vld [vmem:[#allocation44_spill] sm:$0xff]  ;;  %v9841_v9 = vld [vmem:[#allocation83_spill] sm:$0xff] }
 0x53c   :  { %v2586_v52 = vmax.f32 %v8401_v20, %v8404_v4  ;;  %5343 = vmatmul.msk.bf16.gmra.mxu0 %vm328_vm0, %v8378_v42  ;;  %v5462_v4 = vld [vmem:[%s9549_s3 + $0x10] sm:$0xf] }
 0x540   :  { %v2383_v0 = vpop.f32.mrf.mxu1 }
 0x541   :  { %v2507_v49 = vadd.f32 %v2383_v0, %v9825_v38  ;;  %v2246_v17 = vpop.f32.mrf.mxu0 }
 0x542   :  { %v8432_v28 = vadd.f32 %v2246_v17, %v2025_v56  ;;  %v5470_v56 = vld [vmem:[%s9549_s3 + $0x20] sm:$0xf] }
 0x543   :  { %v2583_v54 = vmax.f32 %v2503_v50, %v2507_v49  ;;  %5369 = vmatmul.msk.bf16.gmra.mxu1 %vm328_vm0, %v8300_v57  ;;  %v5632_v57 = vld [vmem:[%s9549_s3 + $0x1a8] sm:$0xf0]  ;;  %v5471_v17 = vor.u32 %v6141_v6, %v5470_v56 }
 0x544   :  { %v2588_v8 = vmax.f32 %v8430_v44, %v8432_v28  ;;  %v5635_v41 = vor.u32 %v6188_v26, %v5632_v57  ;;  %v5616_v50 = vld [vmem:[%s9549_s3 + $0x188] sm:$0xf0]  ;;  %v9834_v26 = vld [vmem:[#allocation38_spill] sm:$0xff]  ;;  %v5464_v44 = vld [vmem:[%s9549_s3 + $0x18] sm:$0xf0] }
 0x545   :  { %v2622_v61 = vmax.f32 %v2582_v62, %v2583_v54  ;;  %v2505_v62 = vadd.f32 %v2380_v7, %v2014_v14  ;;  %v5619_v49 = vor.u32 %v6184_v15, %v5616_v50  ;;  %3104 = vmatpush.bf16.msrb.mxu2 %v5471_v17 }
 0x546   :  { %3645 = vmatpush.bf16.msra.mxu1 %v5635_v41  ;;  %v9837_v41 = vld [vmem:[#allocation81_spill] sm:$0xff] }
 0x547   :  { %v2654_v45 = vadd.f32 %v7978_v19, %v2622_v61 }
 0x548   :  { %v2385_v25 = vpop.f32.mrf.mxu1 }
 0x549   :  { %v2509_v43 = vadd.f32 %v2385_v25, %v2018_v40  ;;  %v2249_v46 = vpop.f32.mrf.mxu0  ;;  %v2682_v0 = vmax.f32 %v2654_v45, 0.0  ;;  %v9839_v45 = vld [vmem:[#allocation82_spill] sm:$0xff] }
 0x54a   :  { %3646 = vmatpush.bf16.msra.mxu1 %v5627_v16  ;;  %v8486_v57 = vadd.f32 %v2249_v46, %v9834_v26 }
 0x54b   :  { %v2585_v12 = vmax.f32 %v2505_v62, %v2509_v43  ;;  %v2710_v3 = vpack.c.bf16 %v2682_v0, %v2682_v0  ;;  %v9838_v62 = vld [vmem:[#allocation41_spill] sm:$0xff] }
 0x54c   :  { %3589 = vmatmul.bf16.vlgmr.msrb.gmra.mxu0 %v8107_v22  ;;  %v2029_v43 = vadd.f32 %v9839_v45, %v9838_v62  ;;  %v6137_v62 = vld [vmem:[%s9549_s3 + $0x4] sm:$0xf0]  ;;  %v6136_v45 = vld [vmem:[%s9549_s3 + $0x4] sm:$0xf] }
 0x54d   :  { %v2623_v7 = vmax.f32 %v2584_v18, %v2585_v12  ;;  %v2789_v18 = vunpack.c.l.b16 %v2710_v3  ;;  %v2033_v12 = vadd.f32 %v9841_v9, %v9840_v24  ;;  %v9844_v3 = vld [vmem:[#allocation40_spill] sm:$0xff]  ;;  %v5456_v9 = vld [vmem:[%s9549_s3 + $0x8] sm:$0xf0] }
 0x54e   :  { %3647 = vmatpush.bf16.msra.mxu1 %v5619_v49  ;;  %v9843_v49 = vld [vmem:[#allocation39_spill] sm:$0xff] }
 0x54f   :  { %v2655_v38 = vadd.f32 %v7978_v19, %v2623_v7 }
 0x550   :  { %v2388_v32 = vpop.f32.mrf.mxu1 }
 0x551   :  { %v2683_v35 = vmax.f32 %v2655_v38, 0.0  ;;  %v2251_v31 = vpop.f32.mrf.mxu0  ;;  %v2511_v40 = vadd.f32 %v2388_v32, %v9836_v33  ;;  %v9842_v38 = vld [vmem:[#allocation37_spill] sm:$0xff] }
 0x552   :  { %v8502_v0 = vadd.f32 %v2251_v31, %v2029_v43  ;;  %v2022_v32 = vadd.f32 %v9843_v49, %v9842_v38  ;;  %v9846_v38 = vld [vmem:[#allocation45_spill] sm:$0xff] }
 0x553   :  { %v2711_v21 = vpack.c.bf16 %v2683_v35, %v2683_v35  ;;  %5370 = vmatmul.msk.bf16.gmra.mxu1 %vm328_vm0, %v8357_v2  ;;  %v5472_v2 = vld [vmem:[%s9549_s3 + $0x28] sm:$0xf0] }
 0x554   :  { %v5475_v55 = vor.u32 %v6140_v29, %v5472_v2  ;;  %v9845_v35 = vld [vmem:[#allocation55_spill] sm:$0xff] }
 0x555   :  { %v2790_v51 = vunpack.c.l.b16 %v2711_v21  ;;  %v2026_v21 = vadd.f32 %v9845_v35, %v9844_v3 }
 0x556   :  { %3163 = vmatpush.bf16.msrb.mxu3 %v5475_v55  ;;  %v8533_v55 = vpop.f32.mrf.mxu2 }
 0x557   :  { %v8469_v37 = vpack.c.b16 %v2790_v51, %v2789_v18 }
 0x558   :  { %v2390_v54 = vpop.f32.mrf.mxu1 }
 0x559   :  { %2938 = vmatmul.bf16.gmra.mxu2 %v8469_v37  ;;  %2997 = vmatmul.bf16.gmra.mxu3 %v8469_v37  ;;  %v2254_v61 = vpop.f32.mrf.mxu0  ;;  %v2513_v31 = vadd.f32 %v2390_v54, %v2022_v32  ;;  %v6138_v54 = vld [vmem:[%s9549_s3 + $0x14] sm:$0xf]  ;;  %v9847_v32 = vld [vmem:[#allocation49_spill] sm:$0xff] }
 0x55a   :  { %v8489_v47 = vadd.f32 %v2254_v61, %v9835_v60  ;;  %v8535_v60 = vpop.f32.mrf.mxu3 }
 0x55c   :  { %v2590_v14 = vmax.f32 %v8486_v57, %v8489_v47  ;;  %3594 = vmatmul.bf16.gmra.mxu0 %v8131_v34 }
 0x560   :  { %v2393_v13 = vpop.f32.mrf.mxu1 }
 0x561   :  { %v2515_v25 = vadd.f32 %v2393_v13, %v9837_v41  ;;  %v2256_v16 = vpop.f32.mrf.mxu0 }
 0x562   :  { %v8504_v7 = vadd.f32 %v2256_v16, %v2033_v12  ;;  %v8552_v12 = vpop.f32.mrf.mxu2  ;;  %v8556_v16 = vpop.f32.mrf.mxu3 }
 0x563   :  { %v2587_v46 = vmax.f32 %v2511_v40, %v2515_v25  ;;  %5371 = vmatmul.msk.bf16.gmra.mxu1 %vm328_vm0, %v8378_v42 }
 0x564   :  { %v2592_v50 = vmax.f32 %v8502_v0, %v8504_v7  ;;  %v5590_v0 = vld [vmem:[%s9549_s3 + $0x170] sm:$0xf]  ;;  %v6183_v7 = vld [vmem:[%s9549_s3 + $0x174] sm:$0xf0] }
 0x565   :  { %v2624_v15 = vmax.f32 %v2586_v52, %v2587_v46  ;;  %v6139_v52 = vld [vmem:[%s9549_s3 + $0x14] sm:$0xf0]  ;;  %v5459_v46 = vor.u32 %v6136_v45, %v5456_v9 }
 0x566   :  { %v5463_v17 = vor.u32 %v6139_v52, %v5462_v4  ;;  %v9852_v4 = vld [vmem:[#allocation52_spill] sm:$0xff]  ;;  %v9853_v52 = vld [vmem:[#allocation87_spill] sm:$0xff] }
 0x567   :  { %v2656_v18 = vadd.f32 %v7978_v19, %v2624_v15 }
 0x568   :  { %v2395_v42 = vpop.f32.mrf.mxu1  ;;  %3105 = vmatpush.bf16.msrb.mxu2 %v5463_v17 }
 0x569   :  { %v2517_v51 = vadd.f32 %v2395_v42, %v2026_v21  ;;  %v2259_v6 = vpop.f32.mrf.mxu0  ;;  %v2684_v29 = vmax.f32 %v2656_v18, 0.0  ;;  %v9848_v18 = vld [vmem:[#allocation42_spill] sm:$0xff] }
 0x56a   :  { %v8559_v49 = vadd.f32 %v2259_v6, %v9846_v38  ;;  %v2041_v6 = vadd.f32 %v9853_v52, %v9852_v4 }
 0x56b   :  { %v2589_v56 = vmax.f32 %v2513_v31, %v2517_v51  ;;  %v2712_v61 = vpack.c.bf16 %v2684_v29, %v2684_v29  ;;  %v9849_v31 = vld [vmem:[#allocation84_spill] sm:$0xff]  ;;  %v9851_v29 = vld [vmem:[#allocation85_spill] sm:$0xff] }
 0x56c   :  { %3599 = vmatmul.bf16.gmra.mxu0 %v8165_v5 }
 0x56d   :  { %v2625_v20 = vmax.f32 %v2588_v8, %v2589_v56  ;;  %v5467_v8 = vor.u32 %v6138_v54, %v5464_v44  ;;  %v2791_v40 = vunpack.c.l.b16 %v2712_v61  ;;  %v9850_v56 = vld [vmem:[#allocation48_spill] sm:$0xff]  ;;  %v8573_v54 = vpop.f32.mrf.mxu2 }
 0x56f   :  { %v2657_v28 = vadd.f32 %v7978_v19, %v2625_v20  ;;  %3164 = vmatpush.bf16.msrb.mxu3 %v5467_v8  ;;  %v5454_v19 = vld [vmem:[%s9549_s3] sm:$0xf]  ;;  %v2037_v20 = vadd.f32 %v9851_v29, %v9850_v56 }
 0x570   :  { %v2398_v2 = vpop.f32.mrf.mxu1  ;;  %v5455_v24 = vor.u32 %v6137_v62, %v5454_v19  ;;  %v9856_v19 = vld [vmem:[#allocation47_spill] sm:$0xff]  ;;  %v9857_v62 = vld [vmem:[#allocation50_spill] sm:$0xff] }
 0x571   :  { %v2685_v26 = vmax.f32 %v2657_v28, 0.0  ;;  %v2261_v33 = vpop.f32.mrf.mxu0  ;;  %v2519_v42 = vadd.f32 %v2398_v2, %v9848_v18  ;;  %v8576_v28 = vpop.f32.mrf.mxu3  ;;  %v2034_v45 = vadd.f32 %v9857_v62, %v9856_v19 }
 0x572   :  { %3106 = vmatpush.bf16.msrb.mxu2 %v5455_v24  ;;  %v8578_v8 = vadd.f32 %v2261_v33, %v2037_v20  ;;  %v8594_v33 = vld [vmem:[%s9550_s2] ss:$0 sm:$0xff] }
 0x573   :  { %v2713_v13 = vpack.c.bf16 %v2685_v26, %v2685_v26  ;;  %3648 = vmatmul.bf16.vlgmr.msra.gmra.mxu1 %v8107_v22  ;;  %3165 = vmatpush.bf16.msrb.mxu3 %v5459_v46 }
 0x575   :  { %v2792_v41 = vunpack.c.l.b16 %v2713_v13  ;;  %v9854_v13 = vld [vmem:[#allocation43_spill] sm:$0xff]  ;;  %v8597_v47 = vpop.f32.mrf.mxu2 }
 0x577   :  { %v8538_v25 = vpack.c.b16 %v2792_v41, %v2791_v40  ;;  %v9855_v40 = vld [vmem:[#allocation46_spill] sm:$0xff] }
 0x578   :  { %v2400_v43 = vpop.f32.mrf.mxu1  ;;  %v2030_v41 = vadd.f32 %v9855_v40, %v9854_v13 }
 0x579   :  { %2943 = vmatmul.bf16.gmra.mxu2 %v8538_v25  ;;  %3002 = vmatmul.bf16.gmra.mxu3 %v8538_v25  ;;  %v2264_v15 = vpop.f32.mrf.mxu0  ;;  %v8599_v38 = vpop.f32.mrf.mxu3 }
 0x57a   :  { %v8562_v3 = vadd.f32 %v2264_v15, %v9847_v32  ;;  %v2521_v9 = vadd.f32 %v2400_v43, %v2030_v41  ;;  %v9859_v41 = vld [vmem:[#allocation53_spill] sm:$0xff] }
 0x57c   :  { %v2594_v35 = vmax.f32 %v8559_v49, %v8562_v3  ;;  %3604 = vmatmul.bf16.gmra.mxu0 %v8255_v53 }
 0x57d   :  { %v8607_v29 = vpop.f32.mrf.mxu2 }
 0x580   :  { %v2403_v21 = vpop.f32.mrf.mxu1 }
 0x581   :  { %v2523_v51 = vadd.f32 %v2403_v21, %v9849_v31  ;;  %v2266_v44 = vpop.f32.mrf.mxu0  ;;  %v8609_v52 = vpop.f32.mrf.mxu3 }
 0x582   :  { %v8580_v61 = vadd.f32 %v2266_v44, %v2041_v6  ;;  %v5591_v44 = vor.u32 %v6183_v7, %v5590_v0  ;;  %v9864_v7 = vld [vmem:[#allocation62_spill] sm:$0xff] }
 0x583   :  { %v2591_v17 = vmax.f32 %v2519_v42, %v2523_v51  ;;  %3653 = vmatmul.bf16.gmra.mxu1 %v8131_v34 }
 0x584   :  { %v2596_v26 = vmax.f32 %v8578_v8, %v8580_v61  ;;  %3320 = vmatpush.bf16.msra.mxu2 %v5591_v44  ;;  %v5574_v8 = vld [vmem:[%s9549_s3 + $0x150] sm:$0xf]  ;;  %v6179_v61 = vld [vmem:[%s9549_s3 + $0x154] sm:$0xf0] }
 0x585   :  { %v2626_v2 = vmax.f32 %v2590_v14, %v2591_v17 }
 0x587   :  { %v2658_v46 = vadd.f32 %v8594_v33, %v2626_v2  ;;  %v5592_v2 = vld [vmem:[%s9549_s3 + $0x178] sm:$0xf0] }
 0x588   :  { %v2405_v24 = vpop.f32.mrf.mxu1 }
 0x589   :  { %v2525_v57 = vadd.f32 %v2405_v24, %v2034_v45  ;;  %v2269_v15 = vpop.f32.mrf.mxu0  ;;  %v2686_v32 = vmax.f32 %v2658_v46, 0.0  ;;  %v8633_v45 = vpop.f32.mrf.mxu2  ;;  %v5582_v46 = vld [vmem:[%s9549_s3 + $0x160] sm:$0xf] }
 0x58a   :  { %v8628_v19 = vadd.f32 %v2269_v15, %v9859_v41  ;;  %v8635_v24 = vpop.f32.mrf.mxu3  ;;  %v5584_v15 = vld [vmem:[%s9549_s3 + $0x168] sm:$0xf0] }
 0x58b   :  { %v2593_v14 = vmax.f32 %v2521_v9, %v2525_v57  ;;  %v2714_v42 = vpack.c.bf16 %v2686_v32, %v2686_v32  ;;  %v6181_v57 = vld [vmem:[%s9549_s3 + $0x164] sm:$0xf0] }
 0x58c   :  { %3609 = vmatmul.bf16.gmra.mxu0 %v8373_v11 }
 0x58d   :  { %v2627_v21 = vmax.f32 %v2592_v50, %v2593_v14  ;;  %v2793_v20 = vunpack.c.l.b16 %v2714_v42  ;;  %v6182_v50 = vld [vmem:[%s9549_s3 + $0x174] sm:$0xf]  ;;  %v5583_v14 = vor.u32 %v6181_v57, %v5582_v46  ;;  %v9866_v57 = vld [vmem:[#allocation51_spill] sm:$0xff] }
 0x58e   :  { %v5595_v13 = vor.u32 %v6182_v50, %v5592_v2  ;;  %v9865_v50 = vld [vmem:[#allocation2_spill] sm:$0xff] }
 0x58f   :  { %v2659_v43 = vadd.f32 %v8594_v33, %v2627_v21  ;;  %3321 = vmatpush.bf16.msra.mxu2 %v5583_v14  ;;  %v2049_v44 = vadd.f32 %v9865_v50, %v9864_v7 }
 0x590   :  { %v2408_v18 = vpop.f32.mrf.mxu1  ;;  %3379 = vmatpush.bf16.msra.mxu3 %v5595_v13 }
 0x591   :  { %v2687_v31 = vmax.f32 %v2659_v43, 0.0  ;;  %v2271_v56 = vpop.f32.mrf.mxu0  ;;  %v9860_v43 = vld [vmem:[#allocation86_spill] sm:$0xff] }
 0x592   :  { %v2527_v42 = vadd.f32 %v2408_v18, %v9860_v43  ;;  %v8672_v43 = vpop.f32.mrf.mxu2 }
 0x593   :  { %v2715_v51 = vpack.c.bf16 %v2687_v31, %v2687_v31  ;;  %3658 = vmatmul.bf16.gmra.mxu1 %v8165_v5  ;;  %v9861_v31 = vld [vmem:[#allocation88_spill] sm:$0xff] }
 0x595   :  { %v2794_v4 = vunpack.c.l.b16 %v2715_v51 }
 0x597   :  { %v8611_v6 = vpack.c.b16 %v2794_v4, %v2793_v20  ;;  %v9862_v20 = vld [vmem:[#allocation57_spill] sm:$0xff] }
 0x598   :  { %v2410_v17 = vpop.f32.mrf.mxu1  ;;  %v9863_v4 = vld [vmem:[#allocation89_spill] sm:$0xff] }
 0x599   :  { %9858 = vst [vmem:[#allocation66_spill] sm:$0xff] %v8611_v6  ;;  %2948 = vmatmul.bf16.gmra.mxu2 %v8611_v6  ;;  %3007 = vmatmul.bf16.gmra.mxu3 %v8611_v6  ;;  %v2274_v40 = vpop.f32.mrf.mxu0  ;;  %v2045_v0 = vadd.f32 %v9863_v4, %v9862_v20 }
 0x59a   :  { %v8631_v62 = vadd.f32 %v2274_v40, %v7867_v58  ;;  %v6180_v58 = vld [vmem:[%s9549_s3 + $0x164] sm:$0xf] }
 0x59b   :  { %v5587_v21 = vor.u32 %v6180_v58, %v5584_v15  ;;  %v8659_v40 = vadd.f32 %v2271_v56, %v2045_v0  ;;  %v9867_v58 = vld [vmem:[#allocation54_spill] sm:$0xff]  ;;  %v9868_v15 = vld [vmem:[#allocation56_spill] sm:$0xff]  ;;  %v8683_v0 = vpop.f32.mrf.mxu2 }
 0x59c   :  { %v2598_v9 = vmax.f32 %v8628_v19, %v8631_v62  ;;  %3614 = vmatmul.bf16.gmra.mxu0 %v8469_v37  ;;  %v2038_v14 = vadd.f32 %v9867_v58, %v9866_v57  ;;  %v5575_v58 = vor.u32 %v6179_v61, %v5574_v8  ;;  %v6176_v19 = vld [vmem:[%s9549_s3 + $0x144] sm:$0xf] }
 0x59d   :  { %3380 = vmatpush.bf16.msra.mxu3 %v5587_v21 }
 0x59e   :  { %3322 = vmatpush.bf16.msra.mxu2 %v5575_v58 }
 0x5a0   :  { %v2413_v32 = vpop.f32.mrf.mxu1 }
 0x5a1   :  { %v2531_v51 = vadd.f32 %v2413_v32, %v9861_v31  ;;  %v2276_v13 = vpop.f32.mrf.mxu0  ;;  %v9869_v32 = vld [vmem:[#allocation59_spill] sm:$0xff]  ;;  %v2529_v31 = vadd.f32 %v2410_v17, %v2038_v14  ;;  %v5576_v14 = vld [vmem:[%s9549_s3 + $0x158] sm:$0xf0] }
 0x5a2   :  { %v8661_v41 = vadd.f32 %v2276_v13, %v2049_v44  ;;  %v2042_v21 = vadd.f32 %v9869_v32, %v9868_v15 }
 0x5a3   :  { %v2595_v2 = vmax.f32 %v2527_v42, %v2531_v51  ;;  %3663 = vmatmul.bf16.gmra.mxu1 %v8255_v53  ;;  %v8674_v42 = vpop.f32.mrf.mxu3 }
 0x5a4   :  { %v2600_v46 = vmax.f32 %v8659_v40, %v8661_v41  ;;  %v5558_v41 = vld [vmem:[%s9549_s3 + $0x130] sm:$0xf] }
 0x5a5   :  { %v2628_v18 = vmax.f32 %v2594_v35, %v2595_v2 }
 0x5a7   :  { %v2660_v51 = vadd.f32 %v8594_v33, %v2628_v18 }
 0x5a8   :  { %v2415_v56 = vpop.f32.mrf.mxu1 }
 0x5a9   :  { %v2533_v20 = vadd.f32 %v2415_v56, %v2042_v21  ;;  %3107 = vmatmul.bf16.vlgmr.msrb.gmra.mxu2 %v8029_v1  ;;  %3166 = vmatmul.bf16.vlgmr.msrb.gmra.mxu3 %v8029_v1  ;;  %v2279_v3 = vpop.f32.mrf.mxu0  ;;  %v2688_v35 = vmax.f32 %v2660_v51, 0.0  ;;  %v8705_v56 = vpop.f32.mrf.mxu2 }
 0x5ab   :  { %v2597_v49 = vmax.f32 %v2529_v31, %v2533_v20  ;;  %v8686_v7 = vpop.f32.mrf.mxu3  ;;  %v2716_v44 = vpack.c.bf16 %v2688_v35, %v2688_v35  ;;  %v8710_v20 = vadd.f32 %v2279_v3, %v7891_v27 }
 0x5ac   :  { %3619 = vmatmul.bf16.gmra.mxu0 %v8538_v25 }
 0x5ad   :  { %v2629_v4 = vmax.f32 %v2596_v26, %v2597_v49  ;;  %v3236_v18 = vunpack.c.l.b16 %v2716_v44  ;;  %v6178_v26 = vld [vmem:[%s9549_s3 + $0x154] sm:$0xf] }
 0x5ae   :  { %v5579_v32 = vor.u32 %v6178_v26, %v5576_v14  ;;  %v9875_v14 = vld [vmem:[#allocation90_spill] sm:$0xff] }
 0x5af   :  { %v2661_v17 = vadd.f32 %v8594_v33, %v2629_v4 }
 0x5b0   :  { %v2418_v50 = vpop.f32.mrf.mxu1  ;;  %3381 = vmatpush.bf16.msra.mxu3 %v5579_v32 }
 0x5b1   :  { %v2689_v2 = vmax.f32 %v2661_v17, 0.0  ;;  %v2281_v1 = vpop.f32.mrf.mxu0  ;;  %v9870_v17 = vld [vmem:[#allocation58_spill] sm:$0xff]  ;;  %v8724_v3 = vpop.f32.mrf.mxu2 }
 0x5b3   :  { %v2717_v13 = vpack.c.bf16 %v2689_v2, %v2689_v2  ;;  %3668 = vmatmul.bf16.gmra.mxu1 %v8373_v11  ;;  %v8707_v31 = vpop.f32.mrf.mxu3  ;;  %v9871_v2 = vld [vmem:[#allocation65_spill] sm:$0xff] }
 0x5b5   :  { %v3237_v57 = vunpack.c.l.b16 %v2717_v13  ;;  %v9872_v13 = vld [vmem:[#allocation69_spill] sm:$0xff] }
 0x5b7   :  { %v8701_v15 = vpack.c.b16 %v3237_v57, %v3236_v18  ;;  %v2053_v18 = vadd.f32 %v9872_v13, %v9871_v2  ;;  %v9873_v57 = vld [vmem:[#allocation63_spill] sm:$0xff] }
 0x5b8   :  { %v2420_v21 = vpop.f32.mrf.mxu1  ;;  %v2057_v27 = vadd.f32 %v8533_v55, %v9873_v57  ;;  %v5568_v2 = vld [vmem:[%s9549_s3 + $0x148] sm:$0xf0] }
 0x5b9   :  { %3112 = vmatmul.bf16.gmra.mxu2 %v8059_v59  ;;  %3171 = vmatmul.bf16.gmra.mxu3 %v8059_v59  ;;  %v2284_v51 = vpop.f32.mrf.mxu0  ;;  %v2535_v59 = vadd.f32 %v2418_v50, %v9870_v17  ;;  %v8729_v26 = vadd.f32 %v2281_v1, %v2053_v18  ;;  %v9874_v50 = vld [vmem:[#allocation61_spill] sm:$0xff]  ;;  %v5566_v1 = vld [vmem:[%s9549_s3 + $0x140] sm:$0xf]  ;;  %v5571_v57 = vor.u32 %v6176_v19, %v5568_v2 }
 0x5ba   :  { %v8713_v49 = vadd.f32 %v2284_v51, %v7921_v48  ;;  %v2046_v32 = vadd.f32 %v9875_v14, %v9874_v50  ;;  %v9876_v51 = vld [vmem:[#allocation3_spill] sm:$0xff]  ;;  %v5560_v2 = vld [vmem:[%s9549_s3 + $0x138] sm:$0xf0] }
 0x5bb   :  { %v8726_v48 = vpop.f32.mrf.mxu3  ;;  %3382 = vmatpush.bf16.msra.mxu3 %v5571_v57 }
 0x5bc   :  { %v2602_v35 = vmax.f32 %v8710_v20, %v8713_v49  ;;  %3624 = vmatmul.bf16.gmra.mxu0 %v8611_v6  ;;  %v2537_v62 = vadd.f32 %v2420_v21, %v2046_v32  ;;  %v5550_v49 = vld [vmem:[%s9549_s3 + $0x120] sm:$0xf] }
 0x5c0   :  { %v2423_v4 = vpop.f32.mrf.mxu1 }
 0x5c1   :  { %v2539_v44 = vadd.f32 %v2423_v4, %v7893_v10  ;;  %v2286_v61 = vpop.f32.mrf.mxu0  ;;  %v9877_v4 = vld [vmem:[#allocation67_spill] sm:$0xff] }
 0x5c2   :  { %v8731_v58 = vadd.f32 %v2286_v61, %v2057_v27  ;;  %v2050_v17 = vadd.f32 %v9877_v4, %v9876_v51 }
 0x5c3   :  { %v2599_v8 = vmax.f32 %v2535_v59, %v2539_v44  ;;  %3673 = vmatmul.bf16.gmra.mxu1 %v8469_v37  ;;  %v6177_v59 = vld [vmem:[%s9549_s3 + $0x144] sm:$0xf0]  ;;  %v8759_v21 = vpop.f32.mrf.mxu3 }
 0x5c4   :  { %v2604_v55 = vmax.f32 %v8729_v26, %v8731_v58  ;;  %v5567_v44 = vor.u32 %v6177_v59, %v5566_v1 }
 0x5c5   :  { %v2630_v10 = vmax.f32 %v2598_v9, %v2599_v8  ;;  %v8757_v8 = vpop.f32.mrf.mxu2 }
 0x5c6   :  { %3323 = vmatpush.bf16.msra.mxu2 %v5567_v44 }
 0x5c7   :  { %v2662_v13 = vadd.f32 %v8594_v33, %v2630_v10 }
 0x5c8   :  { %v2425_v9 = vpop.f32.mrf.mxu1 }
 0x5c9   :  { %v2541_v18 = vadd.f32 %v2425_v9, %v2050_v17  ;;  %3117 = vmatmul.bf16.gmra.mxu2 %v8083_v63  ;;  %3176 = vmatmul.bf16.gmra.mxu3 %v8083_v63  ;;  %v2690_v61 = vmax.f32 %v2662_v13, 0.0  ;;  %v6174_v9 = vld [vmem:[%s9549_s3 + $0x134] sm:$0xf] }
 0x5ca   :  { %v5563_v13 = vor.u32 %v6174_v9, %v5560_v2 }
 0x5cb   :  { %v2601_v27 = vmax.f32 %v2537_v62, %v2541_v18  ;;  %v2718_v32 = vpack.c.bf16 %v2690_v61, %v2690_v61  ;;  %v8769_v1 = vpop.f32.mrf.mxu3 }
 0x5cc   :  { %3629 = vmatmul.bf16.gmra.mxu0 %v8701_v15  ;;  %3383 = vmatpush.bf16.msra.mxu3 %v5563_v13 }
 0x5cd   :  { %v2631_v50 = vmax.f32 %v2600_v46, %v2601_v27  ;;  %v8767_v17 = vpop.f32.mrf.mxu2  ;;  %v3497_v59 = vunpack.c.l.b16 %v2718_v32  ;;  %v6175_v46 = vld [vmem:[%s9549_s3 + $0x134] sm:$0xf0] }
 0x5ce   :  { %v5559_v44 = vor.u32 %v6175_v46, %v5558_v41 }
 0x5cf   :  { %v2663_v10 = vadd.f32 %v8594_v33, %v2631_v50 }
 0x5d0   :  { %v2428_v14 = vpop.f32.mrf.mxu1  ;;  %3324 = vmatpush.bf16.msra.mxu2 %v5559_v44 }
 0x5d1   :  { %v2691_v51 = vmax.f32 %v2663_v10, 0.0  ;;  %v2543_v61 = vadd.f32 %v2428_v14, %v7923_v39 }
 0x5d3   :  { %v2719_v4 = vpack.c.bf16 %v2691_v51, %v2691_v51  ;;  %3678 = vmatmul.bf16.gmra.mxu1 %v8538_v25  ;;  %v8789_v57 = vpop.f32.mrf.mxu3 }
 0x5d4   :  { %9879 = vst [vmem:[#allocation70_spill] sm:$0xff] %v8789_v57 }
 0x5d5   :  { %v3498_v19 = vunpack.c.l.b16 %v2719_v4  ;;  %v8787_v18 = vpop.f32.mrf.mxu2 }
 0x5d7   :  { %v8771_v62 = vpack.c.b16 %v3498_v19, %v3497_v59  ;;  %v2054_v59 = vadd.f32 %v7927_v30, %v7930_v23  ;;  %v9882_v19 = vld [vmem:[#allocation64_spill] sm:$0xff]  ;;  %v6173_v30 = vld [vmem:[%s9549_s3 + $0x124] sm:$0xf0]  ;;  %v6172_v23 = vld [vmem:[%s9549_s3 + $0x124] sm:$0xf] }
 0x5d8   :  { %v2430_v40 = vpop.f32.mrf.mxu1  ;;  %v2058_v41 = vadd.f32 %v8535_v60, %v9882_v19  ;;  %v5551_v60 = vor.u32 %v6173_v30, %v5550_v49 }
 0x5d9   :  { %9878 = vst [vmem:[#allocation68_spill] sm:$0xff] %v8771_v62  ;;  %3122 = vmatmul.bf16.gmra.mxu2 %v8107_v22  ;;  %3181 = vmatmul.bf16.gmra.mxu3 %v8107_v22  ;;  %v2545_v14 = vadd.f32 %v2430_v40, %v2054_v59 }
 0x5da   :  { %3325 = vmatpush.bf16.msra.mxu2 %v5551_v60 }
 0x5db   :  { %v8800_v4 = vpop.f32.mrf.mxu3 }
 0x5dc   :  { %3634 = vmatmul.bf16.gmra.mxu0 %v8771_v62  ;;  %9881 = vst [vmem:[#allocation72_spill] sm:$0xff] %v8800_v4  ;;  %v5712_v4 = vld [vmem:[%s9549_s3 + $0x228] sm:$0xf0] }
 0x5dd   :  { %v8798_v51 = vpop.f32.mrf.mxu2 }
 0x5de   :  { %9880 = vst [vmem:[#allocation71_spill] sm:$0xff] %v8798_v51 }
 0x5e0   :  { %v2433_v27 = vpop.f32.mrf.mxu1 }
 0x5e1   :  { %v2547_v50 = vadd.f32 %v2433_v27, %v7938_v36 }
 0x5e3   :  { %v2603_v10 = vmax.f32 %v2543_v61, %v2547_v50  ;;  %3683 = vmatmul.bf16.gmra.mxu1 %v8611_v6  ;;  %v8827_v27 = vpop.f32.mrf.mxu3 }
 0x5e4   :  { %9884 = vst [vmem:[#allocation74_spill] sm:$0xff] %v8827_v27 }
 0x5e5   :  { %v2632_v32 = vmax.f32 %v2602_v35, %v2603_v10  ;;  %v5552_v35 = vld [vmem:[%s9549_s3 + $0x128] sm:$0xf0]  ;;  %v8825_v13 = vpop.f32.mrf.mxu2 }
 0x5e6   :  { %v5555_v9 = vor.u32 %v6172_v23, %v5552_v35  ;;  %9883 = vst [vmem:[#allocation73_spill] sm:$0xff] %v8825_v13  ;;  %v5534_v35 = vld [vmem:[%s9549_s3 + $0x100] sm:$0xf] }
 0x5e7   :  { %v2664_v36 = vadd.f32 %v8594_v33, %v2632_v32 }
 0x5e8   :  { %v2435_v39 = vpop.f32.mrf.mxu1  ;;  %3384 = vmatpush.bf16.msra.mxu3 %v5555_v9  ;;  %v6168_v9 = vld [vmem:[%s9549_s3 + $0x104] sm:$0xf] }
 0x5e9   :  { %v2549_v46 = vadd.f32 %v2435_v39, %v2058_v41  ;;  %3127 = vmatmul.bf16.gmra.mxu2 %v8131_v34  ;;  %3186 = vmatmul.bf16.gmra.mxu3 %v8131_v34  ;;  %v2692_v44 = vmax.f32 %v2664_v36, 0.0  ;;  %v6170_v41 = vld [vmem:[%s9549_s3 + $0x114] sm:$0xf] }
 0x5eb   :  { %v2605_v20 = vmax.f32 %v2545_v14, %v2549_v46  ;;  %v2720_v50 = vpack.c.bf16 %v2692_v44, %v2692_v44  ;;  %v8834_v58 = vpop.f32.mrf.mxu3  ;;  %v5544_v14 = vld [vmem:[%s9549_s3 + $0x118] sm:$0xf0] }
 0x5ec   :  { %9887 = vst [vmem:[#allocation5_spill] sm:$0xff] %v8834_v58 }
 0x5ed   :  { %v2633_v40 = vmax.f32 %v2604_v55, %v2605_v20  ;;  %v3758_v32 = vunpack.c.l.b16 %v2720_v50  ;;  %v8832_v26 = vpop.f32.mrf.mxu2  ;;  %v6171_v55 = vld [vmem:[%s9549_s3 + $0x114] sm:$0xf0]  ;;  %v5547_v20 = vor.u32 %v6170_v41, %v5544_v14  ;;  %v6214_v41 = vld [vmem:[%s9549_s3 + $0x274] sm:$0xf]  ;;  %v5752_v14 = vld [vmem:[%s9549_s3 + $0x278] sm:$0xf0] }
 0x5ee   :  { %9886 = vst [vmem:[#allocation7_spill] sm:$0xff] %v8832_v26 }
 0x5ef   :  { %v2665_v2 = vadd.f32 %v8594_v33, %v2633_v40  ;;  %v5542_v33 = vld [vmem:[%s9549_s3 + $0x110] sm:$0xf]  ;;  %3385 = vmatpush.bf16.msra.mxu3 %v5547_v20  ;;  %v6169_v40 = vld [vmem:[%s9549_s3 + $0x104] sm:$0xf0]  ;;  %v5755_v20 = vor.u32 %v6214_v41, %v5752_v14  ;;  %v6212_v41 = vld [vmem:[%s9549_s3 + $0x264] sm:$0xf] }
 0x5f0   :  { %v5543_v39 = vor.u32 %v6171_v55, %v5542_v33  ;;  %v5535_v44 = vor.u32 %v6169_v40, %v5534_v35  ;;  %v5750_v33 = vld [vmem:[%s9549_s3 + $0x270] sm:$0xf]  ;;  %v6215_v55 = vld [vmem:[%s9549_s3 + $0x274] sm:$0xf0]  ;;  %v5744_v14 = vld [vmem:[%s9549_s3 + $0x268] sm:$0xf0] }
 0x5f1   :  { %v2693_v61 = vmax.f32 %v2665_v2, 0.0  ;;  %v5536_v2 = vld [vmem:[%s9549_s3 + $0x108] sm:$0xf0] }
 0x5f2   :  { %3326 = vmatpush.bf16.msra.mxu2 %v5543_v39  ;;  %v5751_v39 = vor.u32 %v6215_v55, %v5750_v33  ;;  %v5742_v33 = vld [vmem:[%s9549_s3 + $0x260] sm:$0xf]  ;;  %v6213_v55 = vld [vmem:[%s9549_s3 + $0x264] sm:$0xf0] }
 0x5f3   :  { %3688 = vmatmul.bf16.gmra.mxu1 %v8701_v15  ;;  %v2721_v10 = vpack.c.bf16 %v2693_v61, %v2693_v61  ;;  %v8852_v46 = vpop.f32.mrf.mxu3  ;;  %v5539_v61 = vor.u32 %v6168_v9, %v5536_v2 }
 0x5f4   :  { %9889 = vst [vmem:[#allocation4_spill] sm:$0xff] %v8852_v46 }
 0x5f5   :  { %v3759_v59 = vunpack.c.l.b16 %v2721_v10  ;;  %v8850_v36 = vpop.f32.mrf.mxu2  ;;  %3386 = vmatpush.bf16.msra.mxu3 %v5539_v61 }
 0x5f6   :  { %9888 = vst [vmem:[#allocation75_spill] sm:$0xff] %v8850_v36  ;;  %3327 = vmatpush.bf16.msra.mxu2 %v5535_v44 }
 0x5f7   :  { %v8830_v19 = vpack.c.b16 %v3759_v59, %v3758_v32 }
 0x5f9   :  { %9885 = vst [vmem:[#allocation76_spill] sm:$0xff] %v8830_v19  ;;  %3132 = vmatmul.bf16.gmra.mxu2 %v8165_v5  ;;  %3191 = vmatmul.bf16.gmra.mxu3 %v8165_v5 }
 0x5fa   :  { %3842 = vmatpush.bf16.msrb.mxu2 %v5751_v39  ;;  %3901 = vmatpush.bf16.msrb.mxu3 %v5755_v20  ;;  %v5743_v39 = vor.u32 %v6213_v55, %v5742_v33  ;;  %v5747_v20 = vor.u32 %v6212_v41, %v5744_v14  ;;  %v5734_v33 = vld [vmem:[%s9549_s3 + $0x250] sm:$0xf]  ;;  %v6211_v55 = vld [vmem:[%s9549_s3 + $0x254] sm:$0xf0]  ;;  %v6210_v41 = vld [vmem:[%s9549_s3 + $0x254] sm:$0xf] }
 0x5fc   :  { %v8859_v30 = vpop.f32.mrf.mxu3 }
 0x5fd   :  { %v8857_v49 = vpop.f32.mrf.mxu2  ;;  %9891 = vst [vmem:[#allocation10_spill] sm:$0xff] %v8859_v30 }
 0x5fe   :  { %9890 = vst [vmem:[#allocation6_spill] sm:$0xff] %v8857_v49  ;;  %3843 = vmatpush.bf16.msrb.mxu2 %v5743_v39  ;;  %3902 = vmatpush.bf16.msrb.mxu3 %v5747_v20  ;;  %v5735_v39 = vor.u32 %v6211_v55, %v5734_v33 }
 0x602   :  { %3844 = vmatpush.bf16.msrb.mxu2 %v5735_v39  ;;  %v6209_v39 = vld [vmem:[%s9549_s3 + $0x244] sm:$0xf0] }
 0x603   :  { %3693 = vmatmul.bf16.gmra.mxu1 %v8771_v62 }
 0x604   :  { %v8863_v60 = vpop.f32.mrf.mxu3 }
 0x605   :  { %v8861_v23 = vpop.f32.mrf.mxu2  ;;  %9893 = vst [vmem:[#allocation13_spill] sm:$0xff] %v8863_v60 }
 0x606   :  { %9892 = vst [vmem:[#allocation9_spill] sm:$0xff] %v8861_v23 }
 0x609   :  { %3137 = vmatmul.bf16.gmra.mxu2 %v8255_v53  ;;  %3196 = vmatmul.bf16.gmra.mxu3 %v8255_v53 }
 0x619   :  { %3142 = vmatmul.bf16.gmra.mxu2 %v8373_v11  ;;  %3201 = vmatmul.bf16.gmra.mxu3 %v8373_v11 }
 0x61c   :  { %v8879_v50 = vpop.f32.mrf.mxu2  ;;  %v8881_v10 = vpop.f32.mrf.mxu3 }
 0x61d   :  { %9894 = vst [vmem:[#allocation8_spill] sm:$0xff] %v8879_v50 }
 0x61e   :  { %9895 = vst [vmem:[#allocation12_spill] sm:$0xff] %v8881_v10 }
 0x624   :  { %v8883_v32 = vpop.f32.mrf.mxu2  ;;  %v8885_v59 = vpop.f32.mrf.mxu3 }
 0x625   :  { %9896 = vst [vmem:[#allocation11_spill] sm:$0xff] %v8883_v32 }
 0x626   :  { %9897 = vst [vmem:[#allocation15_spill] sm:$0xff] %v8885_v59 }
 0x629   :  { %3147 = vmatmul.bf16.gmra.mxu2 %v8469_v37  ;;  %3206 = vmatmul.bf16.gmra.mxu3 %v8469_v37 }
 0x62c   :  { %v8901_v35 = vpop.f32.mrf.mxu2  ;;  %v8903_v40 = vpop.f32.mrf.mxu3 }
 0x634   :  { %v8905_v9 = vpop.f32.mrf.mxu2  ;;  %v8907_v44 = vpop.f32.mrf.mxu3 }
 0x639   :  { %3152 = vmatmul.bf16.gmra.mxu2 %v8538_v25  ;;  %3211 = vmatmul.bf16.gmra.mxu3 %v8538_v25 }
 0x63c   :  { %v8911_v2 = vpop.f32.mrf.mxu2  ;;  %v8913_v61 = vpop.f32.mrf.mxu3 }
 0x644   :  { %v8927_v60 = vpop.f32.mrf.mxu2  ;;  %v8929_v23 = vpop.f32.mrf.mxu3 }
 0x649   :  { %3328 = vmatmul.bf16.vlgmr.msra.gmra.mxu2 %v8083_v63  ;;  %3387 = vmatmul.bf16.vlgmr.msra.gmra.mxu3 %v8083_v63  ;;  %v5736_v63 = vld [vmem:[%s9549_s3 + $0x258] sm:$0xf0] }
 0x64a   :  { %v5739_v14 = vor.u32 %v6210_v41, %v5736_v63  ;;  %v5726_v41 = vld [vmem:[%s9549_s3 + $0x240] sm:$0xf] }
 0x64b   :  { %v5727_v63 = vor.u32 %v6209_v39, %v5726_v41  ;;  %v5718_v41 = vld [vmem:[%s9549_s3 + $0x230] sm:$0xf]  ;;  %v6206_v39 = vld [vmem:[%s9549_s3 + $0x234] sm:$0xf] }
 0x64c   :  { %v8933_v19 = vpop.f32.mrf.mxu2  ;;  %v8935_v62 = vpop.f32.mrf.mxu3  ;;  %3903 = vmatpush.bf16.msrb.mxu3 %v5739_v14  ;;  %v5728_v14 = vld [vmem:[%s9549_s3 + $0x248] sm:$0xf0] }
 0x64d   :  { %3845 = vmatpush.bf16.msrb.mxu2 %v5727_v63  ;;  %v5720_v63 = vld [vmem:[%s9549_s3 + $0x238] sm:$0xf0] }
 0x654   :  { %v8949_v20 = vpop.f32.mrf.mxu2  ;;  %v8951_v59 = vpop.f32.mrf.mxu3 }
 0x659   :  { %3333 = vmatmul.bf16.gmra.mxu2 %v8107_v22  ;;  %3392 = vmatmul.bf16.gmra.mxu3 %v8107_v22  ;;  %v6208_v22 = vld [vmem:[%s9549_s3 + $0x244] sm:$0xf] }
 0x65a   :  { %v5731_v50 = vor.u32 %v6208_v22, %v5728_v14  ;;  %v5723_v14 = vor.u32 %v6206_v39, %v5720_v63  ;;  %v5710_v39 = vld [vmem:[%s9549_s3 + $0x220] sm:$0xf]  ;;  %v6204_v63 = vld [vmem:[%s9549_s3 + $0x224] sm:$0xf] }
 0x65c   :  { %v8955_v32 = vpop.f32.mrf.mxu2  ;;  %v8957_v10 = vpop.f32.mrf.mxu3  ;;  %3904 = vmatpush.bf16.msrb.mxu3 %v5731_v50  ;;  %v6207_v50 = vld [vmem:[%s9549_s3 + $0x234] sm:$0xf0] }
 0x65d   :  { %v5719_v22 = vor.u32 %v6207_v50, %v5718_v41 }
 0x65f   :  { %3846 = vmatpush.bf16.msrb.mxu2 %v5719_v22  ;;  %v6205_v22 = vld [vmem:[%s9549_s3 + $0x224] sm:$0xf0] }
 0x660   :  { %3905 = vmatpush.bf16.msrb.mxu3 %v5723_v14  ;;  %v5711_v14 = vor.u32 %v6205_v22, %v5710_v39  ;;  %v5702_v39 = vld [vmem:[%s9549_s3 + $0x210] sm:$0xf] }
 0x663   :  { %3847 = vmatpush.bf16.msrb.mxu2 %v5711_v14 }
 0x664   :  { %v8959_v33 = vpop.f32.mrf.mxu2  ;;  %v8961_v55 = vpop.f32.mrf.mxu3 }
 0x669   :  { %3338 = vmatmul.bf16.gmra.mxu2 %v8131_v34  ;;  %3397 = vmatmul.bf16.gmra.mxu3 %v8131_v34 }
 0x66c   :  { %v8977_v30 = vpop.f32.mrf.mxu2  ;;  %v8979_v49 = vpop.f32.mrf.mxu3 }
 0x674   :  { %v8981_v46 = vpop.f32.mrf.mxu2  ;;  %v8983_v36 = vpop.f32.mrf.mxu3 }
 0x679   :  { %3343 = vmatmul.bf16.gmra.mxu2 %v8165_v5  ;;  %3402 = vmatmul.bf16.gmra.mxu3 %v8165_v5 }
 0x67c   :  { %v8999_v58 = vpop.f32.mrf.mxu2  ;;  %v9001_v26 = vpop.f32.mrf.mxu3 }
 0x684   :  { %v9003_v27 = vpop.f32.mrf.mxu2  ;;  %v9005_v13 = vpop.f32.mrf.mxu3 }
 0x685   :  { %9898 = vst [vmem:[#allocation17_spill] sm:$0xff] %v9005_v13 }
 0x689   :  { %3348 = vmatmul.bf16.gmra.mxu2 %v8255_v53  ;;  %3407 = vmatmul.bf16.gmra.mxu3 %v8255_v53 }
 0x68c   :  { %v9009_v41 = vpop.f32.mrf.mxu2  ;;  %v9011_v50 = vpop.f32.mrf.mxu3 }
 0x68d   :  { %9899 = vst [vmem:[#allocation14_spill] sm:$0xff] %v9009_v41  ;;  %v5715_v41 = vor.u32 %v6204_v63, %v5712_v4  ;;  %v6203_v4 = vld [vmem:[%s9549_s3 + $0x214] sm:$0xf0]  ;;  %v5704_v63 = vld [vmem:[%s9549_s3 + $0x218] sm:$0xf0] }
 0x68e   :  { %9900 = vst [vmem:[#allocation21_spill] sm:$0xff] %v9011_v50  ;;  %v5703_v22 = vor.u32 %v6203_v4, %v5702_v39 }
 0x68f   :  { %3906 = vmatpush.bf16.msrb.mxu3 %v5715_v41  ;;  %v6202_v41 = vld [vmem:[%s9549_s3 + $0x214] sm:$0xf] }
 0x690   :  { %v5707_v14 = vor.u32 %v6202_v41, %v5704_v63  ;;  %3848 = vmatpush.bf16.msrb.mxu2 %v5703_v22  ;;  %v5694_v41 = vld [vmem:[%s9549_s3 + $0x200] sm:$0xf]  ;;  %v6201_v22 = vld [vmem:[%s9549_s3 + $0x204] sm:$0xf0]  ;;  %v6200_v63 = vld [vmem:[%s9549_s3 + $0x204] sm:$0xf] }
 0x693   :  { %3907 = vmatpush.bf16.msrb.mxu3 %v5707_v14  ;;  %v5695_v14 = vor.u32 %v6201_v22, %v5694_v41  ;;  %v3168_v41 = vadd.f32 %v8903_v40, %v8556_v16  ;;  %v3114_v16 = vadd.f32 %v8911_v2, %v8597_v47  ;;  %v3178_v2 = vadd.f32 %v8935_v62, %v8635_v24 }
 0x694   :  { %v9025_v50 = vpop.f32.mrf.mxu2  ;;  %v9027_v51 = vpop.f32.mrf.mxu3  ;;  %v3124_v24 = vadd.f32 %v8955_v32, %v8683_v0  ;;  %v3183_v62 = vadd.f32 %v8957_v10, %v8686_v7  ;;  %v3129_v7 = vadd.f32 %v8977_v30, %v8724_v3  ;;  %v3188_v10 = vadd.f32 %v8979_v49, %v8726_v48 }
 0x695   :  { %9901 = vst [vmem:[#allocation19_spill] sm:$0xff] %v9025_v50  ;;  %3849 = vmatpush.bf16.msrb.mxu2 %v5695_v14  ;;  %v3134_v48 = vadd.f32 %v8999_v58, %v8767_v17  ;;  %v3193_v49 = vadd.f32 %v9001_v26, %v8769_v1  ;;  %v9917_v1 = vld [vmem:[#allocation71_spill] sm:$0xff]  ;;  %v9918_v26 = vld [vmem:[#allocation14_spill] sm:$0xff] }
 0x696   :  { %9902 = vst [vmem:[#allocation16_spill] sm:$0xff] %v9027_v51  ;;  %v3139_v58 = vadd.f32 %v9918_v26, %v9917_v1 }
 0x699   :  { %3353 = vmatmul.bf16.gmra.mxu2 %v8373_v11  ;;  %3412 = vmatmul.bf16.gmra.mxu3 %v8373_v11 }
 0x69c   :  { %v9031_v13 = vpop.f32.mrf.mxu2  ;;  %v9033_v57 = vpop.f32.mrf.mxu3 }
 0x69d   :  { %9903 = vst [vmem:[#allocation31_spill] sm:$0xff] %v9031_v13 }
 0x69e   :  { %9904 = vst [vmem:[#allocation23_spill] sm:$0xff] %v9033_v57 }
 0x6a4   :  { %v9047_v57 = vpop.f32.mrf.mxu2  ;;  %v9049_v13 = vpop.f32.mrf.mxu3 }
 0x6a5   :  { %9905 = vst [vmem:[#allocation20_spill] sm:$0xff] %v9047_v57 }
 0x6a6   :  { %9906 = vst [vmem:[#allocation18_spill] sm:$0xff] %v9049_v13 }
 0x6a9   :  { %3358 = vmatmul.bf16.gmra.mxu2 %v8469_v37  ;;  %3417 = vmatmul.bf16.gmra.mxu3 %v8469_v37 }
 0x6ac   :  { %v9053_v51 = vpop.f32.mrf.mxu2  ;;  %v9055_v50 = vpop.f32.mrf.mxu3 }
 0x6ad   :  { %9907 = vst [vmem:[#allocation22_spill] sm:$0xff] %v9053_v51 }
 0x6ae   :  { %9908 = vst [vmem:[#allocation27_spill] sm:$0xff] %v9055_v50  ;;  %v5696_v50 = vld [vmem:[%s9549_s3 + $0x208] sm:$0xf0] }
 0x6b4   :  { %v9057_v39 = vpop.f32.mrf.mxu2  ;;  %v9059_v4 = vpop.f32.mrf.mxu3 }
 0x6b5   :  { %9909 = vst [vmem:[#allocation30_spill] sm:$0xff] %v9057_v39  ;;  %v5699_v39 = vor.u32 %v6200_v63, %v5696_v50  ;;  %v3109_v50 = vadd.f32 %v8901_v35, %v8552_v12  ;;  %v3173_v35 = vadd.f32 %v8913_v61, %v8599_v38  ;;  %v3119_v38 = vadd.f32 %v8933_v19, %v8633_v45 }
 0x6b6   :  { %9910 = vst [vmem:[#allocation25_spill] sm:$0xff] %v9059_v4 }
 0x6b7   :  { %3908 = vmatpush.bf16.msrb.mxu3 %v5699_v39 }
 0x6b9   :  { %3363 = vmatmul.bf16.gmra.mxu2 %v8538_v25  ;;  %3422 = vmatmul.bf16.gmra.mxu3 %v8538_v25 }
 0x6bc   :  { %v9075_v4 = vpop.f32.mrf.mxu2  ;;  %v9077_v51 = vpop.f32.mrf.mxu3 }
 0x6bd   :  { %9911 = vst [vmem:[#allocation29_spill] sm:$0xff] %v9075_v4 }
 0x6be   :  { %9912 = vst [vmem:[#allocation35_spill] sm:$0xff] %v9077_v51 }
 0x6c4   :  { %v9079_v13 = vpop.f32.mrf.mxu2  ;;  %v9081_v57 = vpop.f32.mrf.mxu3 }
 0x6c5   :  { %9913 = vst [vmem:[#allocation26_spill] sm:$0xff] %v9079_v13  ;;  %v3111_v13 = vadd.f32 %v8905_v9, %v8573_v54 }
 0x6c6   :  { %9914 = vst [vmem:[#allocation32_spill] sm:$0xff] %v9081_v57  ;;  %v3170_v57 = vadd.f32 %v8907_v44, %v8576_v28 }
 0x6c9   :  { %3368 = vmatmul.bf16.gmra.mxu2 %v8611_v6  ;;  %3427 = vmatmul.bf16.gmra.mxu3 %v8611_v6 }
 0x6cc   :  { %v3329_v22 = vpop.f32.mrf.mxu2  ;;  %v3388_v39 = vpop.f32.mrf.mxu3 }
 0x6cd   :  { %v9089_v63 = vadd.f32 %v3329_v22, %v3109_v50  ;;  %v9091_v14 = vadd.f32 %v3388_v39, %v3168_v41  ;;  %v3180_v50 = vadd.f32 %v8951_v59, %v8674_v42  ;;  %v3126_v59 = vadd.f32 %v8959_v33, %v8705_v56 }
 0x6ce   :  { %v3185_v39 = vadd.f32 %v8961_v55, %v8707_v31  ;;  %v3131_v55 = vadd.f32 %v8981_v46, %v8757_v8 }
 0x6d4   :  { %v3331_v51 = vpop.f32.mrf.mxu2  ;;  %v3390_v4 = vpop.f32.mrf.mxu3 }
 0x6d5   :  { %v9097_v6 = vadd.f32 %v3331_v51, %v3111_v13  ;;  %v9099_v12 = vadd.f32 %v3390_v4, %v3170_v57  ;;  %v3116_v57 = vadd.f32 %v8927_v60, %v8607_v29  ;;  %v3175_v51 = vadd.f32 %v8929_v23, %v8609_v52 }
 0x6d6   :  { %v3121_v23 = vadd.f32 %v8949_v20, %v8672_v43 }
 0x6d9   :  { %3373 = vmatmul.bf16.gmra.mxu2 %v8701_v15  ;;  %3432 = vmatmul.bf16.gmra.mxu3 %v8701_v15 }
 0x6dc   :  { %v3334_v54 = vpop.f32.mrf.mxu2  ;;  %v3393_v40 = vpop.f32.mrf.mxu3 }
 0x6dd   :  { %v9107_v9 = vadd.f32 %v3334_v54, %v3114_v16  ;;  %v9109_v28 = vadd.f32 %v3393_v40, %v3173_v35  ;;  %v3190_v54 = vadd.f32 %v8983_v36, %v8759_v21  ;;  %v3136_v36 = vadd.f32 %v9003_v27, %v8787_v18 }
 0x6e4   :  { %v3336_v13 = vpop.f32.mrf.mxu2  ;;  %v3395_v44 = vpop.f32.mrf.mxu3 }
 0x6e5   :  { %v9115_v4 = vadd.f32 %v3336_v13, %v3116_v57  ;;  %v9117_v47 = vadd.f32 %v3395_v44, %v3175_v51  ;;  %v9915_v51 = vld [vmem:[#allocation70_spill] sm:$0xff]  ;;  %v9916_v13 = vld [vmem:[#allocation17_spill] sm:$0xff] }
 0x6e6   :  { %v3195_v44 = vadd.f32 %v9916_v13, %v9915_v51  ;;  %v9930_v51 = vld [vmem:[#allocation20_spill] sm:$0xff] }
 0x6e9   :  { %3850 = vmatmul.bf16.vlgmr.msrb.gmra.mxu2 %v8131_v34  ;;  %3909 = vmatmul.bf16.vlgmr.msrb.gmra.mxu3 %v8131_v34 }
 0x6ec   :  { %v3339_v29 = vpop.f32.mrf.mxu2  ;;  %v3398_v60 = vpop.f32.mrf.mxu3 }
 0x6ed   :  { %v9125_v61 = vadd.f32 %v3339_v29, %v3119_v38  ;;  %v9127_v52 = vadd.f32 %v3398_v60, %v3178_v2  ;;  %v9919_v29 = vld [vmem:[#allocation72_spill] sm:$0xff]  ;;  %v9920_v60 = vld [vmem:[#allocation21_spill] sm:$0xff] }
 0x6f4   :  { %v3341_v41 = vpop.f32.mrf.mxu2  ;;  %v3400_v34 = vpop.f32.mrf.mxu3 }
 0x6f5   :  { %v9133_v22 = vadd.f32 %v3341_v41, %v3121_v23  ;;  %v9135_v45 = vadd.f32 %v3400_v34, %v3180_v50  ;;  %v3198_v23 = vadd.f32 %v9920_v60, %v9919_v29  ;;  %v9921_v34 = vld [vmem:[#allocation73_spill] sm:$0xff]  ;;  %v9933_v60 = vld [vmem:[#allocation66_spill] sm:$0xff] }
 0x6f6   :  { %v6231_v29 = vld [vmem:[%s9552_s5 + $0x78] sm:$0xff] }
 0x6f7   :  { %4151 = vmatpush.bf16.msra.mxu0 %v6231_v29 }
 0x6f9   :  { %3855 = vmatmul.bf16.gmra.mxu2 %v8165_v5  ;;  %3914 = vmatmul.bf16.gmra.mxu3 %v8165_v5 }
 0x6fc   :  { %v3344_v43 = vpop.f32.mrf.mxu2  ;;  %v3403_v19 = vpop.f32.mrf.mxu3 }
 0x6fd   :  { %v9143_v20 = vadd.f32 %v3344_v43, %v3124_v24  ;;  %v9145_v42 = vadd.f32 %v3403_v19, %v3183_v62  ;;  %v9922_v24 = vld [vmem:[#allocation19_spill] sm:$0xff]  ;;  %v9923_v43 = vld [vmem:[#allocation74_spill] sm:$0xff]  ;;  %v9924_v19 = vld [vmem:[#allocation16_spill] sm:$0xff] }
 0x6fe   :  { %v3141_v62 = vadd.f32 %v9922_v24, %v9921_v34  ;;  %v9936_v24 = vld [vmem:[#allocation10_spill] sm:$0xff] }
 0x704   :  { %v3346_v16 = vpop.f32.mrf.mxu2  ;;  %v3405_v5 = vpop.f32.mrf.mxu3 }
 0x705   :  { %v9151_v35 = vadd.f32 %v3346_v16, %v3126_v59  ;;  %v9153_v0 = vadd.f32 %v3405_v5, %v3185_v39  ;;  %v3200_v59 = vadd.f32 %v9924_v19, %v9923_v43 }
 0x709   :  { %3860 = vmatmul.bf16.gmra.mxu2 %v8255_v53  ;;  %3919 = vmatmul.bf16.gmra.mxu3 %v8255_v53 }
 0x70c   :  { %v3349_v56 = vpop.f32.mrf.mxu2  ;;  %v3408_v32 = vpop.f32.mrf.mxu3 }
 0x70d   :  { %v9161_v33 = vadd.f32 %v3349_v56, %v3129_v7  ;;  %v9163_v31 = vadd.f32 %v3408_v32, %v3188_v10  ;;  %v9925_v7 = vld [vmem:[#allocation7_spill] sm:$0xff]  ;;  %v9927_v32 = vld [vmem:[#allocation5_spill] sm:$0xff] }
 0x70e   :  { %v9926_v10 = vld [vmem:[#allocation31_spill] sm:$0xff] }
 0x70f   :  { %v3144_v56 = vadd.f32 %v9926_v10, %v9925_v7 }
 0x714   :  { %v3351_v40 = vpop.f32.mrf.mxu2  ;;  %v3410_v53 = vpop.f32.mrf.mxu3 }
 0x715   :  { %v9169_v57 = vadd.f32 %v3351_v40, %v3131_v55  ;;  %v9171_v3 = vadd.f32 %v3410_v53, %v3190_v54  ;;  %v9928_v55 = vld [vmem:[#allocation23_spill] sm:$0xff] }
 0x716   :  { %v3203_v54 = vadd.f32 %v9928_v55, %v9927_v32  ;;  %v6255_v55 = vld [vmem:[%s9552_s5 + $0x138] sm:$0xff] }
 0x717   :  { %4478 = vmatpush.bf16.msra.mxu2 %v6255_v55 }
 0x719   :  { %3865 = vmatmul.bf16.gmra.mxu2 %v8373_v11  ;;  %3924 = vmatmul.bf16.gmra.mxu3 %v8373_v11 }
 0x71c   :  { %v3354_v8 = vpop.f32.mrf.mxu2  ;;  %v3413_v46 = vpop.f32.mrf.mxu3 }
 0x71d   :  { %v9179_v30 = vadd.f32 %v3354_v8, %v3134_v48  ;;  %v9181_v21 = vadd.f32 %v3413_v46, %v3193_v49  ;;  %v9219_v8 = vpop.f32.mrf.mxu0  ;;  %v9221_v46 = vpop.f32.mrf.mxu1 }
 0x724   :  { %v3356_v38 = vpop.f32.mrf.mxu2  ;;  %v3415_v11 = vpop.f32.mrf.mxu3 }
 0x725   :  { %v9187_v2 = vadd.f32 %v3356_v38, %v3136_v36  ;;  %v9189_v17 = vadd.f32 %v3415_v11, %v3195_v44  ;;  %v9929_v36 = vld [vmem:[#allocation75_spill] sm:$0xff]  ;;  %v9932_v44 = vld [vmem:[#allocation18_spill] sm:$0xff] }
 0x726   :  { %v3146_v13 = vadd.f32 %v9930_v51, %v9929_v36  ;;  %v6230_v36 = vld [vmem:[%s9552_s5 + $0x70] sm:$0xff] }
 0x727   :  { %v9941_v51 = vld [vmem:[#allocation8_spill] sm:$0xff]  ;;  %4152 = vmatpush.bf16.msra.mxu0 %v6230_v36 }
 0x729   :  { %3870 = vmatmul.bf16.gmra.mxu2 %v8469_v37  ;;  %3929 = vmatmul.bf16.gmra.mxu3 %v8469_v37 }
 0x72c   :  { %v3359_v18 = vpop.f32.mrf.mxu2  ;;  %v3418_v27 = vpop.f32.mrf.mxu3 }
 0x72d   :  { %v9197_v50 = vadd.f32 %v3359_v18, %v3139_v58  ;;  %v9199_v41 = vadd.f32 %v3418_v27, %v3198_v23  ;;  %v6223_v23 = vld [vmem:[%s9552_s5 + $0x38] sm:$0xff]  ;;  %v9934_v18 = vld [vmem:[#allocation6_spill] sm:$0xff] }
 0x72e   :  { %v9935_v27 = vld [vmem:[#allocation22_spill] sm:$0xff]  ;;  %4219 = vmatpush.bf16.msrb.mxu1 %v6223_v23  ;;  %v6221_v23 = vld [vmem:[%s9552_s5 + $0x28] sm:$0xff] }
 0x72f   :  { %v3149_v34 = vadd.f32 %v9935_v27, %v9934_v18 }
 0x734   :  { %v3361_v39 = vpop.f32.mrf.mxu2  ;;  %v3420_v37 = vpop.f32.mrf.mxu3 }
 0x735   :  { %v9205_v16 = vadd.f32 %v3361_v39, %v3141_v62  ;;  %v9207_v5 = vadd.f32 %v3420_v37, %v3200_v59  ;;  %v9937_v62 = vld [vmem:[#allocation27_spill] sm:$0xff]  ;;  %v9243_v39 = vpop.f32.mrf.mxu0  ;;  %v9245_v37 = vpop.f32.mrf.mxu1 }
 0x736   :  { %v3208_v43 = vadd.f32 %v9937_v62, %v9936_v24  ;;  %v9947_v24 = vld [vmem:[#allocation11_spill] sm:$0xff]  ;;  %v9948_v62 = vld [vmem:[#allocation26_spill] sm:$0xff] }
 0x739   :  { %3875 = vmatmul.bf16.gmra.mxu2 %v8538_v25  ;;  %3934 = vmatmul.bf16.gmra.mxu3 %v8538_v25  ;;  %v9931_v25 = vld [vmem:[#allocation4_spill] sm:$0xff] }
 0x73a   :  { %v3205_v38 = vadd.f32 %v9932_v44, %v9931_v25  ;;  %v9943_v44 = vld [vmem:[#allocation12_spill] sm:$0xff] }
 0x73c   :  { %v3364_v40 = vpop.f32.mrf.mxu2  ;;  %v3423_v53 = vpop.f32.mrf.mxu3 }
 0x73d   :  { %v9215_v48 = vadd.f32 %v3364_v40, %v3144_v56  ;;  %v9217_v49 = vadd.f32 %v3423_v53, %v3203_v54  ;;  %v3595_v54 = vpop.f32.mrf.mxu0  ;;  %v3654_v40 = vpop.f32.mrf.mxu1  ;;  %v6222_v53 = vld [vmem:[%s9552_s5 + $0x30] sm:$0xff] }
 0x73e   :  { %4220 = vmatpush.bf16.msrb.mxu1 %v6222_v53 }
 0x742   :  { %4221 = vmatpush.bf16.msrb.mxu1 %v6221_v23 }
 0x744   :  { %v3366_v11 = vpop.f32.mrf.mxu2  ;;  %v3425_v1 = vpop.f32.mrf.mxu3 }
 0x745   :  { %v9227_v26 = vadd.f32 %v3366_v11, %v3146_v13  ;;  %v9229_v58 = vadd.f32 %v3425_v1, %v3205_v38  ;;  %v9942_v13 = vld [vmem:[#allocation29_spill] sm:$0xff]  ;;  %v9944_v38 = vld [vmem:[#allocation35_spill] sm:$0xff]  ;;  %v3597_v18 = vpop.f32.mrf.mxu0  ;;  %v3656_v27 = vpop.f32.mrf.mxu1 }
 0x746   :  { %v3154_v25 = vadd.f32 %v9942_v13, %v9941_v51  ;;  %v3213_v11 = vadd.f32 %v9944_v38, %v9943_v44  ;;  %v9953_v44 = vld [vmem:[#allocation68_spill] sm:$0xff] }
 0x747   :  { %v6218_v38 = vld [vmem:[%s9552_s5 + $0x10] sm:$0xff] }
 0x749   :  { %3880 = vmatmul.bf16.gmra.mxu2 %v9933_v60  ;;  %3939 = vmatmul.bf16.gmra.mxu3 %v9933_v60 }
 0x74c   :  { %v3369_v19 = vpop.f32.mrf.mxu2  ;;  %v3428_v59 = vpop.f32.mrf.mxu3 }
 0x74d   :  { %v9247_v7 = vadd.f32 %v3369_v19, %v3149_v34  ;;  %v9249_v10 = vadd.f32 %v3428_v59, %v3208_v43  ;;  %v6220_v34 = vld [vmem:[%s9552_s5 + $0x20] sm:$0xff]  ;;  %v3156_v43 = vadd.f32 %v9948_v62, %v9947_v24  ;;  %v9949_v19 = vld [vmem:[#allocation15_spill] sm:$0xff]  ;;  %v9950_v59 = vld [vmem:[#allocation32_spill] sm:$0xff] }
 0x74e   :  { %v3215_v55 = vadd.f32 %v9950_v59, %v9949_v19  ;;  %4222 = vmatpush.bf16.msrb.mxu1 %v6220_v34  ;;  %v6217_v34 = vld [vmem:[%s9552_s5 + $0x8] sm:$0xff]  ;;  %v6216_v24 = vld [vmem:[%s9552_s5] sm:$0xff]  ;;  %v6254_v62 = vld [vmem:[%s9552_s5 + $0x130] sm:$0xff] }
 0x74f   :  { %9938 = vst [vmem:[#allocation28_spill] sm:$0xff] %v9249_v10  ;;  %4479 = vmatpush.bf16.msra.mxu2 %v6254_v62 }
 0x754   :  { %v9251_v56 = vpop.f32.mrf.mxu2  ;;  %v9253_v32 = vpop.f32.mrf.mxu3 }
 0x755   :  { %9939 = vst [vmem:[#allocation78_spill] sm:$0xff] %v9251_v56 }
 0x756   :  { %9940 = vst [vmem:[#allocation77_spill] sm:$0xff] %v9253_v32 }
 0x759   :  { %3885 = vmatmul.bf16.gmra.mxu2 %v8701_v15  ;;  %3944 = vmatmul.bf16.gmra.mxu3 %v8701_v15 }
 0x75c   :  { %v3374_v1 = vpop.f32.mrf.mxu2  ;;  %v3433_v29 = vpop.f32.mrf.mxu3 }
 0x75d   :  { %v9270_v60 = vadd.f32 %v3374_v1, %v3154_v25  ;;  %v9272_v15 = vadd.f32 %v3433_v29, %v3213_v11  ;;  %v6219_v25 = vld [vmem:[%s9552_s5 + $0x18] sm:$0xff]  ;;  %v9296_v11 = vpop.f32.mrf.mxu0  ;;  %v9298_v1 = vpop.f32.mrf.mxu1 }
 0x75e   :  { %4223 = vmatpush.bf16.msrb.mxu1 %v6219_v25  ;;  %v3699_v25 = vadd.f32 %v9219_v8, %v9089_v63  ;;  %v9327_v63 = vld [vmem:[%s9551_s4] ss:$0 sm:$0xff]  ;;  %v3705_v8 = vadd.f32 %v3597_v18, %v9115_v4  ;;  %v6253_v18 = vld [vmem:[%s9552_s5 + $0x128] sm:$0xff] }
 0x75f   :  { %9945 = vst [vmem:[#allocation80_spill] sm:$0xff] %v9270_v60  ;;  %4480 = vmatpush.bf16.msra.mxu2 %v6253_v18 }
 0x760   :  { %9946 = vst [vmem:[#allocation34_spill] sm:$0xff] %v9272_v15 }
 0x762   :  { %4224 = vmatpush.bf16.msrb.mxu1 %v6218_v38  ;;  %v3703_v38 = vadd.f32 %v3595_v54, %v9107_v9  ;;  %v3701_v9 = vadd.f32 %v9243_v39, %v9097_v6  ;;  %v6227_v6 = vld [vmem:[%s9552_s5 + $0x58] sm:$0xff] }
 0x764   :  { %v3376_v53 = vpop.f32.mrf.mxu2  ;;  %v3435_v36 = vpop.f32.mrf.mxu3 }
 0x765   :  { %v9284_v51 = vadd.f32 %v3376_v53, %v3156_v43  ;;  %v9286_v13 = vadd.f32 %v3435_v36, %v3215_v55  ;;  %v6229_v43 = vld [vmem:[%s9552_s5 + $0x68] sm:$0xff]  ;;  %v9312_v55 = vpop.f32.mrf.mxu0  ;;  %v9314_v53 = vpop.f32.mrf.mxu1  ;;  %v9954_v36 = vld [vmem:[#allocation76_spill] sm:$0xff] }
 0x766   :  { %4225 = vmatpush.bf16.msrb.mxu1 %v6217_v34  ;;  %4153 = vmatpush.bf16.msra.mxu0 %v6229_v43  ;;  %v3704_v34 = vadd.f32 %v3654_v40, %v9109_v28  ;;  %v3702_v28 = vadd.f32 %v9245_v37, %v9099_v12 }
 0x767   :  { %9951 = vst [vmem:[#allocation24_spill] sm:$0xff] %v9284_v51 }
 0x768   :  { %9952 = vst [vmem:[#allocation33_spill] sm:$0xff] %v9286_v13 }
 0x769   :  { %3890 = vmatmul.bf16.gmra.mxu2 %v9953_v44  ;;  %3949 = vmatmul.bf16.gmra.mxu3 %v9953_v44  ;;  %v3700_v44 = vadd.f32 %v9221_v46, %v9091_v14  ;;  %v6228_v14 = vld [vmem:[%s9552_s5 + $0x60] sm:$0xff]  ;;  %v3706_v46 = vadd.f32 %v3656_v27, %v9117_v47 }
 0x76a   :  { %4226 = vmatpush.bf16.msrb.mxu1 %v6216_v24  ;;  %4154 = vmatpush.bf16.msra.mxu0 %v6228_v14 }
 0x76c   :  { %v3851_v29 = vpop.f32.mrf.mxu2  ;;  %v3910_v23 = vpop.f32.mrf.mxu3 }
 0x76d   :  { %v3960_v51 = vadd.f32 %v3851_v29, %v3699_v25  ;;  %v3961_v32 = vadd.f32 %v3910_v23, %v3700_v44  ;;  %v3605_v56 = vpop.f32.mrf.mxu0  ;;  %v3664_v15 = vpop.f32.mrf.mxu1 }
 0x76e   :  { %4155 = vmatpush.bf16.msra.mxu0 %v6227_v6 }
 0x774   :  { %v3853_v19 = vpop.f32.mrf.mxu2  ;;  %v3912_v59 = vpop.f32.mrf.mxu3 }
 0x775   :  { %v3607_v12 = vpop.f32.mrf.mxu0  ;;  %v3666_v4 = vpop.f32.mrf.mxu1 }
 0x779   :  { %3895 = vmatmul.bf16.gmra.mxu2 %v9954_v36  ;;  %3954 = vmatmul.bf16.gmra.mxu3 %v9954_v36 }
 0x77c   :  { %v3856_v24 = vpop.f32.mrf.mxu2  ;;  %v3915_v13 = vpop.f32.mrf.mxu3 }
 0x77d   :  { %v3964_v62 = vadd.f32 %v3856_v24, %v3703_v38  ;;  %v3965_v43 = vadd.f32 %v3915_v13, %v3704_v34  ;;  %v6225_v38 = vld [vmem:[%s9552_s5 + $0x48] sm:$0xff]  ;;  %v9357_v14 = vpop.f32.mrf.mxu1 }
 0x77f   :  { %v4000_v60 = vmax.f32 %v3960_v51, %v3964_v62  ;;  %v4001_v36 = vmax.f32 %v3961_v32, %v3965_v43  ;;  %v3962_v32 = vadd.f32 %v3853_v19, %v3701_v9  ;;  %v6224_v43 = vld [vmem:[%s9552_s5 + $0x40] sm:$0xff] }
 0x781   :  { %v4020_v10 = vmax.f32 %v4000_v60, %v4001_v36  ;;  %v3963_v60 = vadd.f32 %v3912_v59, %v3702_v28  ;;  %v9355_v36 = vpop.f32.mrf.mxu0  ;;  %v6252_v28 = vld [vmem:[%s9552_s5 + $0x120] sm:$0xff] }
 0x782   :  { %4481 = vmatpush.bf16.msra.mxu2 %v6252_v28 }
 0x783   :  { %v4034_v51 = vadd.f32 %v9327_v63, %v4020_v10  ;;  %v6226_v10 = vld [vmem:[%s9552_s5 + $0x50] sm:$0xff] }
 0x784   :  { %v3858_v54 = vpop.f32.mrf.mxu2  ;;  %v3917_v40 = vpop.f32.mrf.mxu3  ;;  %4156 = vmatpush.bf16.msra.mxu0 %v6226_v10 }
 0x785   :  { %v3966_v13 = vadd.f32 %v3858_v54, %v3705_v8  ;;  %v3967_v29 = vadd.f32 %v3917_v40, %v3706_v46  ;;  %v4044_v37 = vmax.f32 %v4034_v51, 0.0  ;;  %v6238_v54 = vld [vmem:[%s9552_s5 + $0xb0] sm:$0xff]  ;;  %v3707_v40 = vadd.f32 %v9296_v11, %v9125_v61  ;;  %v6237_v61 = vld [vmem:[%s9552_s5 + $0xa8] sm:$0xff] }
 0x786   :  { %v3711_v51 = vadd.f32 %v3605_v56, %v9143_v20  ;;  %v3709_v56 = vadd.f32 %v9312_v55, %v9133_v22  ;;  %v6235_v22 = vld [vmem:[%s9552_s5 + $0x98] sm:$0xff] }
 0x787   :  { %v4002_v39 = vmax.f32 %v3962_v32, %v3966_v13  ;;  %v4003_v23 = vmax.f32 %v3963_v60, %v3967_v29  ;;  %v4054_v25 = vpack.c.bf16 %v4044_v37, %v4044_v37  ;;  %v6239_v32 = vld [vmem:[%s9552_s5 + $0xb8] sm:$0xff]  ;;  %v3708_v60 = vadd.f32 %v9298_v1, %v9127_v52 }
 0x788   :  { %4157 = vmatpush.bf16.msra.mxu0 %v6225_v38  ;;  %v3712_v13 = vadd.f32 %v3664_v15, %v9145_v42  ;;  %v6236_v42 = vld [vmem:[%s9552_s5 + $0xa0] sm:$0xff]  ;;  %v3710_v15 = vadd.f32 %v9314_v53, %v9135_v45  ;;  %v3713_v1 = vadd.f32 %v3607_v12, %v9151_v35  ;;  %v6234_v12 = vld [vmem:[%s9552_s5 + $0x90] sm:$0xff] }
 0x789   :  { %v4021_v47 = vmax.f32 %v4002_v39, %v4003_v23  ;;  %v4167_v24 = vunpack.c.l.b16 %v4054_v25  ;;  %v9374_v39 = vpop.f32.mrf.mxu0  ;;  %v9376_v23 = vpop.f32.mrf.mxu1 }
 0x78b   :  { %v4035_v27 = vadd.f32 %v9327_v63, %v4021_v47 }
 0x78c   :  { %v3861_v19 = vpop.f32.mrf.mxu2  ;;  %v3920_v59 = vpop.f32.mrf.mxu3  ;;  %4158 = vmatpush.bf16.msra.mxu0 %v6224_v43 }
 0x78d   :  { %v4045_v44 = vmax.f32 %v4035_v27, 0.0  ;;  %v3968_v37 = vadd.f32 %v3861_v19, %v3707_v40  ;;  %v3969_v47 = vadd.f32 %v3920_v59, %v3708_v60  ;;  %v3714_v27 = vadd.f32 %v3666_v4, %v9153_v0 }
 0x78f   :  { %v4055_v34 = vpack.c.bf16 %v4045_v44, %v4045_v44 }
 0x790   :  { %4304 = vmatpush.bf16.msrb.mxu0 %v6239_v32 }
 0x791   :  { %v4168_v62 = vunpack.c.l.b16 %v4055_v34  ;;  %v3615_v55 = vpop.f32.mrf.mxu0 }
 0x793   :  { %v4169_v9 = vpack.c.b16 %v4168_v62, %v4167_v24  ;;  %v3674_v62 = vpop.f32.mrf.mxu1 }
 0x794   :  { %v3863_v8 = vpop.f32.mrf.mxu2  ;;  %v3922_v46 = vpop.f32.mrf.mxu3  ;;  %4305 = vmatpush.bf16.msrb.mxu0 %v6238_v54 }
 0x795   :  { %4227 = vmatmul.bf16.vlgmr.msrb.gmra.mxu1 %v4169_v9  ;;  %v3970_v19 = vadd.f32 %v3863_v8, %v3709_v56  ;;  %v3971_v44 = vadd.f32 %v3922_v46, %v3710_v15  ;;  %v6233_v46 = vld [vmem:[%s9552_s5 + $0x88] sm:$0xff]  ;;  %v3719_v56 = vadd.f32 %v3615_v55, %v9179_v30  ;;  %v3720_v15 = vadd.f32 %v3674_v62, %v9181_v21 }
 0x796   :  { %v3717_v30 = vadd.f32 %v9374_v39, %v9169_v57  ;;  %v3718_v21 = vadd.f32 %v9376_v23, %v9171_v3  ;;  %v6243_v57 = vld [vmem:[%s9552_s5 + $0xd8] sm:$0xff]  ;;  %v6242_v23 = vld [vmem:[%s9552_s5 + $0xd0] sm:$0xff] }
 0x798   :  { %4306 = vmatpush.bf16.msrb.mxu0 %v6237_v61  ;;  %v6246_v61 = vld [vmem:[%s9552_s5 + $0xf0] sm:$0xff] }
 0x799   :  { %v3617_v54 = vpop.f32.mrf.mxu0 }
 0x79b   :  { %v3676_v40 = vpop.f32.mrf.mxu1 }
 0x79c   :  { %v3866_v29 = vpop.f32.mrf.mxu2  ;;  %v3925_v6 = vpop.f32.mrf.mxu3  ;;  %4307 = vmatpush.bf16.msrb.mxu0 %v6236_v42  ;;  %v3716_v42 = vadd.f32 %v9357_v14, %v9163_v31  ;;  %v6244_v31 = vld [vmem:[%s9552_s5 + $0xe0] sm:$0xff]  ;;  %v3721_v14 = vadd.f32 %v3617_v54, %v9187_v2 }
 0x79d   :  { %v3972_v18 = vadd.f32 %v3866_v29, %v3711_v51  ;;  %v3973_v10 = vadd.f32 %v3925_v6, %v3712_v13  ;;  %v6232_v13 = vld [vmem:[%s9552_s5 + $0x80] sm:$0xff]  ;;  %v6251_v6 = vld [vmem:[%s9552_s5 + $0x118] sm:$0xff] }
 0x79e   :  { %4482 = vmatpush.bf16.msra.mxu2 %v6251_v6 }
 0x79f   :  { %v4004_v52 = vmax.f32 %v3968_v37, %v3972_v18  ;;  %v4005_v11 = vmax.f32 %v3969_v47, %v3973_v10  ;;  %v6247_v18 = vld [vmem:[%s9552_s5 + $0xf8] sm:$0xff]  ;;  %v6250_v10 = vld [vmem:[%s9552_s5 + $0x110] sm:$0xff] }
 0x7a0   :  { %4308 = vmatpush.bf16.msrb.mxu0 %v6235_v22  ;;  %4391 = vmatpush.bf16.msra.mxu1 %v6247_v18 }
 0x7a1   :  { %v4022_v20 = vmax.f32 %v4004_v52, %v4005_v11  ;;  %v9416_v52 = vpop.f32.mrf.mxu0 }
 0x7a2   :  { %4483 = vmatpush.bf16.msra.mxu2 %v6250_v10 }
 0x7a3   :  { %v4036_v38 = vadd.f32 %v9327_v63, %v4022_v20  ;;  %v9418_v11 = vpop.f32.mrf.mxu1  ;;  %v3715_v20 = vadd.f32 %v9355_v36, %v9161_v33 }
 0x7a4   :  { %v3868_v59 = vpop.f32.mrf.mxu2  ;;  %v3927_v25 = vpop.f32.mrf.mxu3  ;;  %4309 = vmatpush.bf16.msrb.mxu0 %v6234_v12  ;;  %4392 = vmatpush.bf16.msra.mxu1 %v6246_v61 }
 0x7a5   :  { %v3974_v34 = vadd.f32 %v3868_v59, %v3713_v1  ;;  %v3975_v24 = vadd.f32 %v3927_v25, %v3714_v27  ;;  %v4046_v35 = vmax.f32 %v4036_v38, 0.0  ;;  %v6245_v38 = vld [vmem:[%s9552_s5 + $0xe8] sm:$0xff] }
 0x7a7   :  { %v4006_v45 = vmax.f32 %v3970_v19, %v3974_v34  ;;  %v4007_v53 = vmax.f32 %v3971_v44, %v3975_v24  ;;  %v4056_v28 = vpack.c.bf16 %v4046_v35, %v4046_v35  ;;  %v3722_v24 = vadd.f32 %v3676_v40, %v9189_v17 }
 0x7a8   :  { %4310 = vmatpush.bf16.msrb.mxu0 %v6233_v46  ;;  %4393 = vmatpush.bf16.msra.mxu1 %v6245_v38 }
 0x7a9   :  { %v4023_v0 = vmax.f32 %v4006_v45, %v4007_v53  ;;  %v4099_v60 = vunpack.c.l.b16 %v4056_v28  ;;  %v3622_v45 = vpop.f32.mrf.mxu0 }
 0x7ab   :  { %v4037_v4 = vadd.f32 %v9327_v63, %v4023_v0  ;;  %v3681_v53 = vpop.f32.mrf.mxu1 }
 0x7ac   :  { %v3871_v43 = vpop.f32.mrf.mxu2  ;;  %v3930_v9 = vpop.f32.mrf.mxu3  ;;  %4311 = vmatpush.bf16.msrb.mxu0 %v6232_v13  ;;  %4394 = vmatpush.bf16.msra.mxu1 %v6244_v31 }
 0x7ad   :  { %v4047_v8 = vmax.f32 %v4037_v4, 0.0  ;;  %v3976_v19 = vadd.f32 %v3871_v43, %v3715_v20  ;;  %v3977_v59 = vadd.f32 %v3930_v9, %v3716_v42  ;;  %v3723_v20 = vadd.f32 %v9416_v52, %v9197_v50 }
 0x7ae   :  { %v3724_v42 = vadd.f32 %v9418_v11, %v9199_v41  ;;  %v3726_v52 = vadd.f32 %v3681_v53, %v9207_v5  ;;  %v6248_v5 = vld [vmem:[%s9552_s5 + $0x100] sm:$0xff] }
 0x7af   :  { %v4057_v32 = vpack.c.bf16 %v4047_v8, %v4047_v8 }
 0x7b0   :  { %4395 = vmatpush.bf16.msra.mxu1 %v6243_v57 }
 0x7b1   :  { %v4100_v51 = vunpack.c.l.b16 %v4057_v32  ;;  %v6241_v32 = vld [vmem:[%s9552_s5 + $0xc8] sm:$0xff]  ;;  %v3625_v54 = vpop.f32.mrf.mxu0 }
 0x7b3   :  { %v4101_v29 = vpack.c.b16 %v4100_v51, %v4099_v60  ;;  %v3684_v40 = vpop.f32.mrf.mxu1 }
 0x7b4   :  { %v3873_v37 = vpop.f32.mrf.mxu2  ;;  %v3932_v47 = vpop.f32.mrf.mxu3  ;;  %4396 = vmatpush.bf16.msra.mxu1 %v6242_v23 }
 0x7b5   :  { %4159 = vmatmul.bf16.vlgmr.msra.gmra.mxu0 %v4101_v29  ;;  %v3978_v22 = vadd.f32 %v3873_v37, %v3717_v30  ;;  %v3979_v35 = vadd.f32 %v3932_v47, %v3718_v21  ;;  %v6240_v29 = vld [vmem:[%s9552_s5 + $0xc0] sm:$0xff]  ;;  %v6249_v37 = vld [vmem:[%s9552_s5 + $0x108] sm:$0xff] }
 0x7b6   :  { %4484 = vmatpush.bf16.msra.mxu2 %v6249_v37 }
 0x7b8   :  { %4397 = vmatpush.bf16.msra.mxu1 %v6241_v32  ;;  %v9955_v32 = vld [vmem:[#allocation28_spill] sm:$0xff] }
 0x7b9   :  { %v3627_v10 = vpop.f32.mrf.mxu0 }
 0x7ba   :  { %v3729_v41 = vadd.f32 %v3627_v10, %v9227_v26  ;;  %4485 = vmatpush.bf16.msra.mxu2 %v6248_v5 }
 0x7bb   :  { %v3686_v61 = vpop.f32.mrf.mxu1 }
 0x7bc   :  { %v3876_v1 = vpop.f32.mrf.mxu2  ;;  %v3935_v27 = vpop.f32.mrf.mxu3  ;;  %4398 = vmatpush.bf16.msra.mxu1 %v6240_v29  ;;  %v9958_v29 = vld [vmem:[#allocation9_spill] sm:$0xff] }
 0x7bd   :  { %v3980_v25 = vadd.f32 %v3876_v1, %v3719_v56  ;;  %v3981_v44 = vadd.f32 %v3935_v27, %v3720_v15  ;;  %v3727_v56 = vadd.f32 %v3625_v54, %v9215_v48  ;;  %v3728_v15 = vadd.f32 %v3684_v40, %v9217_v49  ;;  %v9956_v40 = vld [vmem:[#allocation80_spill] sm:$0xff] }
 0x7be   :  { %v3730_v48 = vadd.f32 %v3686_v61, %v9229_v58 }
 0x7bf   :  { %v4008_v34 = vmax.f32 %v3976_v19, %v3980_v25  ;;  %v4009_v33 = vmax.f32 %v3977_v59, %v3981_v44 }
 0x7c1   :  { %v4024_v36 = vmax.f32 %v4008_v34, %v4009_v33  ;;  %v3630_v31 = vpop.f32.mrf.mxu0 }
 0x7c3   :  { %v4038_v0 = vadd.f32 %v9327_v63, %v4024_v36  ;;  %v3725_v36 = vadd.f32 %v3622_v45, %v9205_v16  ;;  %v3689_v50 = vpop.f32.mrf.mxu1 }
 0x7c4   :  { %v3878_v55 = vpop.f32.mrf.mxu2  ;;  %v3937_v62 = vpop.f32.mrf.mxu3  ;;  %v3732_v54 = vadd.f32 %v3689_v50, %v9955_v32 }
 0x7c5   :  { %v3982_v12 = vadd.f32 %v3878_v55, %v3721_v14  ;;  %v3983_v4 = vadd.f32 %v3937_v62, %v3722_v24  ;;  %v4048_v2 = vmax.f32 %v4038_v0, 0.0 }
 0x7c7   :  { %v4010_v3 = vmax.f32 %v3978_v22, %v3982_v12  ;;  %v4011_v39 = vmax.f32 %v3979_v35, %v3983_v4  ;;  %v4058_v8 = vpack.c.bf16 %v4048_v2, %v4048_v2 }
 0x7c9   :  { %v4025_v17 = vmax.f32 %v4010_v3, %v4011_v39  ;;  %v4252_v51 = vunpack.c.l.b16 %v4058_v8  ;;  %v3632_v12 = vpop.f32.mrf.mxu0  ;;  %v6262_v8 = vld [vmem:[%s9553_s7 + $0x30] sm:$0xff] }
 0x7cb   :  { %v4039_v43 = vadd.f32 %v9327_v63, %v4025_v17  ;;  %v3691_v4 = vpop.f32.mrf.mxu1  ;;  %v6263_v17 = vld [vmem:[%s9553_s7 + $0x38] sm:$0xff] }
 0x7cc   :  { %v3881_v9 = vpop.f32.mrf.mxu2  ;;  %v3940_v28 = vpop.f32.mrf.mxu3  ;;  %4571 = vmatpush.bf16.msra.mxu3 %v6263_v17 }
 0x7cd   :  { %v4049_v46 = vmax.f32 %v4039_v43, 0.0  ;;  %v3984_v19 = vadd.f32 %v3881_v9, %v3723_v20  ;;  %v3985_v59 = vadd.f32 %v3940_v28, %v3724_v42  ;;  %v6261_v42 = vld [vmem:[%s9553_s7 + $0x28] sm:$0xff] }
 0x7cf   :  { %v4059_v60 = vpack.c.bf16 %v4049_v46, %v4049_v46  ;;  %v3731_v46 = vadd.f32 %v3630_v31, %v9247_v7 }
 0x7d0   :  { %4572 = vmatpush.bf16.msra.mxu3 %v6262_v8  ;;  %v6270_v8 = vld [vmem:[%s9556_s9 + $0x30] sm:$0xff] }
 0x7d1   :  { %v4253_v13 = vunpack.c.l.b16 %v4059_v60  ;;  %v3635_v9 = vpop.f32.mrf.mxu0 }
 0x7d2   :  { %v3735_v60 = vadd.f32 %v3635_v9, %v9956_v40  ;;  %v6271_v9 = vld [vmem:[%s9556_s9 + $0x38] sm:$0xff]  ;;  %v6268_v40 = vld [vmem:[%s9556_s9 + $0x20] sm:$0xff] }
 0x7d3   :  { %v4254_v6 = vpack.c.b16 %v4253_v13, %v4252_v51  ;;  %v3694_v28 = vpop.f32.mrf.mxu1  ;;  %v9957_v51 = vld [vmem:[#allocation34_spill] sm:$0xff]  ;;  %4656 = vmatpush.bf16.msra.mxu0 %v6271_v9 }
 0x7d4   :  { %v3883_v47 = vpop.f32.mrf.mxu2  ;;  %v3942_v18 = vpop.f32.mrf.mxu3  ;;  %v3736_v13 = vadd.f32 %v3694_v28, %v9957_v51  ;;  %4573 = vmatpush.bf16.msra.mxu3 %v6261_v42 }
 0x7d5   :  { %4312 = vmatmul.bf16.vlgmr.msrb.gmra.mxu0 %v4254_v6  ;;  %v3986_v49 = vadd.f32 %v3883_v47, %v3725_v36  ;;  %v3987_v21 = vadd.f32 %v3942_v18, %v3726_v52  ;;  %v9959_v6 = vld [vmem:[#allocation30_spill] sm:$0xff]  ;;  %v9960_v47 = vld [vmem:[#allocation13_spill] sm:$0xff]  ;;  %v9964_v52 = vld [vmem:[#allocation24_spill] sm:$0xff] }
 0x7d6   :  { %v3151_v37 = vadd.f32 %v9959_v6, %v9958_v29  ;;  %v9961_v18 = vld [vmem:[#allocation25_spill] sm:$0xff] }
 0x7d7   :  { %v3210_v10 = vadd.f32 %v9961_v18, %v9960_v47  ;;  %4657 = vmatpush.bf16.msra.mxu0 %v6270_v8 }
 0x7db   :  { %v3696_v36 = vpop.f32.mrf.mxu1 }
 0x7dc   :  { %v3886_v1 = vpop.f32.mrf.mxu2  ;;  %v3945_v27 = vpop.f32.mrf.mxu3 }
 0x7dd   :  { %v3988_v25 = vadd.f32 %v3886_v1, %v3727_v56  ;;  %v3989_v44 = vadd.f32 %v3945_v27, %v3728_v15  ;;  %v9962_v27 = vld [vmem:[#allocation78_spill] sm:$0xff] }
 0x7df   :  { %v4012_v38 = vmax.f32 %v3984_v19, %v3988_v25  ;;  %v4013_v34 = vmax.f32 %v3985_v59, %v3989_v44  ;;  %v3472_v19 = vadd.f32 %v9962_v27, %v3151_v37  ;;  %v9963_v59 = vld [vmem:[#allocation77_spill] sm:$0xff] }
 0x7e0   :  { %v3473_v25 = vadd.f32 %v9963_v59, %v3210_v10  ;;  %v6267_v59 = vld [vmem:[%s9556_s9 + $0x18] sm:$0xff] }
 0x7e1   :  { %v4026_v33 = vmax.f32 %v4012_v38, %v4013_v34  ;;  %v3733_v31 = vadd.f32 %v3632_v12, %v3472_v19 }
 0x7e2   :  { %v3734_v50 = vadd.f32 %v3691_v4, %v3473_v25  ;;  %v6266_v25 = vld [vmem:[%s9556_s9 + $0x10] sm:$0xff] }
 0x7e3   :  { %v4040_v14 = vadd.f32 %v9327_v63, %v4026_v33  ;;  %v3637_v33 = vpop.f32.mrf.mxu0 }
 0x7e4   :  { %v3888_v11 = vpop.f32.mrf.mxu2  ;;  %v3947_v30 = vpop.f32.mrf.mxu3 }
 0x7e5   :  { %v3990_v24 = vadd.f32 %v3888_v11, %v3729_v41  ;;  %v3991_v22 = vadd.f32 %v3947_v30, %v3730_v48  ;;  %v4050_v35 = vmax.f32 %v4040_v14, 0.0  ;;  %v3737_v41 = vadd.f32 %v3637_v33, %v9964_v52  ;;  %v9965_v48 = vld [vmem:[#allocation33_spill] sm:$0xff]  ;;  %v6281_v33 = vld [vmem:[%s9555_s8] ss:$0 sm:$0xff] }
 0x7e7   :  { %v4014_v55 = vmax.f32 %v3986_v49, %v3990_v24  ;;  %v4015_v62 = vmax.f32 %v3987_v21, %v3991_v22  ;;  %v4060_v53 = vpack.c.bf16 %v4050_v35, %v4050_v35  ;;  %v3738_v49 = vadd.f32 %v3696_v36, %v9965_v48 }
 0x7e9   :  { %v4027_v16 = vmax.f32 %v4014_v55, %v4015_v62  ;;  %v4339_v3 = vunpack.c.l.b16 %v4060_v53 }
 0x7eb   :  { %v4041_v26 = vadd.f32 %v9327_v63, %v4027_v16 }
 0x7ec   :  { %v3891_v58 = vpop.f32.mrf.mxu2  ;;  %v3950_v45 = vpop.f32.mrf.mxu3 }
 0x7ed   :  { %v4051_v0 = vmax.f32 %v4041_v26, 0.0  ;;  %v3992_v7 = vadd.f32 %v3891_v58, %v3731_v46  ;;  %v3993_v56 = vadd.f32 %v3950_v45, %v3732_v54  ;;  %v6269_v46 = vld [vmem:[%s9556_s9 + $0x28] sm:$0xff] }
 0x7ee   :  { %4658 = vmatpush.bf16.msra.mxu0 %v6269_v46 }
 0x7ef   :  { %v4061_v57 = vpack.c.bf16 %v4051_v0, %v4051_v0 }
 0x7f1   :  { %v4340_v39 = vunpack.c.l.b16 %v4061_v57  ;;  %v6260_v57 = vld [vmem:[%s9553_s7 + $0x20] sm:$0xff] }
 0x7f2   :  { %4574 = vmatpush.bf16.msra.mxu3 %v6260_v57  ;;  %4659 = vmatpush.bf16.msra.mxu0 %v6268_v40 }
 0x7f3   :  { %v4341_v2 = vpack.c.b16 %v4340_v39, %v4339_v3  ;;  %v6259_v3 = vld [vmem:[%s9553_s7 + $0x18] sm:$0xff]  ;;  %v6257_v39 = vld [vmem:[%s9553_s7 + $0x8] sm:$0xff] }
 0x7f4   :  { %v3893_v23 = vpop.f32.mrf.mxu2  ;;  %v3952_v43 = vpop.f32.mrf.mxu3 }
 0x7f5   :  { %4399 = vmatmul.bf16.vlgmr.msra.gmra.mxu1 %v4341_v2  ;;  %v3994_v11 = vadd.f32 %v3893_v23, %v3733_v31  ;;  %v3995_v14 = vadd.f32 %v3952_v43, %v3734_v50  ;;  %v6256_v2 = vld [vmem:[%s9553_s7] sm:$0xff] }
 0x7f6   :  { %4575 = vmatpush.bf16.msra.mxu3 %v6259_v3  ;;  %4660 = vmatpush.bf16.msra.mxu0 %v6267_v59 }
 0x7fa   :  { %4661 = vmatpush.bf16.msra.mxu0 %v6266_v25 }
 0x7fc   :  { %v3896_v61 = vpop.f32.mrf.mxu2  ;;  %v3955_v20 = vpop.f32.mrf.mxu3 }
 0x7fd   :  { %v3996_v15 = vadd.f32 %v3896_v61, %v3735_v60  ;;  %v3997_v1 = vadd.f32 %v3955_v20, %v3736_v13  ;;  %v6280_v61 = vld [vmem:[%s9554_s6] ss:$0 sm:$0xff] }
 0x7ff   :  { %v4016_v44 = vmax.f32 %v3992_v7, %v3996_v15  ;;  %v4017_v38 = vmax.f32 %v3993_v56, %v3997_v1 }
 0x801   :  { %v4028_v34 = vmax.f32 %v4016_v44, %v4017_v38  ;;  %v6265_v44 = vld [vmem:[%s9556_s9 + $0x8] sm:$0xff]  ;;  %v6264_v38 = vld [vmem:[%s9556_s9] sm:$0xff] }
 0x802   :  { %4662 = vmatpush.bf16.msra.mxu0 %v6265_v44 }
 0x803   :  { %v4042_v24 = vadd.f32 %v9327_v63, %v4028_v34 }
 0x804   :  { %v3898_v30 = vpop.f32.mrf.mxu2  ;;  %v3957_v21 = vpop.f32.mrf.mxu3 }
 0x805   :  { %v3998_v22 = vadd.f32 %v3898_v30, %v3737_v41  ;;  %v3999_v55 = vadd.f32 %v3957_v21, %v3738_v49  ;;  %v4052_v16 = vmax.f32 %v4042_v24, 0.0  ;;  %v6282_v49 = vld [vmem:[%s9557_s10] ss:$0 sm:$0xff] }
 0x806   :  { %4663 = vmatpush.bf16.msra.mxu0 %v6264_v38 }
 0x807   :  { %v4018_v62 = vmax.f32 %v3994_v11, %v3998_v22  ;;  %v4019_v35 = vmax.f32 %v3995_v14, %v3999_v55  ;;  %v4062_v58 = vpack.c.bf16 %v4052_v16, %v4052_v16 }
 0x809   :  { %v4029_v5 = vmax.f32 %v4018_v62, %v4019_v35  ;;  %v4426_v0 = vunpack.c.l.b16 %v4062_v58 }
 0x80b   :  { %v4043_v26 = vadd.f32 %v9327_v63, %v4029_v5  ;;  %v6258_v63 = vld [vmem:[%s9553_s7 + $0x10] sm:$0xff] }
 0x80c   :  { %4576 = vmatpush.bf16.msra.mxu3 %v6258_v63 }
 0x80d   :  { %v4053_v45 = vmax.f32 %v4043_v26, 0.0 }
 0x80f   :  { %v4063_v53 = vpack.c.bf16 %v4053_v45, %v4053_v45 }
 0x810   :  { %4577 = vmatpush.bf16.msra.mxu3 %v6257_v39 }
 0x811   :  { %v4427_v12 = vunpack.c.l.b16 %v4063_v53 }
 0x812   :  { %v4228_v23 = vpop.f32.mrf.mxu1 }
 0x813   :  { %v4428_v4 = vpack.c.b16 %v4427_v12, %v4426_v0 }
 0x814   :  { %4578 = vmatpush.bf16.msra.mxu3 %v6256_v2 }
 0x815   :  { %4486 = vmatmul.bf16.vlgmr.msra.gmra.mxu2 %v4428_v4 }
 0x81a   :  { %v4230_v28 = vpop.f32.mrf.mxu1 }
 0x832   :  { %v4160_v17 = vpop.f32.mrf.mxu0 }
 0x833   :  { %v4229_v60 = vadd.f32 %v4228_v23, %v4160_v17 }
 0x83a   :  { %v4162_v43 = vpop.f32.mrf.mxu0 }
 0x83b   :  { %v4231_v6 = vadd.f32 %v4230_v28, %v4162_v43 }
 0x852   :  { %v4313_v32 = vpop.f32.mrf.mxu0 }
 0x853   :  { %v4318_v13 = vadd.f32 %v4313_v32, %v4229_v60 }
 0x85a   :  { %v4315_v29 = vpop.f32.mrf.mxu0 }
 0x85b   :  { %v4319_v18 = vadd.f32 %v4315_v29, %v4231_v6 }
 0x872   :  { %v4400_v54 = vpop.f32.mrf.mxu1 }
 0x873   :  { %v4405_v37 = vadd.f32 %v4400_v54, %v4318_v13 }
 0x87a   :  { %v4402_v47 = vpop.f32.mrf.mxu1 }
 0x87b   :  { %v4406_v20 = vadd.f32 %v4402_v47, %v4319_v18 }
 0x898   :  { %v4487_v51 = vpop.f32.mrf.mxu2 }
 0x899   :  { %v4492_v10 = vadd.f32 %v4487_v51, %v4405_v37 }
 0x89b   :  { %v4498_v7 = vadd.f32 %v6280_v61, %v4492_v10 }
 0x89d   :  { %v4500_v1 = vmax.f32 %v4498_v7, 0.0 }
 0x8a0   :  { %v4489_v42 = vpop.f32.mrf.mxu2 }
 0x8a1   :  { %v4493_v56 = vadd.f32 %v4489_v42, %v4406_v20 }
 0x8a3   :  { %v4499_v15 = vadd.f32 %v6280_v61, %v4493_v56 }
 0x8a5   :  { %v4501_v27 = vmax.f32 %v4499_v15, 0.0 }
 0x8a7   :  { %v4502_v19 = vpack.c.bf16 %v4501_v27, %v4500_v1 }
 0x8a9   :  { %4579 = vmatmul.bf16.vlgmr.msra.gmra.mxu3 %v4502_v19 }
 0x92c   :  { %v4580_v34 = vpop.f32.mrf.mxu3 }
 0x92d   :  { %v4581_v36 = vadd.f32 %v6281_v33, %v4580_v34 }
 0x92f   :  { %v4585_v52 = vmax.f32 %v4581_v36, 0.0 }
 0x934   :  { %v4582_v31 = vpop.f32.mrf.mxu3 }
 0x935   :  { %v4583_v50 = vadd.f32 %v6281_v33, %v4582_v31 }
 0x937   :  { %v4586_v41 = vmax.f32 %v4583_v50, 0.0 }
 0x939   :  { %v4587_v48 = vpack.c.bf16 %v4586_v41, %v4585_v52 }
 0x93b   :  { %4664 = vmatmul.bf16.vlgmr.msra.gmra.mxu0 %v4587_v48 }
 0x9b8   :  { %v4665_v11 = vpop.f32.mrf.mxu0 }
 0x9b9   :  { %v4666_v30 = vadd.f32 %v6282_v49, %v4665_v11 }
 0x9bb   :  { %4670 = vst [vmem:[%s9558_s11] sm:$0xff] %v4666_v30 }
 0x9c0   :  { %v4667_v21 = vpop.f32.mrf.mxu0 }
 0x9c1   :  { %v4668_v14 = vadd.f32 %v6282_v49, %v4667_v21 }
 0x9c3   :  { %4671 = vst [vmem:[%s9558_s11 + $0x8] sm:$0xff] %v4668_v14 }

</bundles_post_ra>
